<compile_context>
chip_gen: v6e
topology: v6e:2x2x1
jax: 0.10.0
libtpu: 0.0.40
codegen_flags: <defaults>
</compile_context>

<pallas_src>
import functools
import math

import jax
import jax.numpy as jnp
from jax.experimental import pallas as pl
from jax.experimental.pallas import tpu as pltpu

BN_EPS = 1e-5
LANE = 128


def _round_up(x, m):
    return (x + m - 1) // m * m


@functools.lru_cache(maxsize=None)
def _vmem_limit_bytes():
    """Generation-aware scoped-VMEM budget (v7x: 64 MiB phys, v5e/v6e: 128 MiB)."""
    cap = 64 * 1024 * 1024
    try:
        cap = int(pltpu.get_tpu_info().vmem_capacity_bytes)
    except Exception:
        pass
    return min((cap * 3) // 4, 100 * 1024 * 1024)


def _pick_tile_h(ho, per_h_bytes, resident_bytes, vmem_limit, min_bands=2):
    """Largest Ho-band (divisor of Ho) fitting (vmem_limit - resident) bytes.

    Prefers >= min_bands bands so pass 1/2 can shard across the two
    TensorCores on v7x; falls back to a single band if nothing else fits."""
    budget = vmem_limit - resident_bytes
    best_any, best_multi = 1, None
    for th in range(1, ho + 1):
        if ho % th:
            continue
        if th * per_h_bytes <= budget:
            best_any = th
            if ho // th >= min_bands:
                best_multi = th
    return best_multi if best_multi is not None else best_any


# ----------------------------------------------------------------------------
# Kernel 1: conv band (single deep-contraction matmul) + per-band BN partials
# ----------------------------------------------------------------------------
def _conv_stats_kernel(x_ref, w_ref, y_ref, stats_ref, *,
                       th, n, wo, cin, cout, ksize, stride):
    """x_ref:     (s*s, Hs, N, Ws, Cin) stride-phase-split padded input (bf16);
                  constant block index -> fetched once, VMEM resident.
       w_ref:     (K*K*Cin, Cout) bf16 weights (K*K folded into contraction).
       y_ref:     (TH, N, Wo, Cout) bf16 pre-BN conv output band.
       stats_ref: (2, Cout) f32 per-band [sum; sum-of-squares] partial."""
    i = pl.program_id(0)
    h0 = i * th
    rows = th * n * wo

    parts = []
    for kh in range(ksize):                  # static K*K gather of shifted views
        for kw in range(ksize):
            ph = (kh % stride) * stride + (kw % stride)
            parts.append(x_ref[ph,
                               pl.ds(h0 + kh // stride, th),
                               :,
                               pl.ds(kw // stride, wo),
                               :])            # (TH, N, Wo, Cin)

    # One lane-dim concat -> a single deep-contraction MXU matmul per band.
    xcat = jnp.concatenate(parts, axis=-1).reshape(rows, ksize * ksize * cin)
    acc = jnp.dot(xcat, w_ref[...], preferred_element_type=jnp.float32)  # (rows, Cout)

    y_ref[...] = acc.reshape(th, n, wo, cout).astype(y_ref.dtype)

    # BN stat partials for this band, computed from the f32 accumulator.
    stats_ref[0:1, :] = jnp.sum(acc, axis=0, keepdims=True)
    stats_ref[1:2, :] = jnp.sum(acc * acc, axis=0, keepdims=True)


# ----------------------------------------------------------------------------
# Kernel 2: BatchNorm (batch statistics) + ReLU, normalize pass
# ----------------------------------------------------------------------------
def _bn_relu_kernel(y_ref, stats_ref, gamma_ref, beta_ref, a_ref, *, inv_count):
    totals = jnp.sum(stats_ref[...], axis=0)          # (2, C): sum / sum-of-squares
    mean = totals[0:1, :] * inv_count
    # Biased variance (nn.BatchNorm2d training forward).  Single-pass
    # E[x^2]-E[x]^2 in f32 is fine at these scales (see review note).
    var = totals[1:2, :] * inv_count - mean * mean
    scale = gamma_ref[...] * jax.lax.rsqrt(var + BN_EPS)
    shift = beta_ref[...] - mean * scale
    y = y_ref[...].astype(jnp.float32)                # (TH, N, Wo, C)
    a_ref[...] = jnp.maximum(y * scale + shift, 0.0).astype(a_ref.dtype)


# ----------------------------------------------------------------------------
# Kernel 3: fused AdaptiveAvgPool2d((1,1)) + Linear (pool folded into matmul)
# ----------------------------------------------------------------------------
def _pool_fc_kernel(x_ref, w_ref, b_ref, o_ref):
    # TODO(synk): for non-toy sizes, tile the pooled reduction over Ho with a
    # resident (N, C) accumulator instead of loading the whole activation.
    x = x_ref[...].astype(jnp.float32)                # (Ho, N, Wo, C)
    t = jnp.sum(x, axis=0)                            # (N, Wo, C)
    pooled = jnp.sum(t, axis=1)                       # (N, C); 1/(H*W) folded into w
    o_ref[...] = jnp.dot(pooled, w_ref[...],
                         preferred_element_type=jnp.float32) + b_ref[...]


# ----------------------------------------------------------------------------
# Wrappers around pallas_call
# ----------------------------------------------------------------------------
def conv_bn_relu_layer(x_hnwc, conv_w, gamma, beta, stride, ksize):
    """One Conv2d(ksize, stride, padding=ksize//2) + BN(train) + ReLU layer.

    x_hnwc: (H, N, W, Cin) activation.  Returns (Ho, N, Wo, Cout) bf16."""
    h, n, w, cin = x_hnwc.shape
    cout = conv_w.shape[0]
    pad = ksize // 2
    ho = (h + 2 * pad - ksize) // stride + 1
    wo = (w + 2 * pad - ksize) // stride + 1
    kkcin = ksize * ksize * cin

    # ---- wrapper-side layout only (zero-pad + stride-phase split, no K*K dup) --
    xp = jnp.pad(x_hnwc, ((pad, pad), (0, 0), (pad, pad), (0, 0)))
    hp, wp = h + 2 * pad, w + 2 * pad
    hp2, wp2 = _round_up(hp, stride), _round_up(wp, stride)
    if (hp2, wp2) != (hp, wp):
        xp = jnp.pad(xp, ((0, hp2 - hp), (0, 0), (0, wp2 - wp), (0, 0)))
    hs, ws = hp2 // stride, wp2 // stride
    xph = xp.reshape(hs, stride, n, ws, stride, cin)
    xph = jnp.transpose(xph, (1, 4, 0, 2, 3, 5))       # (sh, sw, Hs, N, Ws, Cin)
    xph = xph.reshape(stride * stride, hs, n, ws, cin).astype(jnp.bfloat16)
    # TODO(synk): halo-tile this input per Ho band (pl.ANY + manual DMA) for
    # large H*W on v7x instead of keeping the whole array VMEM resident.

    # weights: (Cout, Cin, K, K) -> (K*K*Cin, Cout), bf16; no channel padding.
    wm = jnp.transpose(conv_w, (2, 3, 1, 0)).reshape(kkcin, cout).astype(jnp.bfloat16)
    g2 = gamma.reshape(1, cout).astype(jnp.float32)
    b2 = beta.reshape(1, cout).astype(jnp.float32)

    # ---- band size from a generation-aware VMEM budget ------------------------
    vmem_limit = _vmem_limit_bytes()
    resident_bytes = xph.size * 2 + wm.size * 2 + (1 << 20)   # resident blocks + slack
    per_h_bytes = n * wo * (2 * cout * 2        # y band bf16, double buffered
                            + 2 * cout * 2      # a band bf16, double buffered
                            + 2 * kkcin         # xcat bf16 matmul operand
                            + 4 * cout)         # f32 accumulator
    th = _pick_tile_h(ho, per_h_bytes, resident_bytes, vmem_limit, min_bands=2)
    nb = ho // th

    flops = 2 * ho * n * wo * kkcin * cout
    bytes_acc = xph.size * 2 + wm.size * 2 + ho * n * wo * cout * 2 + nb * 2 * cout * 4

    # Pass 1: conv bands (one MXU dot per band) + per-band BN stat partials.
    # Each grid step writes only its own y band and its own stats row, so the
    # axis is "parallel" (shards across the 2 TensorCores on v7x).
    y, stats = pl.pallas_call(
        functools.partial(_conv_stats_kernel, th=th, n=n, wo=wo, cin=cin,
                          cout=cout, ksize=ksize, stride=stride),
        out_shape=(jax.ShapeDtypeStruct((ho, n, wo, cout), jnp.bfloat16),
                   jax.ShapeDtypeStruct((nb, 2, cout), jnp.float32)),
        grid_spec=pltpu.PrefetchScalarGridSpec(
            num_scalar_prefetch=0,
            grid=(nb,),
            in_specs=[
                pl.BlockSpec((stride * stride, hs, n, ws, cin),
                             lambda i: (0, 0, 0, 0, 0)),
                pl.BlockSpec((kkcin, cout), lambda i: (0, 0)),
            ],
            out_specs=(
                pl.BlockSpec((th, n, wo, cout), lambda i: (i, 0, 0, 0)),
                pl.BlockSpec((None, 2, cout), lambda i: (i, 0, 0)),
            ),
        ),
        compiler_params=pltpu.CompilerParams(
            dimension_semantics=("parallel",),
            vmem_limit_bytes=vmem_limit),
        cost_estimate=pl.CostEstimate(flops=flops, transcendentals=0,
                                      bytes_accessed=bytes_acc),
    )(xph, wm)

    # Pass 2: reduce the tiny per-band partials, normalize + ReLU ("parallel").
    inv_count = 1.0 / float(n * ho * wo)
    a = pl.pallas_call(
        functools.partial(_bn_relu_kernel, inv_count=inv_count),
        out_shape=jax.ShapeDtypeStruct((ho, n, wo, cout), jnp.bfloat16),
        grid_spec=pltpu.PrefetchScalarGridSpec(
            num_scalar_prefetch=0,
            grid=(nb,),
            in_specs=[
                pl.BlockSpec((th, n, wo, cout), lambda i: (i, 0, 0, 0)),
                pl.BlockSpec((nb, 2, cout), lambda i: (0, 0, 0)),
                pl.BlockSpec((1, cout), lambda i: (0, 0)),
                pl.BlockSpec((1, cout), lambda i: (0, 0)),
            ],
            out_specs=pl.BlockSpec((th, n, wo, cout), lambda i: (i, 0, 0, 0)),
        ),
        compiler_params=pltpu.CompilerParams(
            dimension_semantics=("parallel",),
            vmem_limit_bytes=vmem_limit),
    )(y, stats, g2, b2)
    return a


def pool_fc_head(a_hnwc, fc_w, fc_b, n_classes):
    """AdaptiveAvgPool2d((1,1)) + Linear, pool folded into the FC matmul."""
    ho, n, wo, c = a_hnwc.shape
    ncls_pad = _round_up(n_classes, LANE)

    wmat = jnp.transpose(fc_w)                                        # (C, n_classes)
    wmat = jnp.pad(wmat, ((0, 0), (0, ncls_pad - n_classes)))
    wmat = (wmat / float(ho * wo)).astype(jnp.float32)                # fold 1/(H*W)
    b2 = jnp.pad(fc_b, (0, ncls_pad - n_classes)).reshape(1, ncls_pad).astype(jnp.float32)

    out = pl.pallas_call(
        _pool_fc_kernel,
        out_shape=jax.ShapeDtypeStruct((n, ncls_pad), jnp.float32),
        grid_spec=pltpu.PrefetchScalarGridSpec(
            num_scalar_prefetch=0,
            grid=(1,),
            in_specs=[
                pl.BlockSpec((ho, n, wo, c), lambda i: (0, 0, 0, 0)),
                pl.BlockSpec((c, ncls_pad), lambda i: (0, 0)),
                pl.BlockSpec((1, ncls_pad), lambda i: (0, 0)),
            ],
            out_specs=pl.BlockSpec((n, ncls_pad), lambda i: (0, 0)),
        ),
        compiler_params=pltpu.CompilerParams(
            dimension_semantics=("arbitrary",),
            vmem_limit_bytes=_vmem_limit_bytes()),
    )(a_hnwc, wmat, b2)
    return out[:, :n_classes]


# ----------------------------------------------------------------------------
# Parameter construction (deterministic, PyTorch-style default init)
# ----------------------------------------------------------------------------
def init_params(key, n_in_channels, n_classes, n_intermediate_channels, strides, ksize):
    params = {"layers": []}
    cin = n_in_channels
    for cout in n_intermediate_channels:
        key, kw, kb = jax.random.split(key, 3)
        fan_in = cin * ksize * ksize
        bound = 1.0 / math.sqrt(fan_in)
        conv_w = jax.random.uniform(kw, (cout, cin, ksize, ksize), jnp.float32, -bound, bound)
        conv_b = jax.random.uniform(kb, (cout,), jnp.float32, -bound, bound)
        bn_gamma = jnp.ones((cout,), jnp.float32)
        bn_beta = jnp.zeros((cout,), jnp.float32)
        params["layers"].append((conv_w, conv_b, bn_gamma, bn_beta))
        cin = cout
    key, kw, kb = jax.random.split(key, 3)
    bound = 1.0 / math.sqrt(cin)
    params["fc_w"] = jax.random.uniform(kw, (n_classes, cin), jnp.float32, -bound, bound)
    params["fc_b"] = jax.random.uniform(kb, (n_classes,), jnp.float32, -bound, bound)
    return params


# ----------------------------------------------------------------------------
# Full forward pass
# ----------------------------------------------------------------------------
@functools.partial(jax.jit, static_argnames=("strides", "ksize"))
def mlc_forward(x_nchw, params, strides, ksize):
    # NCHW -> H-major (H, N, W, C) activation layout used by the kernels.
    a = jnp.transpose(x_nchw, (2, 0, 3, 1)).astype(jnp.float32)
    for (conv_w, conv_b, bn_g, bn_b), stride in zip(params["layers"], strides):
        # conv_b intentionally unused: training-mode BN cancels a per-channel
        # constant exactly (mean subtraction), so it is dead compute.
        a = conv_bn_relu_layer(a, conv_w, bn_g, bn_b, stride, ksize)
    n_classes = params["fc_w"].shape[0]
    return pool_fc_head(a, params["fc_w"], params["fc_b"], n_classes)


# ----------------------------------------------------------------------------
# Pure-JAX reference (independent path via lax.conv), matching the bf16-input
# matmul / f32-accumulate numerics of the kernels.
# ----------------------------------------------------------------------------
def mlc_reference(x_nchw, params, strides, ksize):
    x = jnp.transpose(x_nchw, (0, 2, 3, 1)).astype(jnp.float32)
    pad = ksize // 2
    for (conv_w, conv_b, bn_g, bn_b), stride in zip(params["layers"], strides):
        w_hwio = jnp.transpose(conv_w, (2, 3, 1, 0))
        y = jax.lax.conv_general_dilated(
            x.astype(jnp.bfloat16), w_hwio.astype(jnp.bfloat16),
            window_strides=(stride, stride),
            padding=[(pad, pad), (pad, pad)],
            dimension_numbers=("NHWC", "HWIO", "NHWC"),
            preferred_element_type=jnp.float32,
        ) + conv_b                                    # bias kept here (BN cancels it)
        mean = jnp.mean(y, axis=(0, 1, 2), keepdims=True)
        var = jnp.mean((y - mean) ** 2, axis=(0, 1, 2), keepdims=True)
        y = (y - mean) * jax.lax.rsqrt(var + BN_EPS) * bn_g + bn_b
        # activations are stored in bf16 between layers on the kernel path
        x = jnp.maximum(y, 0.0).astype(jnp.bfloat16).astype(jnp.float32)
    pooled = jnp.mean(x, axis=(1, 2))
    return pooled @ params["fc_w"].T + params["fc_b"]


if __name__ == "__main__":
    # MLC(n_in_channels=4, n_classes=5, n_intermediate_channels=[8, 16],
    #     strides=[1, 2], ksize=3)
    n_in, n_classes, ksize = 4, 5, 3
    inter_channels, strides = [8, 16], (1, 2)

    key = jax.random.PRNGKey(0)
    key, kx = jax.random.split(key)
    x = jax.random.normal(kx, (2, n_in, 16, 16), dtype=jnp.float32)   # NCHW input

    params = init_params(key, n_in, n_classes, inter_channels, list(strides), ksize)

    out = mlc_forward(x, params, strides, ksize)
    out = jax.block_until_ready(out)

    ref = mlc_reference(x, params, strides, ksize)
    assert out.shape == (2, n_classes)
    assert jnp.allclose(out, ref, rtol=2e-2, atol=2e-2), (out, ref)

    print("KERNEL_OK")
</pallas_src>

<mosaic_0001>
module attributes {stable_mosaic.version = 11 : i64} {
  func.func @_conv_stats_kernel(%arg0: i32, %arg1: memref<1x18x2x18x4xbf16, #tpu.memory_space<vmem>>, %arg2: memref<36x8xbf16, #tpu.memory_space<vmem>>, %arg3: memref<8x2x16x8xbf16, #tpu.memory_space<vmem>>, %arg4: memref<1x2x8xf32, #tpu.memory_space<vmem>>) attributes {dimension_semantics = [#tpu.dimension_semantics<parallel>], iteration_bounds = array<i64: 2>, scalar_prefetch = 0 : i64, scratch_operands = 0 : i64, tpu.core_type = #tpu.core_type<tc>, window_params = [{pipeline_mode = #tpu.pipeline_mode<synchronous>, transform_indices = @transform_0, window_bounds = array<i64: 1, 18, 2, 18, 4>}, {pipeline_mode = #tpu.pipeline_mode<synchronous>, transform_indices = @transform_1, window_bounds = array<i64: 36, 8>}, {transform_indices = @transform_2, window_bounds = array<i64: 8, 2, 16, 8>}, {transform_indices = @transform_3, window_bounds = array<i64: 1, 2, 8>}]} {
    %c8_i32 = arith.constant 8 : i32
    %0 = arith.muli %arg0, %c8_i32 : i32
    %c0_i32 = arith.constant 0 : i32
    %1 = arith.addi %0, %c0_i32 : i32
    %c0 = arith.constant 0 : index
    %2 = arith.index_cast %1 : i32 to index
    %c0_0 = arith.constant 0 : index
    %c0_1 = arith.constant 0 : index
    %c0_2 = arith.constant 0 : index
    %3 = vector.load %arg1[%c0, %2, %c0_0, %c0_1, %c0_2] : memref<1x18x2x18x4xbf16, #tpu.memory_space<vmem>>, vector<1x8x2x16x4xbf16>
    %4 = vector.shape_cast %3 : vector<1x8x2x16x4xbf16> to vector<8x2x16x4xbf16>
    %c0_i32_3 = arith.constant 0 : i32
    %5 = arith.addi %0, %c0_i32_3 : i32
    %c0_4 = arith.constant 0 : index
    %6 = arith.index_cast %5 : i32 to index
    %c0_5 = arith.constant 0 : index
    %c1 = arith.constant 1 : index
    %c0_6 = arith.constant 0 : index
    %7 = vector.load %arg1[%c0_4, %6, %c0_5, %c1, %c0_6] : memref<1x18x2x18x4xbf16, #tpu.memory_space<vmem>>, vector<1x8x2x16x4xbf16>
    %8 = vector.shape_cast %7 : vector<1x8x2x16x4xbf16> to vector<8x2x16x4xbf16>
    %c0_i32_7 = arith.constant 0 : i32
    %9 = arith.addi %0, %c0_i32_7 : i32
    %c0_8 = arith.constant 0 : index
    %10 = arith.index_cast %9 : i32 to index
    %c0_9 = arith.constant 0 : index
    %c2 = arith.constant 2 : index
    %c0_10 = arith.constant 0 : index
    %11 = vector.load %arg1[%c0_8, %10, %c0_9, %c2, %c0_10] : memref<1x18x2x18x4xbf16, #tpu.memory_space<vmem>>, vector<1x8x2x16x4xbf16>
    %12 = vector.shape_cast %11 : vector<1x8x2x16x4xbf16> to vector<8x2x16x4xbf16>
    %c1_i32 = arith.constant 1 : i32
    %13 = arith.addi %0, %c1_i32 : i32
    %c0_11 = arith.constant 0 : index
    %14 = arith.index_cast %13 : i32 to index
    %c0_12 = arith.constant 0 : index
    %c0_13 = arith.constant 0 : index
    %c0_14 = arith.constant 0 : index
    %15 = vector.load %arg1[%c0_11, %14, %c0_12, %c0_13, %c0_14] : memref<1x18x2x18x4xbf16, #tpu.memory_space<vmem>>, vector<1x8x2x16x4xbf16>
    %16 = vector.shape_cast %15 : vector<1x8x2x16x4xbf16> to vector<8x2x16x4xbf16>
    %c1_i32_15 = arith.constant 1 : i32
    %17 = arith.addi %0, %c1_i32_15 : i32
    %c0_16 = arith.constant 0 : index
    %18 = arith.index_cast %17 : i32 to index
    %c0_17 = arith.constant 0 : index
    %c1_18 = arith.constant 1 : index
    %c0_19 = arith.constant 0 : index
    %19 = vector.load %arg1[%c0_16, %18, %c0_17, %c1_18, %c0_19] : memref<1x18x2x18x4xbf16, #tpu.memory_space<vmem>>, vector<1x8x2x16x4xbf16>
    %20 = vector.shape_cast %19 : vector<1x8x2x16x4xbf16> to vector<8x2x16x4xbf16>
    %c1_i32_20 = arith.constant 1 : i32
    %21 = arith.addi %0, %c1_i32_20 : i32
    %c0_21 = arith.constant 0 : index
    %22 = arith.index_cast %21 : i32 to index
    %c0_22 = arith.constant 0 : index
    %c2_23 = arith.constant 2 : index
    %c0_24 = arith.constant 0 : index
    %23 = vector.load %arg1[%c0_21, %22, %c0_22, %c2_23, %c0_24] : memref<1x18x2x18x4xbf16, #tpu.memory_space<vmem>>, vector<1x8x2x16x4xbf16>
    %24 = vector.shape_cast %23 : vector<1x8x2x16x4xbf16> to vector<8x2x16x4xbf16>
    %c2_i32 = arith.constant 2 : i32
    %25 = arith.addi %0, %c2_i32 : i32
    %c0_25 = arith.constant 0 : index
    %26 = arith.index_cast %25 : i32 to index
    %c0_26 = arith.constant 0 : index
    %c0_27 = arith.constant 0 : index
    %c0_28 = arith.constant 0 : index
    %27 = vector.load %arg1[%c0_25, %26, %c0_26, %c0_27, %c0_28] : memref<1x18x2x18x4xbf16, #tpu.memory_space<vmem>>, vector<1x8x2x16x4xbf16>
    %28 = vector.shape_cast %27 : vector<1x8x2x16x4xbf16> to vector<8x2x16x4xbf16>
    %c2_i32_29 = arith.constant 2 : i32
    %29 = arith.addi %0, %c2_i32_29 : i32
    %c0_30 = arith.constant 0 : index
    %30 = arith.index_cast %29 : i32 to index
    %c0_31 = arith.constant 0 : index
    %c1_32 = arith.constant 1 : index
    %c0_33 = arith.constant 0 : index
    %31 = vector.load %arg1[%c0_30, %30, %c0_31, %c1_32, %c0_33] : memref<1x18x2x18x4xbf16, #tpu.memory_space<vmem>>, vector<1x8x2x16x4xbf16>
    %32 = vector.shape_cast %31 : vector<1x8x2x16x4xbf16> to vector<8x2x16x4xbf16>
    %c2_i32_34 = arith.constant 2 : i32
    %33 = arith.addi %0, %c2_i32_34 : i32
    %c0_35 = arith.constant 0 : index
    %34 = arith.index_cast %33 : i32 to index
    %c0_36 = arith.constant 0 : index
    %c2_37 = arith.constant 2 : index
    %c0_38 = arith.constant 0 : index
    %35 = vector.load %arg1[%c0_35, %34, %c0_36, %c2_37, %c0_38] : memref<1x18x2x18x4xbf16, #tpu.memory_space<vmem>>, vector<1x8x2x16x4xbf16>
    %36 = vector.shape_cast %35 : vector<1x8x2x16x4xbf16> to vector<8x2x16x4xbf16>
    %37 = tpu.concatenate %4, %8, %12, %16, %20, %24, %28, %32, %36 in 3 : vector<8x2x16x4xbf16>, vector<8x2x16x4xbf16>, vector<8x2x16x4xbf16>, vector<8x2x16x4xbf16>, vector<8x2x16x4xbf16>, vector<8x2x16x4xbf16>, vector<8x2x16x4xbf16>, vector<8x2x16x4xbf16>, vector<8x2x16x4xbf16> -> vector<8x2x16x36xbf16>
    %38 = vector.shape_cast %37 : vector<8x2x16x36xbf16> to vector<256x36xbf16>
    %c0_39 = arith.constant 0 : index
    %c0_40 = arith.constant 0 : index
    %39 = vector.load %arg2[%c0_39, %c0_40] : memref<36x8xbf16, #tpu.memory_space<vmem>>, vector<36x8xbf16>
    %cst = arith.constant dense<0.000000e+00> : vector<256x8xf32>
    %40 = tpu.matmul %38, %39, %cst {dimension_numbers = #tpu.dot_dimension_numbers<[1], [0], [0], [1], [0, 0, 1, 1], [], []>} : vector<256x36xbf16>, vector<36x8xbf16>, vector<256x8xf32> -> vector<256x8xf32>
    %41 = vector.shape_cast %40 : vector<256x8xf32> to vector<8x2x16x8xf32>
    %42 = arith.truncf %41 : vector<8x2x16x8xf32> to vector<8x2x16x8xbf16>
    %c0_41 = arith.constant 0 : index
    %c0_42 = arith.constant 0 : index
    %c0_43 = arith.constant 0 : index
    %c0_44 = arith.constant 0 : index
    %43 = vector.load %arg3[%c0_41, %c0_42, %c0_43, %c0_44] : memref<8x2x16x8xbf16, #tpu.memory_space<vmem>>, vector<8x2x16x8xbf16>
    tpu.vector_store %arg3[%c0_41, %c0_42, %c0_43, %c0_44], %42 {strides = array<i32>} : memref<8x2x16x8xbf16, #tpu.memory_space<vmem>>, vector<8x2x16x8xbf16>,
    %cst_45 = arith.constant dense<0.000000e+00> : vector<8xf32>
    %44 = vector.multi_reduction <add>, %40, %cst_45 [0] : vector<256x8xf32> to vector<8xf32>
    %45 = vector.shape_cast %44 : vector<8xf32> to vector<1x8xf32>
    %c0_46 = arith.constant 0 : index
    %c0_47 = arith.constant 0 : index
    %c0_48 = arith.constant 0 : index
    %46 = vector.load %arg4[%c0_46, %c0_47, %c0_48] : memref<1x2x8xf32, #tpu.memory_space<vmem>>, vector<1x1x8xf32>
    %47 = vector.shape_cast %46 : vector<1x1x8xf32> to vector<1x8xf32>
    %48 = vector.shape_cast %45 : vector<1x8xf32> to vector<1x1x8xf32>
    tpu.vector_store %arg4[%c0_46, %c0_47, %c0_48], %48 {strides = array<i32>} : memref<1x2x8xf32, #tpu.memory_space<vmem>>, vector<1x1x8xf32>,
    %49 = arith.mulf %40, %40 : vector<256x8xf32>
    %cst_49 = arith.constant dense<0.000000e+00> : vector<8xf32>
    %50 = vector.multi_reduction <add>, %49, %cst_49 [0] : vector<256x8xf32> to vector<8xf32>
    %51 = vector.shape_cast %50 : vector<8xf32> to vector<1x8xf32>
    %c0_50 = arith.constant 0 : index
    %c1_51 = arith.constant 1 : index
    %c0_52 = arith.constant 0 : index
    %52 = vector.load %arg4[%c0_50, %c1_51, %c0_52] : memref<1x2x8xf32, #tpu.memory_space<vmem>>, vector<1x1x8xf32>
    %53 = vector.shape_cast %52 : vector<1x1x8xf32> to vector<1x8xf32>
    %54 = vector.shape_cast %51 : vector<1x8xf32> to vector<1x1x8xf32>
    tpu.vector_store %arg4[%c0_50, %c1_51, %c0_52], %54 {strides = array<i32>} : memref<1x2x8xf32, #tpu.memory_space<vmem>>, vector<1x1x8xf32>,
    return
  }
  func.func @transform_0(%arg0: i32) -> (i32, i32, i32, i32, i32) {
    %c0_i32 = arith.constant 0 : i32
    %c0_i32_0 = arith.constant 0 : i32
    %c0_i32_1 = arith.constant 0 : i32
    %c0_i32_2 = arith.constant 0 : i32
    %c0_i32_3 = arith.constant 0 : i32
    %c0_i32_4 = arith.constant 0 : i32
    return %c0_i32, %c0_i32_0, %c0_i32_1, %c0_i32_2, %c0_i32_3 : i32, i32, i32, i32, i32
  }
  func.func @transform_1(%arg0: i32) -> (i32, i32) {
    %c0_i32 = arith.constant 0 : i32
    %c0_i32_0 = arith.constant 0 : i32
    %c0_i32_1 = arith.constant 0 : i32
    return %c0_i32, %c0_i32_0 : i32, i32
  }
  func.func @transform_2(%arg0: i32) -> (i32, i32, i32, i32) {
    %c0_i32 = arith.constant 0 : i32
    %c0_i32_0 = arith.constant 0 : i32
    %c0_i32_1 = arith.constant 0 : i32
    %c0_i32_2 = arith.constant 0 : i32
    return %arg0, %c0_i32, %c0_i32_0, %c0_i32_1 : i32, i32, i32, i32
  }
  func.func @transform_3(%arg0: i32) -> (i32, i32, i32) {
    %c0_i32 = arith.constant 0 : i32
    %c0_i32_0 = arith.constant 0 : i32
    %c0_i32_1 = arith.constant 0 : i32
    return %arg0, %c0_i32, %c0_i32_0 : i32, i32, i32
  }
}

module attributes {stable_mosaic.version = 11 : i64} {
  func.func @_bn_relu_kernel(%arg0: i32, %arg1: memref<8x2x16x8xbf16, #tpu.memory_space<vmem>>, %arg2: memref<2x2x8xf32, #tpu.memory_space<vmem>>, %arg3: memref<1x8xf32, #tpu.memory_space<vmem>>, %arg4: memref<1x8xf32, #tpu.memory_space<vmem>>, %arg5: memref<8x2x16x8xbf16, #tpu.memory_space<vmem>>) attributes {dimension_semantics = [#tpu.dimension_semantics<parallel>], iteration_bounds = array<i64: 2>, scalar_prefetch = 0 : i64, scratch_operands = 0 : i64, tpu.core_type = #tpu.core_type<tc>, window_params = [{transform_indices = @transform_0, window_bounds = array<i64: 8, 2, 16, 8>}, {pipeline_mode = #tpu.pipeline_mode<synchronous>, transform_indices = @transform_1, window_bounds = array<i64: 2, 2, 8>}, {pipeline_mode = #tpu.pipeline_mode<synchronous>, transform_indices = @transform_2, window_bounds = array<i64: 1, 8>}, {pipeline_mode = #tpu.pipeline_mode<synchronous>, transform_indices = @transform_3, window_bounds = array<i64: 1, 8>}, {transform_indices = @transform_4, window_bounds = array<i64: 8, 2, 16, 8>}]} {
    %c0 = arith.constant 0 : index
    %c0_0 = arith.constant 0 : index
    %c0_1 = arith.constant 0 : index
    %0 = vector.load %arg2[%c0, %c0_0, %c0_1] : memref<2x2x8xf32, #tpu.memory_space<vmem>>, vector<2x2x8xf32>
    %cst = arith.constant dense<0.000000e+00> : vector<2x8xf32>
    %1 = vector.multi_reduction <add>, %0, %cst [0] : vector<2x2x8xf32> to vector<2x8xf32>
    %2 = vector.extract_strided_slice %1 {offsets = [0, 0], sizes = [1, 8], strides = [1, 1]} : vector<2x8xf32> to vector<1x8xf32>
    %cst_2 = arith.constant 0.001953125 : f32
    %3 = vector.broadcast %cst_2 : f32 to vector<1x8xf32>
    %4 = arith.mulf %2, %3 : vector<1x8xf32>
    %5 = vector.extract_strided_slice %1 {offsets = [1, 0], sizes = [1, 8], strides = [1, 1]} : vector<2x8xf32> to vector<1x8xf32>
    %cst_3 = arith.constant 0.001953125 : f32
    %6 = vector.broadcast %cst_3 : f32 to vector<1x8xf32>
    %7 = arith.mulf %5, %6 : vector<1x8xf32>
    %8 = arith.mulf %4, %4 : vector<1x8xf32>
    %9 = arith.subf %7, %8 : vector<1x8xf32>
    %c0_4 = arith.constant 0 : index
    %c0_5 = arith.constant 0 : index
    %10 = vector.load %arg3[%c0_4, %c0_5] : memref<1x8xf32, #tpu.memory_space<vmem>>, vector<1x8xf32>
    %cst_6 = arith.constant 9.99999974E-6 : f32
    %11 = vector.broadcast %cst_6 : f32 to vector<1x8xf32>
    %12 = arith.addf %9, %11 : vector<1x8xf32>
    %13 = math.rsqrt %12 : vector<1x8xf32>
    %14 = arith.mulf %10, %13 : vector<1x8xf32>
    %c0_7 = arith.constant 0 : index
    %c0_8 = arith.constant 0 : index
    %15 = vector.load %arg4[%c0_7, %c0_8] : memref<1x8xf32, #tpu.memory_space<vmem>>, vector<1x8xf32>
    %16 = arith.mulf %4, %14 : vector<1x8xf32>
    %17 = arith.subf %15, %16 : vector<1x8xf32>
    %c0_9 = arith.constant 0 : index
    %c0_10 = arith.constant 0 : index
    %c0_11 = arith.constant 0 : index
    %c0_12 = arith.constant 0 : index
    %18 = vector.load %arg1[%c0_9, %c0_10, %c0_11, %c0_12] : memref<8x2x16x8xbf16, #tpu.memory_space<vmem>>, vector<8x2x16x8xbf16>
    %19 = arith.extf %18 : vector<8x2x16x8xbf16> to vector<8x2x16x8xf32>
    %20 = vector.shape_cast %14 : vector<1x8xf32> to vector<1x1x1x8xf32>
    %21 = vector.broadcast %20 : vector<1x1x1x8xf32> to vector<8x2x16x8xf32>
    %22 = arith.mulf %19, %21 : vector<8x2x16x8xf32>
    %23 = vector.shape_cast %17 : vector<1x8xf32> to vector<1x1x1x8xf32>
    %24 = vector.broadcast %23 : vector<1x1x1x8xf32> to vector<8x2x16x8xf32>
    %25 = arith.addf %22, %24 : vector<8x2x16x8xf32>
    %cst_13 = arith.constant 0.000000e+00 : f32
    %26 = vector.broadcast %cst_13 : f32 to vector<8x2x16x8xf32>
    %27 = arith.maximumf %25, %26 : vector<8x2x16x8xf32>
    %28 = arith.truncf %27 : vector<8x2x16x8xf32> to vector<8x2x16x8xbf16>
    %c0_14 = arith.constant 0 : index
    %c0_15 = arith.constant 0 : index
    %c0_16 = arith.constant 0 : index
    %c0_17 = arith.constant 0 : index
    %29 = vector.load %arg5[%c0_14, %c0_15, %c0_16, %c0_17] : memref<8x2x16x8xbf16, #tpu.memory_space<vmem>>, vector<8x2x16x8xbf16>
    tpu.vector_store %arg5[%c0_14, %c0_15, %c0_16, %c0_17], %28 {strides = array<i32>} : memref<8x2x16x8xbf16, #tpu.memory_space<vmem>>, vector<8x2x16x8xbf16>,
    return
  }
  func.func @transform_0(%arg0: i32) -> (i32, i32, i32, i32) {
    %c0_i32 = arith.constant 0 : i32
    %c0_i32_0 = arith.constant 0 : i32
    %c0_i32_1 = arith.constant 0 : i32
    %c0_i32_2 = arith.constant 0 : i32
    return %arg0, %c0_i32, %c0_i32_0, %c0_i32_1 : i32, i32, i32, i32
  }
  func.func @transform_1(%arg0: i32) -> (i32, i32, i32) {
    %c0_i32 = arith.constant 0 : i32
    %c0_i32_0 = arith.constant 0 : i32
    %c0_i32_1 = arith.constant 0 : i32
    %c0_i32_2 = arith.constant 0 : i32
    return %c0_i32, %c0_i32_0, %c0_i32_1 : i32, i32, i32
  }
  func.func @transform_2(%arg0: i32) -> (i32, i32) {
    %c0_i32 = arith.constant 0 : i32
    %c0_i32_0 = arith.constant 0 : i32
    %c0_i32_1 = arith.constant 0 : i32
    return %c0_i32, %c0_i32_0 : i32, i32
  }
  func.func @transform_3(%arg0: i32) -> (i32, i32) {
    %c0_i32 = arith.constant 0 : i32
    %c0_i32_0 = arith.constant 0 : i32
    %c0_i32_1 = arith.constant 0 : i32
    return %c0_i32, %c0_i32_0 : i32, i32
  }
  func.func @transform_4(%arg0: i32) -> (i32, i32, i32, i32) {
    %c0_i32 = arith.constant 0 : i32
    %c0_i32_0 = arith.constant 0 : i32
    %c0_i32_1 = arith.constant 0 : i32
    %c0_i32_2 = arith.constant 0 : i32
    return %arg0, %c0_i32, %c0_i32_0, %c0_i32_1 : i32, i32, i32, i32
  }
}

module attributes {stable_mosaic.version = 11 : i64} {
  func.func @_conv_stats_kernel(%arg0: i32, %arg1: memref<4x9x2x9x8xbf16, #tpu.memory_space<vmem>>, %arg2: memref<72x16xbf16, #tpu.memory_space<vmem>>, %arg3: memref<4x2x8x16xbf16, #tpu.memory_space<vmem>>, %arg4: memref<1x2x16xf32, #tpu.memory_space<vmem>>) attributes {dimension_semantics = [#tpu.dimension_semantics<parallel>], iteration_bounds = array<i64: 2>, scalar_prefetch = 0 : i64, scratch_operands = 0 : i64, tpu.core_type = #tpu.core_type<tc>, window_params = [{pipeline_mode = #tpu.pipeline_mode<synchronous>, transform_indices = @transform_0, window_bounds = array<i64: 4, 9, 2, 9, 8>}, {pipeline_mode = #tpu.pipeline_mode<synchronous>, transform_indices = @transform_1, window_bounds = array<i64: 72, 16>}, {transform_indices = @transform_2, window_bounds = array<i64: 4, 2, 8, 16>}, {transform_indices = @transform_3, window_bounds = array<i64: 1, 2, 16>}]} {
    %c4_i32 = arith.constant 4 : i32
    %0 = arith.muli %arg0, %c4_i32 : i32
    %c0_i32 = arith.constant 0 : i32
    %1 = arith.addi %0, %c0_i32 : i32
    %c0 = arith.constant 0 : index
    %2 = arith.index_cast %1 : i32 to index
    %c0_0 = arith.constant 0 : index
    %c0_1 = arith.constant 0 : index
    %c0_2 = arith.constant 0 : index
    %3 = vector.load %arg1[%c0, %2, %c0_0, %c0_1, %c0_2] : memref<4x9x2x9x8xbf16, #tpu.memory_space<vmem>>, vector<1x4x2x8x8xbf16>
    %4 = vector.shape_cast %3 : vector<1x4x2x8x8xbf16> to vector<4x2x8x8xbf16>
    %c0_i32_3 = arith.constant 0 : i32
    %5 = arith.addi %0, %c0_i32_3 : i32
    %c1 = arith.constant 1 : index
    %6 = arith.index_cast %5 : i32 to index
    %c0_4 = arith.constant 0 : index
    %c0_5 = arith.constant 0 : index
    %c0_6 = arith.constant 0 : index
    %7 = vector.load %arg1[%c1, %6, %c0_4, %c0_5, %c0_6] : memref<4x9x2x9x8xbf16, #tpu.memory_space<vmem>>, vector<1x4x2x8x8xbf16>
    %8 = vector.shape_cast %7 : vector<1x4x2x8x8xbf16> to vector<4x2x8x8xbf16>
    %c0_i32_7 = arith.constant 0 : i32
    %9 = arith.addi %0, %c0_i32_7 : i32
    %c0_8 = arith.constant 0 : index
    %10 = arith.index_cast %9 : i32 to index
    %c0_9 = arith.constant 0 : index
    %c1_10 = arith.constant 1 : index
    %c0_11 = arith.constant 0 : index
    %11 = vector.load %arg1[%c0_8, %10, %c0_9, %c1_10, %c0_11] : memref<4x9x2x9x8xbf16, #tpu.memory_space<vmem>>, vector<1x4x2x8x8xbf16>
    %12 = vector.shape_cast %11 : vector<1x4x2x8x8xbf16> to vector<4x2x8x8xbf16>
    %c0_i32_12 = arith.constant 0 : i32
    %13 = arith.addi %0, %c0_i32_12 : i32
    %c2 = arith.constant 2 : index
    %14 = arith.index_cast %13 : i32 to index
    %c0_13 = arith.constant 0 : index
    %c0_14 = arith.constant 0 : index
    %c0_15 = arith.constant 0 : index
    %15 = vector.load %arg1[%c2, %14, %c0_13, %c0_14, %c0_15] : memref<4x9x2x9x8xbf16, #tpu.memory_space<vmem>>, vector<1x4x2x8x8xbf16>
    %16 = vector.shape_cast %15 : vector<1x4x2x8x8xbf16> to vector<4x2x8x8xbf16>
    %c0_i32_16 = arith.constant 0 : i32
    %17 = arith.addi %0, %c0_i32_16 : i32
    %c3 = arith.constant 3 : index
    %18 = arith.index_cast %17 : i32 to index
    %c0_17 = arith.constant 0 : index
    %c0_18 = arith.constant 0 : index
    %c0_19 = arith.constant 0 : index
    %19 = vector.load %arg1[%c3, %18, %c0_17, %c0_18, %c0_19] : memref<4x9x2x9x8xbf16, #tpu.memory_space<vmem>>, vector<1x4x2x8x8xbf16>
    %20 = vector.shape_cast %19 : vector<1x4x2x8x8xbf16> to vector<4x2x8x8xbf16>
    %c0_i32_20 = arith.constant 0 : i32
    %21 = arith.addi %0, %c0_i32_20 : i32
    %c2_21 = arith.constant 2 : index
    %22 = arith.index_cast %21 : i32 to index
    %c0_22 = arith.constant 0 : index
    %c1_23 = arith.constant 1 : index
    %c0_24 = arith.constant 0 : index
    %23 = vector.load %arg1[%c2_21, %22, %c0_22, %c1_23, %c0_24] : memref<4x9x2x9x8xbf16, #tpu.memory_space<vmem>>, vector<1x4x2x8x8xbf16>
    %24 = vector.shape_cast %23 : vector<1x4x2x8x8xbf16> to vector<4x2x8x8xbf16>
    %c1_i32 = arith.constant 1 : i32
    %25 = arith.addi %0, %c1_i32 : i32
    %c0_25 = arith.constant 0 : index
    %26 = arith.index_cast %25 : i32 to index
    %c0_26 = arith.constant 0 : index
    %c0_27 = arith.constant 0 : index
    %c0_28 = arith.constant 0 : index
    %27 = vector.load %arg1[%c0_25, %26, %c0_26, %c0_27, %c0_28] : memref<4x9x2x9x8xbf16, #tpu.memory_space<vmem>>, vector<1x4x2x8x8xbf16>
    %28 = vector.shape_cast %27 : vector<1x4x2x8x8xbf16> to vector<4x2x8x8xbf16>
    %c1_i32_29 = arith.constant 1 : i32
    %29 = arith.addi %0, %c1_i32_29 : i32
    %c1_30 = arith.constant 1 : index
    %30 = arith.index_cast %29 : i32 to index
    %c0_31 = arith.constant 0 : index
    %c0_32 = arith.constant 0 : index
    %c0_33 = arith.constant 0 : index
    %31 = vector.load %arg1[%c1_30, %30, %c0_31, %c0_32, %c0_33] : memref<4x9x2x9x8xbf16, #tpu.memory_space<vmem>>, vector<1x4x2x8x8xbf16>
    %32 = vector.shape_cast %31 : vector<1x4x2x8x8xbf16> to vector<4x2x8x8xbf16>
    %c1_i32_34 = arith.constant 1 : i32
    %33 = arith.addi %0, %c1_i32_34 : i32
    %c0_35 = arith.constant 0 : index
    %34 = arith.index_cast %33 : i32 to index
    %c0_36 = arith.constant 0 : index
    %c1_37 = arith.constant 1 : index
    %c0_38 = arith.constant 0 : index
    %35 = vector.load %arg1[%c0_35, %34, %c0_36, %c1_37, %c0_38] : memref<4x9x2x9x8xbf16, #tpu.memory_space<vmem>>, vector<1x4x2x8x8xbf16>
    %36 = vector.shape_cast %35 : vector<1x4x2x8x8xbf16> to vector<4x2x8x8xbf16>
    %37 = tpu.concatenate %4, %8, %12, %16, %20, %24, %28, %32, %36 in 3 : vector<4x2x8x8xbf16>, vector<4x2x8x8xbf16>, vector<4x2x8x8xbf16>, vector<4x2x8x8xbf16>, vector<4x2x8x8xbf16>, vector<4x2x8x8xbf16>, vector<4x2x8x8xbf16>, vector<4x2x8x8xbf16>, vector<4x2x8x8xbf16> -> vector<4x2x8x72xbf16>
    %38 = vector.shape_cast %37 : vector<4x2x8x72xbf16> to vector<64x72xbf16>
    %c0_39 = arith.constant 0 : index
    %c0_40 = arith.constant 0 : index
    %39 = vector.load %arg2[%c0_39, %c0_40] : memref<72x16xbf16, #tpu.memory_space<vmem>>, vector<72x16xbf16>
    %cst = arith.constant dense<0.000000e+00> : vector<64x16xf32>
    %40 = tpu.matmul %38, %39, %cst {dimension_numbers = #tpu.dot_dimension_numbers<[1], [0], [0], [1], [0, 0, 1, 1], [], []>} : vector<64x72xbf16>, vector<72x16xbf16>, vector<64x16xf32> -> vector<64x16xf32>
    %41 = vector.shape_cast %40 : vector<64x16xf32> to vector<4x2x8x16xf32>
    %42 = arith.truncf %41 : vector<4x2x8x16xf32> to vector<4x2x8x16xbf16>
    %c0_41 = arith.constant 0 : index
    %c0_42 = arith.constant 0 : index
    %c0_43 = arith.constant 0 : index
    %c0_44 = arith.constant 0 : index
    %43 = vector.load %arg3[%c0_41, %c0_42, %c0_43, %c0_44] : memref<4x2x8x16xbf16, #tpu.memory_space<vmem>>, vector<4x2x8x16xbf16>
    tpu.vector_store %arg3[%c0_41, %c0_42, %c0_43, %c0_44], %42 {strides = array<i32>} : memref<4x2x8x16xbf16, #tpu.memory_space<vmem>>, vector<4x2x8x16xbf16>,
    %cst_45 = arith.constant dense<0.000000e+00> : vector<16xf32>
    %44 = vector.multi_reduction <add>, %40, %cst_45 [0] : vector<64x16xf32> to vector<16xf32>
    %45 = vector.shape_cast %44 : vector<16xf32> to vector<1x16xf32>
    %c0_46 = arith.constant 0 : index
    %c0_47 = arith.constant 0 : index
    %c0_48 = arith.constant 0 : index
    %46 = vector.load %arg4[%c0_46, %c0_47, %c0_48] : memref<1x2x16xf32, #tpu.memory_space<vmem>>, vector<1x1x16xf32>
    %47 = vector.shape_cast %46 : vector<1x1x16xf32> to vector<1x16xf32>
    %48 = vector.shape_cast %45 : vector<1x16xf32> to vector<1x1x16xf32>
    tpu.vector_store %arg4[%c0_46, %c0_47, %c0_48], %48 {strides = array<i32>} : memref<1x2x16xf32, #tpu.memory_space<vmem>>, vector<1x1x16xf32>,
    %49 = arith.mulf %40, %40 : vector<64x16xf32>
    %cst_49 = arith.constant dense<0.000000e+00> : vector<16xf32>
    %50 = vector.multi_reduction <add>, %49, %cst_49 [0] : vector<64x16xf32> to vector<16xf32>
    %51 = vector.shape_cast %50 : vector<16xf32> to vector<1x16xf32>
    %c0_50 = arith.constant 0 : index
    %c1_51 = arith.constant 1 : index
    %c0_52 = arith.constant 0 : index
    %52 = vector.load %arg4[%c0_50, %c1_51, %c0_52] : memref<1x2x16xf32, #tpu.memory_space<vmem>>, vector<1x1x16xf32>
    %53 = vector.shape_cast %52 : vector<1x1x16xf32> to vector<1x16xf32>
    %54 = vector.shape_cast %51 : vector<1x16xf32> to vector<1x1x16xf32>
    tpu.vector_store %arg4[%c0_50, %c1_51, %c0_52], %54 {strides = array<i32>} : memref<1x2x16xf32, #tpu.memory_space<vmem>>, vector<1x1x16xf32>,
    return
  }
  func.func @transform_0(%arg0: i32) -> (i32, i32, i32, i32, i32) {
    %c0_i32 = arith.constant 0 : i32
    %c0_i32_0 = arith.constant 0 : i32
    %c0_i32_1 = arith.constant 0 : i32
    %c0_i32_2 = arith.constant 0 : i32
    %c0_i32_3 = arith.constant 0 : i32
    %c0_i32_4 = arith.constant 0 : i32
    return %c0_i32, %c0_i32_0, %c0_i32_1, %c0_i32_2, %c0_i32_3 : i32, i32, i32, i32, i32
  }
  func.func @transform_1(%arg0: i32) -> (i32, i32) {
    %c0_i32 = arith.constant 0 : i32
    %c0_i32_0 = arith.constant 0 : i32
    %c0_i32_1 = arith.constant 0 : i32
    return %c0_i32, %c0_i32_0 : i32, i32
  }
  func.func @transform_2(%arg0: i32) -> (i32, i32, i32, i32) {
    %c0_i32 = arith.constant 0 : i32
    %c0_i32_0 = arith.constant 0 : i32
    %c0_i32_1 = arith.constant 0 : i32
    %c0_i32_2 = arith.constant 0 : i32
    return %arg0, %c0_i32, %c0_i32_0, %c0_i32_1 : i32, i32, i32, i32
  }
  func.func @transform_3(%arg0: i32) -> (i32, i32, i32) {
    %c0_i32 = arith.constant 0 : i32
    %c0_i32_0 = arith.constant 0 : i32
    %c0_i32_1 = arith.constant 0 : i32
    return %arg0, %c0_i32, %c0_i32_0 : i32, i32, i32
  }
}

module attributes {stable_mosaic.version = 11 : i64} {
  func.func @_bn_relu_kernel(%arg0: i32, %arg1: memref<4x2x8x16xbf16, #tpu.memory_space<vmem>>, %arg2: memref<2x2x16xf32, #tpu.memory_space<vmem>>, %arg3: memref<1x16xf32, #tpu.memory_space<vmem>>, %arg4: memref<1x16xf32, #tpu.memory_space<vmem>>, %arg5: memref<4x2x8x16xbf16, #tpu.memory_space<vmem>>) attributes {dimension_semantics = [#tpu.dimension_semantics<parallel>], iteration_bounds = array<i64: 2>, scalar_prefetch = 0 : i64, scratch_operands = 0 : i64, tpu.core_type = #tpu.core_type<tc>, window_params = [{transform_indices = @transform_0, window_bounds = array<i64: 4, 2, 8, 16>}, {pipeline_mode = #tpu.pipeline_mode<synchronous>, transform_indices = @transform_1, window_bounds = array<i64: 2, 2, 16>}, {pipeline_mode = #tpu.pipeline_mode<synchronous>, transform_indices = @transform_2, window_bounds = array<i64: 1, 16>}, {pipeline_mode = #tpu.pipeline_mode<synchronous>, transform_indices = @transform_3, window_bounds = array<i64: 1, 16>}, {transform_indices = @transform_4, window_bounds = array<i64: 4, 2, 8, 16>}]} {
    %c0 = arith.constant 0 : index
    %c0_0 = arith.constant 0 : index
    %c0_1 = arith.constant 0 : index
    %0 = vector.load %arg2[%c0, %c0_0, %c0_1] : memref<2x2x16xf32, #tpu.memory_space<vmem>>, vector<2x2x16xf32>
    %cst = arith.constant dense<0.000000e+00> : vector<2x16xf32>
    %1 = vector.multi_reduction <add>, %0, %cst [0] : vector<2x2x16xf32> to vector<2x16xf32>
    %2 = vector.extract_strided_slice %1 {offsets = [0, 0], sizes = [1, 16], strides = [1, 1]} : vector<2x16xf32> to vector<1x16xf32>
    %cst_2 = arith.constant 7.812500e-03 : f32
    %3 = vector.broadcast %cst_2 : f32 to vector<1x16xf32>
    %4 = arith.mulf %2, %3 : vector<1x16xf32>
    %5 = vector.extract_strided_slice %1 {offsets = [1, 0], sizes = [1, 16], strides = [1, 1]} : vector<2x16xf32> to vector<1x16xf32>
    %cst_3 = arith.constant 7.812500e-03 : f32
    %6 = vector.broadcast %cst_3 : f32 to vector<1x16xf32>
    %7 = arith.mulf %5, %6 : vector<1x16xf32>
    %8 = arith.mulf %4, %4 : vector<1x16xf32>
    %9 = arith.subf %7, %8 : vector<1x16xf32>
    %c0_4 = arith.constant 0 : index
    %c0_5 = arith.constant 0 : index
    %10 = vector.load %arg3[%c0_4, %c0_5] : memref<1x16xf32, #tpu.memory_space<vmem>>, vector<1x16xf32>
    %cst_6 = arith.constant 9.99999974E-6 : f32
    %11 = vector.broadcast %cst_6 : f32 to vector<1x16xf32>
    %12 = arith.addf %9, %11 : vector<1x16xf32>
    %13 = math.rsqrt %12 : vector<1x16xf32>
    %14 = arith.mulf %10, %13 : vector<1x16xf32>
    %c0_7 = arith.constant 0 : index
    %c0_8 = arith.constant 0 : index
    %15 = vector.load %arg4[%c0_7, %c0_8] : memref<1x16xf32, #tpu.memory_space<vmem>>, vector<1x16xf32>
    %16 = arith.mulf %4, %14 : vector<1x16xf32>
    %17 = arith.subf %15, %16 : vector<1x16xf32>
    %c0_9 = arith.constant 0 : index
    %c0_10 = arith.constant 0 : index
    %c0_11 = arith.constant 0 : index
    %c0_12 = arith.constant 0 : index
    %18 = vector.load %arg1[%c0_9, %c0_10, %c0_11, %c0_12] : memref<4x2x8x16xbf16, #tpu.memory_space<vmem>>, vector<4x2x8x16xbf16>
    %19 = arith.extf %18 : vector<4x2x8x16xbf16> to vector<4x2x8x16xf32>
    %20 = vector.shape_cast %14 : vector<1x16xf32> to vector<1x1x1x16xf32>
    %21 = vector.broadcast %20 : vector<1x1x1x16xf32> to vector<4x2x8x16xf32>
    %22 = arith.mulf %19, %21 : vector<4x2x8x16xf32>
    %23 = vector.shape_cast %17 : vector<1x16xf32> to vector<1x1x1x16xf32>
    %24 = vector.broadcast %23 : vector<1x1x1x16xf32> to vector<4x2x8x16xf32>
    %25 = arith.addf %22, %24 : vector<4x2x8x16xf32>
    %cst_13 = arith.constant 0.000000e+00 : f32
    %26 = vector.broadcast %cst_13 : f32 to vector<4x2x8x16xf32>
    %27 = arith.maximumf %25, %26 : vector<4x2x8x16xf32>
    %28 = arith.truncf %27 : vector<4x2x8x16xf32> to vector<4x2x8x16xbf16>
    %c0_14 = arith.constant 0 : index
    %c0_15 = arith.constant 0 : index
    %c0_16 = arith.constant 0 : index
    %c0_17 = arith.constant 0 : index
    %29 = vector.load %arg5[%c0_14, %c0_15, %c0_16, %c0_17] : memref<4x2x8x16xbf16, #tpu.memory_space<vmem>>, vector<4x2x8x16xbf16>
    tpu.vector_store %arg5[%c0_14, %c0_15, %c0_16, %c0_17], %28 {strides = array<i32>} : memref<4x2x8x16xbf16, #tpu.memory_space<vmem>>, vector<4x2x8x16xbf16>,
    return
  }
  func.func @transform_0(%arg0: i32) -> (i32, i32, i32, i32) {
    %c0_i32 = arith.constant 0 : i32
    %c0_i32_0 = arith.constant 0 : i32
    %c0_i32_1 = arith.constant 0 : i32
    %c0_i32_2 = arith.constant 0 : i32
    return %arg0, %c0_i32, %c0_i32_0, %c0_i32_1 : i32, i32, i32, i32
  }
  func.func @transform_1(%arg0: i32) -> (i32, i32, i32) {
    %c0_i32 = arith.constant 0 : i32
    %c0_i32_0 = arith.constant 0 : i32
    %c0_i32_1 = arith.constant 0 : i32
    %c0_i32_2 = arith.constant 0 : i32
    return %c0_i32, %c0_i32_0, %c0_i32_1 : i32, i32, i32
  }
  func.func @transform_2(%arg0: i32) -> (i32, i32) {
    %c0_i32 = arith.constant 0 : i32
    %c0_i32_0 = arith.constant 0 : i32
    %c0_i32_1 = arith.constant 0 : i32
    return %c0_i32, %c0_i32_0 : i32, i32
  }
  func.func @transform_3(%arg0: i32) -> (i32, i32) {
    %c0_i32 = arith.constant 0 : i32
    %c0_i32_0 = arith.constant 0 : i32
    %c0_i32_1 = arith.constant 0 : i32
    return %c0_i32, %c0_i32_0 : i32, i32
  }
  func.func @transform_4(%arg0: i32) -> (i32, i32, i32, i32) {
    %c0_i32 = arith.constant 0 : i32
    %c0_i32_0 = arith.constant 0 : i32
    %c0_i32_1 = arith.constant 0 : i32
    %c0_i32_2 = arith.constant 0 : i32
    return %arg0, %c0_i32, %c0_i32_0, %c0_i32_1 : i32, i32, i32, i32
  }
}

module attributes {stable_mosaic.version = 11 : i64} {
  func.func @_pool_fc_kernel(%arg0: i32, %arg1: memref<8x2x8x16xbf16, #tpu.memory_space<vmem>>, %arg2: memref<16x128xf32, #tpu.memory_space<vmem>>, %arg3: memref<1x128xf32, #tpu.memory_space<vmem>>, %arg4: memref<2x128xf32, #tpu.memory_space<vmem>>) attributes {dimension_semantics = [#tpu.dimension_semantics<arbitrary>], iteration_bounds = array<i64: 1>, scalar_prefetch = 0 : i64, scratch_operands = 0 : i64, tpu.core_type = #tpu.core_type<tc>, window_params = [{pipeline_mode = #tpu.pipeline_mode<synchronous>, transform_indices = @transform_0, window_bounds = array<i64: 8, 2, 8, 16>}, {pipeline_mode = #tpu.pipeline_mode<synchronous>, transform_indices = @transform_1, window_bounds = array<i64: 16, 128>}, {pipeline_mode = #tpu.pipeline_mode<synchronous>, transform_indices = @transform_2, window_bounds = array<i64: 1, 128>}, {pipeline_mode = #tpu.pipeline_mode<synchronous>, transform_indices = @transform_3, window_bounds = array<i64: 2, 128>}]} {
    %c0 = arith.constant 0 : index
    %c0_0 = arith.constant 0 : index
    %c0_1 = arith.constant 0 : index
    %c0_2 = arith.constant 0 : index
    %0 = vector.load %arg1[%c0, %c0_0, %c0_1, %c0_2] : memref<8x2x8x16xbf16, #tpu.memory_space<vmem>>, vector<8x2x8x16xbf16>
    %1 = arith.extf %0 : vector<8x2x8x16xbf16> to vector<8x2x8x16xf32>
    %cst = arith.constant dense<0.000000e+00> : vector<2x8x16xf32>
    %2 = vector.multi_reduction <add>, %1, %cst [0] : vector<8x2x8x16xf32> to vector<2x8x16xf32>
    %cst_3 = arith.constant dense<0.000000e+00> : vector<2x16xf32>
    %3 = vector.multi_reduction <add>, %2, %cst_3 [1] : vector<2x8x16xf32> to vector<2x16xf32>
    %c0_4 = arith.constant 0 : index
    %c0_5 = arith.constant 0 : index
    %4 = vector.load %arg2[%c0_4, %c0_5] : memref<16x128xf32, #tpu.memory_space<vmem>>, vector<16x128xf32>
    %cst_6 = arith.constant dense<0.000000e+00> : vector<2x128xf32>
    %5 = tpu.matmul %3, %4, %cst_6 {dimension_numbers = #tpu.dot_dimension_numbers<[1], [0], [0], [1], [0, 0, 1, 1], [], []>} : vector<2x16xf32>, vector<16x128xf32>, vector<2x128xf32> -> vector<2x128xf32>
    %c0_7 = arith.constant 0 : index
    %c0_8 = arith.constant 0 : index
    %6 = vector.load %arg3[%c0_7, %c0_8] : memref<1x128xf32, #tpu.memory_space<vmem>>, vector<1x128xf32>
    %7 = vector.broadcast %6 : vector<1x128xf32> to vector<2x128xf32>
    %8 = arith.addf %5, %7 : vector<2x128xf32>
    %c0_9 = arith.constant 0 : index
    %c0_10 = arith.constant 0 : index
    %9 = vector.load %arg4[%c0_9, %c0_10] : memref<2x128xf32, #tpu.memory_space<vmem>>, vector<2x128xf32>
    tpu.vector_store %arg4[%c0_9, %c0_10], %8 {strides = array<i32>} : memref<2x128xf32, #tpu.memory_space<vmem>>, vector<2x128xf32>,
    return
  }
  func.func @transform_0(%arg0: i32) -> (i32, i32, i32, i32) {
    %c0_i32 = arith.constant 0 : i32
    %c0_i32_0 = arith.constant 0 : i32
    %c0_i32_1 = arith.constant 0 : i32
    %c0_i32_2 = arith.constant 0 : i32
    %c0_i32_3 = arith.constant 0 : i32
    return %c0_i32, %c0_i32_0, %c0_i32_1, %c0_i32_2 : i32, i32, i32, i32
  }
  func.func @transform_1(%arg0: i32) -> (i32, i32) {
    %c0_i32 = arith.constant 0 : i32
    %c0_i32_0 = arith.constant 0 : i32
    %c0_i32_1 = arith.constant 0 : i32
    return %c0_i32, %c0_i32_0 : i32, i32
  }
  func.func @transform_2(%arg0: i32) -> (i32, i32) {
    %c0_i32 = arith.constant 0 : i32
    %c0_i32_0 = arith.constant 0 : i32
    %c0_i32_1 = arith.constant 0 : i32
    return %c0_i32, %c0_i32_0 : i32, i32
  }
  func.func @transform_3(%arg0: i32) -> (i32, i32) {
    %c0_i32 = arith.constant 0 : i32
    %c0_i32_0 = arith.constant 0 : i32
    %c0_i32_1 = arith.constant 0 : i32
    return %c0_i32, %c0_i32_0 : i32, i32
  }
}

</mosaic_0001>

<bundles_post_ra>
// kernel: mlc_forward.6
= control target key start
LH: loop header
LB: loop body
LE: loop exit
PB: predicated region body
PF: predicated region fallthrough
CT: control target
= control target key end

     0   :  { %s836_s15 = smov 0   ;;  %s1126_s0 = inlined_call_operand.vmem [shape: bf16[16,2,16,8], index: 0, kind: input, shape index: {}]   ;;  %s1127_s1 = inlined_call_operand.vmem [shape: f32[2,2,8], index: 1, kind: input, shape index: {}]   ;;  %s1128_s2 = inlined_call_operand.vmem [shape: f32[1,8], index: 2, kind: input, shape index: {}]   ;;  %s1129_s3 = inlined_call_operand.vmem [shape: f32[1,8], index: 3, kind: input, shape index: {}]   ;;  %s1130_s4 = inlined_call_operand.vmem [shape: bf16[16,2,16,8], index: 4, kind: output, shape index: {}]  }
   0x1 LB: > { %s633_s16 = sadd.s32 4294967295, %s808_s15   ;;  %p637_p0 = scmp.ge.s32.totalorder %s808_s15, 1  ;;  %s808_s15 = sphi %s836_s15, %s14_s15  }
   0x2   : > { %p164_p1 = scmp.lt.s32.totalorder %s808_s15, 3 }
   0x4   : > { %p165_p2 = pnand %p637_p0, %p164_p1 }
   0x5   : > { %s638_s21 = sshll.u32 (!%p165_p2), %s633_s16, 3 }
   0x6   : > { %168 = sbr.rel (%p165_p2) target bundleno = 88 (0x58), region = 36  ;;  %p193_p3 = scmp.lt.s32.totalorder (!%p165_p2), %s638_s21, 15 }
   0xb   : > { %v206_v0 = vld [vmem:[%s1127_s1] sm:$0x3]  ;;  %v207_v1 = vld [vmem:[%s1127_s1 + $0x2] sm:$0x3]  ;;  %vm208_vm0 = vcmask 58368   ;;  %s1132_s21 = smov (!%p193_p3, %s638_s21), 15  ;;  %v225_v12 = vlaneseq }
   0xc   : > { %v209_v2 = vsel %vm208_vm0, %v206_v0, 0.0  ;;  %v210_v3 = vsel %vm208_vm0, %v207_v1, 0.0  ;;  %v810_v10 = vmov 1966171168   ;;  %s678_s22 = sshll.u32 %s1132_s21, 4  ;;  %vm542_vm1 = vcmask 60416  }
   0xd   : > { %v211_v4 = vadd.f32 %v210_v3, %v209_v2  ;;  %v223_v11 = vunpack.c.l.s4 %v810_v10  ;;  %v858_v14 = vshrl.u32 %v225_v12, 7  ;;  %s865_s25 = scalar_lea.vmem %s1126_s0, %s678_s22  ;;  %v218_v38 = vld [vmem:[%s1128_s2] sm:$0x1]  ;;  %s979_s6 = scalar_lea.vmem %s1130_s4, %s678_s22 }
   0xe   : > { %v713_v16 = vld [vmem:[%s865_s25] sm:$0xff]   ;;  %v870_v17 = vld [vmem:[%s865_s25 + $0x8] sm:$0xff]   ;;  %v873_v18 = vld [vmem:[%s865_s25 + $0x10] sm:$0xff]  }
   0xf   : > { %v850_v5 = vmul.f32 0.001953125, %v211_v4  ;;  %v224_v13 = vunpack.c.0.s8 %v223_v11  ;;  %v876_v20 = vld [vmem:[%s865_s25 + $0x18] sm:$0xff]   ;;  %v714_v22 = vunpack.c.l.bf16 %v713_v16  ;;  %v309_v23 = vsub.s32 0, %v858_v14  ;;  %v880_v24 = vld [vmem:[%s865_s25 + $0x20] sm:$0xff]   ;;  %v883_v25 = vld [vmem:[%s865_s25 + $0x28] sm:$0xff]  }
  0x10   : > { %v715_v26 = vunpack.c.h.bf16 %v713_v16  ;;  %v718_v27 = vunpack.c.l.bf16 %v870_v17  ;;  %v719_v28 = vunpack.c.h.bf16 %v870_v17  ;;  %v722_v29 = vunpack.c.l.bf16 %v873_v18  ;;  %v781_v30 = vld [vmem:[%s865_s25 + $0x30] sm:$0xff]   ;;  %v890_v31 = vld [vmem:[%s865_s25 + $0x38] sm:$0xff]   ;;  %v896_v36 = vld [vmem:[%s865_s25 + $0x40] sm:$0xff]  }
  0x11   : > { %v213_v6 = vmul.f32 %v850_v5, %v850_v5  ;;  %v227_v15 = vsub.s32 %v224_v13, %v858_v14  ;;  %v723_v33 = vunpack.c.h.bf16 %v873_v18  ;;  %v726_v34 = vunpack.c.l.bf16 %v876_v20  ;;  %v899_v37 = vld [vmem:[%s865_s25 + $0x48] sm:$0xff]   ;;  %v909_v43 = vld [vmem:[%s865_s25 + $0x50] sm:$0xff]   ;;  %v913_v48 = vld [vmem:[%s865_s25 + $0x58] sm:$0xff]  }
  0x12   : > { %v727_v35 = vunpack.c.h.bf16 %v876_v20  ;;  %v730_v39 = vunpack.c.l.bf16 %v880_v24  ;;  %v731_v40 = vunpack.c.h.bf16 %v880_v24  ;;  %v734_v41 = vunpack.c.l.bf16 %v883_v25  ;;  %v916_v49 = vld [vmem:[%s865_s25 + $0x60] sm:$0xff]   ;;  %v923_v54 = vld [vmem:[%s865_s25 + $0x68] sm:$0xff]   ;;  %v929_v59 = vld [vmem:[%s865_s25 + $0x70] sm:$0xff]  }
  0x13   : > { %v215_v7 = vrot.slane %v213_v6, 7  ;;  %v735_v42 = vunpack.c.h.bf16 %v883_v25  ;;  %v738_v45 = vunpack.c.l.bf16 %v781_v30  ;;  %v739_v46 = vunpack.c.h.bf16 %v781_v30  ;;  %v932_v60 = vld [vmem:[%s865_s25 + $0x78] sm:$0xff]   ;;  %v239_v61 = vld [vmem:[%s1129_s3] sm:$0x1] }
  0x14   : > { %v742_v47 = vunpack.c.l.bf16 %v890_v31  ;;  %v743_v50 = vunpack.c.h.bf16 %v890_v31  ;;  %v746_v51 = vunpack.c.l.bf16 %v896_v36  ;;  %v747_v52 = vunpack.c.h.bf16 %v896_v36 }
  0x15   : > { %v217_v8 = vsub.f32 %v850_v5, %v215_v7  ;;  %v750_v53 = vunpack.c.l.bf16 %v899_v37  ;;  %v751_v56 = vunpack.c.h.bf16 %v899_v37  ;;  %v754_v57 = vunpack.c.l.bf16 %v909_v43 }
  0x16   : > { %v755_v58 = vunpack.c.h.bf16 %v909_v43  ;;  %v758_v62 = vunpack.c.l.bf16 %v913_v48  ;;  %v759_v63 = vunpack.c.h.bf16 %v913_v48  ;;  %v762_v0 = vunpack.c.l.bf16 %v916_v49 }
  0x17   : > { %v219_v9 = vadd.f32 1e-05, %v217_v8  ;;  %v763_v1 = vunpack.c.h.bf16 %v916_v49  ;;  %v766_v4 = vunpack.c.l.bf16 %v923_v54  ;;  %v767_v6 = vunpack.c.h.bf16 %v923_v54 }
  0x18   : > { %v770_v7 = vunpack.c.l.bf16 %v929_v59  ;;  %v771_v8 = vunpack.c.h.bf16 %v929_v59  ;;  %v775_v10 = vunpack.c.h.bf16 %v932_v60 }
  0x19   : > { %800 = vrsqrt.f32 %v219_v9  ;;  %v774_v9 = vunpack.c.l.bf16 %v932_v60 }
  0x26   : > { %v801_v19 = vpop.eup %800 }
  0x27   : > { %v228_v21 = vrot.slane %v801_v19, %v227_v15 }
  0x29   : > { %v229_v32 = vcombine.high %v228_v21, %v228_v21 }
  0x2b   : > { %v236_v44 = vrot.slane %v229_v32, %v227_v15 }
  0x2d   : > { %v238_v55 = vmul.f32 %v236_v44, %v218_v38 }
  0x2f   : > { %v240_v2 = vmul.f32 %v238_v55, %v850_v5  ;;  %v942_v3 = vrot.slane %v238_v55, %v309_v23 }
  0x31   : > { %v241_v11 = vsub.f32 %v239_v61, %v240_v2  ;;  %v312_v12 = vmul.f32 %v714_v22, %v942_v3  ;;  %v313_v5 = vmul.f32 %v715_v26, %v942_v3  ;;  %v314_v13 = vmul.f32 %v718_v27, %v942_v3 }
  0x32   : > { %v315_v14 = vmul.f32 %v719_v28, %v942_v3  ;;  %v316_v15 = vmul.f32 %v722_v29, %v942_v3  ;;  %v317_v16 = vmul.f32 %v723_v33, %v942_v3  ;;  %v318_v17 = vmul.f32 %v726_v34, %v942_v3 }
  0x33   : > { %v957_v18 = vrot.slane %v241_v11, %v309_v23  ;;  %v319_v19 = vmul.f32 %v727_v35, %v942_v3  ;;  %v320_v20 = vmul.f32 %v730_v39, %v942_v3  ;;  %v321_v21 = vmul.f32 %v731_v40, %v942_v3 }
  0x34   : > { %v322_v22 = vmul.f32 %v734_v41, %v942_v3  ;;  %v323_v24 = vmul.f32 %v735_v42, %v942_v3  ;;  %v324_v25 = vmul.f32 %v738_v45, %v942_v3  ;;  %v325_v26 = vmul.f32 %v739_v46, %v942_v3 }
  0x35   : > { %v350_v27 = vadd.f32 %v957_v18, %v312_v12  ;;  %v351_v23 = vadd.f32 %v957_v18, %v313_v5  ;;  %v352_v28 = vadd.f32 %v957_v18, %v314_v13  ;;  %v353_v29 = vadd.f32 %v957_v18, %v315_v14 }
  0x36   : > { %v354_v30 = vadd.f32 %v957_v18, %v316_v15  ;;  %v355_v32 = vadd.f32 %v957_v18, %v317_v16  ;;  %v356_v33 = vadd.f32 %v957_v18, %v318_v17  ;;  %v357_v34 = vadd.f32 %v957_v18, %v319_v19 }
  0x37   : > { %v382_v35 = vmax.f32 %v350_v27, 0.0  ;;  %v383_v38 = vmax.f32 %v351_v23, 0.0  ;;  %v384_v39 = vmax.f32 %v352_v28, 0.0  ;;  %v385_v40 = vmax.f32 %v353_v29, 0.0 }
  0x38   : > { %v386_v41 = vmax.f32 %v354_v30, 0.0  ;;  %v387_v42 = vmax.f32 %v355_v32, 0.0  ;;  %v388_v44 = vmax.f32 %v356_v33, 0.0  ;;  %v389_v45 = vmax.f32 %v357_v34, 0.0 }
  0x39   : > { %v680_v46 = vpack.c.bf16 %v382_v35, %v382_v35  ;;  %v681_v55 = vpack.c.bf16 %v383_v38, %v383_v38  ;;  %v682_v61 = vpack.c.bf16 %v384_v39, %v384_v39  ;;  %v683_v2 = vpack.c.bf16 %v385_v40, %v385_v40 }
  0x3a   : > { %v684_v11 = vpack.c.bf16 %v386_v41, %v386_v41  ;;  %v685_v12 = vpack.c.bf16 %v387_v42, %v387_v42  ;;  %v686_v5 = vpack.c.bf16 %v388_v44, %v388_v44  ;;  %v687_v13 = vpack.c.bf16 %v389_v45, %v389_v45 }
  0x3b   : > { %543 = vst.msk [vmem:[%s979_s6] sm:$0xf] %vm542_vm1, %v680_v46  ;;  %544 = vst.msk [vmem:[%s979_s6 + $0x4] sm:$0xf] %vm542_vm1, %v681_v55  ;;  %v358_v14 = vadd.f32 %v957_v18, %v320_v20  ;;  %v359_v15 = vadd.f32 %v957_v18, %v321_v21  ;;  %v360_v16 = vadd.f32 %v957_v18, %v322_v22 }
  0x3c   : > { %545 = vst.msk [vmem:[%s979_s6 + $0x8] sm:$0xf] %vm542_vm1, %v682_v61  ;;  %546 = vst.msk [vmem:[%s979_s6 + $0xc] sm:$0xf] %vm542_vm1, %v683_v2  ;;  %v361_v17 = vadd.f32 %v957_v18, %v323_v24  ;;  %v362_v19 = vadd.f32 %v957_v18, %v324_v25  ;;  %v363_v27 = vadd.f32 %v957_v18, %v325_v26 }
  0x3d   : > { %547 = vst.msk [vmem:[%s979_s6 + $0x10] sm:$0xf] %vm542_vm1, %v684_v11  ;;  %548 = vst.msk [vmem:[%s979_s6 + $0x14] sm:$0xf] %vm542_vm1, %v685_v12  ;;  %v326_v20 = vmul.f32 %v742_v47, %v942_v3  ;;  %v327_v21 = vmul.f32 %v743_v50, %v942_v3  ;;  %v390_v22 = vmax.f32 %v358_v14, 0.0  ;;  %v391_v24 = vmax.f32 %v359_v15, 0.0 }
  0x3e   : > { %549 = vst.msk [vmem:[%s979_s6 + $0x18] sm:$0xf] %vm542_vm1, %v686_v5  ;;  %550 = vst.msk [vmem:[%s979_s6 + $0x1c] sm:$0xf] %vm542_vm1, %v687_v13  ;;  %v392_v23 = vmax.f32 %v360_v16, 0.0  ;;  %v393_v28 = vmax.f32 %v361_v17, 0.0  ;;  %v328_v39 = vmul.f32 %v746_v51, %v942_v3  ;;  %v329_v40 = vmul.f32 %v747_v52, %v942_v3 }
  0x3f   : > { %v394_v29 = vmax.f32 %v362_v19, 0.0  ;;  %v395_v25 = vmax.f32 %v363_v27, 0.0  ;;  %v364_v26 = vadd.f32 %v957_v18, %v326_v20  ;;  %v365_v30 = vadd.f32 %v957_v18, %v327_v21 }
  0x40   : > { %v688_v32 = vpack.c.bf16 %v390_v22, %v390_v22  ;;  %v689_v47 = vpack.c.bf16 %v391_v24, %v391_v24  ;;  %v690_v31 = vpack.c.bf16 %v392_v23, %v392_v23  ;;  %v691_v50 = vpack.c.bf16 %v393_v28, %v393_v28 }
  0x41   : > { %v692_v33 = vpack.c.bf16 %v394_v29, %v394_v29  ;;  %v693_v34 = vpack.c.bf16 %v395_v25, %v395_v25  ;;  %v396_v35 = vmax.f32 %v364_v26, 0.0  ;;  %v397_v38 = vmax.f32 %v365_v30, 0.0 }
  0x42   : > { %551 = vst.msk [vmem:[%s979_s6 + $0x20] sm:$0xf] %vm542_vm1, %v688_v32  ;;  %552 = vst.msk [vmem:[%s979_s6 + $0x24] sm:$0xf] %vm542_vm1, %v689_v47  ;;  %v330_v41 = vmul.f32 %v750_v53, %v942_v3  ;;  %v331_v42 = vmul.f32 %v751_v56, %v942_v3  ;;  %v332_v51 = vmul.f32 %v754_v57, %v942_v3 }
  0x43   : > { %553 = vst.msk [vmem:[%s979_s6 + $0x28] sm:$0xf] %vm542_vm1, %v690_v31  ;;  %554 = vst.msk [vmem:[%s979_s6 + $0x2c] sm:$0xf] %vm542_vm1, %v691_v50  ;;  %v694_v44 = vpack.c.bf16 %v396_v35, %v396_v35  ;;  %v695_v45 = vpack.c.bf16 %v397_v38, %v397_v38  ;;  %v333_v36 = vmul.f32 %v755_v58, %v942_v3 }
  0x44   : > { %555 = vst.msk [vmem:[%s979_s6 + $0x30] sm:$0xf] %vm542_vm1, %v692_v33  ;;  %556 = vst.msk [vmem:[%s979_s6 + $0x34] sm:$0xf] %vm542_vm1, %v693_v34  ;;  %v366_v52 = vadd.f32 %v957_v18, %v328_v39  ;;  %v367_v53 = vadd.f32 %v957_v18, %v329_v40  ;;  %v368_v37 = vadd.f32 %v957_v18, %v330_v41 }
  0x45   : > { %v369_v56 = vadd.f32 %v957_v18, %v331_v42  ;;  %557 = vst.msk [vmem:[%s979_s6 + $0x38] sm:$0xf] %vm542_vm1, %v694_v44  ;;  %558 = vst.msk [vmem:[%s979_s6 + $0x3c] sm:$0xf] %vm542_vm1, %v695_v45  ;;  %v370_v46 = vadd.f32 %v957_v18, %v332_v51  ;;  %v371_v57 = vadd.f32 %v957_v18, %v333_v36 }
  0x46   : > { %v334_v43 = vmul.f32 %v758_v62, %v942_v3  ;;  %v335_v58 = vmul.f32 %v759_v63, %v942_v3  ;;  %v398_v55 = vmax.f32 %v366_v52, 0.0  ;;  %v399_v61 = vmax.f32 %v367_v53, 0.0 }
  0x47   : > { %v400_v2 = vmax.f32 %v368_v37, 0.0  ;;  %v401_v11 = vmax.f32 %v369_v56, 0.0  ;;  %v402_v12 = vmax.f32 %v370_v46, 0.0  ;;  %v403_v5 = vmax.f32 %v371_v57, 0.0 }
  0x48   : > { %v372_v13 = vadd.f32 %v957_v18, %v334_v43  ;;  %v373_v14 = vadd.f32 %v957_v18, %v335_v58  ;;  %v696_v15 = vpack.c.bf16 %v398_v55, %v398_v55  ;;  %v697_v62 = vpack.c.bf16 %v399_v61, %v399_v61 }
  0x49   : > { %v698_v48 = vpack.c.bf16 %v400_v2, %v400_v2  ;;  %v699_v63 = vpack.c.bf16 %v401_v11, %v401_v11  ;;  %v700_v16 = vpack.c.bf16 %v402_v12, %v402_v12  ;;  %v701_v17 = vpack.c.bf16 %v403_v5, %v403_v5 }
  0x4a   : > { %v404_v19 = vmax.f32 %v372_v13, 0.0  ;;  %v405_v27 = vmax.f32 %v373_v14, 0.0  ;;  %559 = vst.msk [vmem:[%s979_s6 + $0x40] sm:$0xf] %vm542_vm1, %v696_v15  ;;  %560 = vst.msk [vmem:[%s979_s6 + $0x44] sm:$0xf] %vm542_vm1, %v697_v62  ;;  %v336_v20 = vmul.f32 %v762_v0, %v942_v3  ;;  %v337_v21 = vmul.f32 %v763_v1, %v942_v3 }
  0x4b   : > { %561 = vst.msk [vmem:[%s979_s6 + $0x48] sm:$0xf] %vm542_vm1, %v698_v48  ;;  %562 = vst.msk [vmem:[%s979_s6 + $0x4c] sm:$0xf] %vm542_vm1, %v699_v63  ;;  %v338_v22 = vmul.f32 %v766_v4, %v942_v3  ;;  %v339_v24 = vmul.f32 %v767_v6, %v942_v3  ;;  %v340_v0 = vmul.f32 %v770_v7, %v942_v3 }
  0x4c   : > { %563 = vst.msk [vmem:[%s979_s6 + $0x50] sm:$0xf] %vm542_vm1, %v700_v16  ;;  %564 = vst.msk [vmem:[%s979_s6 + $0x54] sm:$0xf] %vm542_vm1, %v701_v17  ;;  %v702_v23 = vpack.c.bf16 %v404_v19, %v404_v19  ;;  %v703_v28 = vpack.c.bf16 %v405_v27, %v405_v27  ;;  %v341_v49 = vmul.f32 %v771_v8, %v942_v3 }
  0x4d   : > { %v374_v1 = vadd.f32 %v957_v18, %v336_v20  ;;  %v375_v4 = vadd.f32 %v957_v18, %v337_v21  ;;  %v376_v54 = vadd.f32 %v957_v18, %v338_v22  ;;  %v377_v6 = vadd.f32 %v957_v18, %v339_v24 }
  0x4e   : > { %565 = vst.msk [vmem:[%s979_s6 + $0x58] sm:$0xf] %vm542_vm1, %v702_v23  ;;  %566 = vst.msk [vmem:[%s979_s6 + $0x5c] sm:$0xf] %vm542_vm1, %v703_v28  ;;  %v378_v29 = vadd.f32 %v957_v18, %v340_v0  ;;  %v379_v7 = vadd.f32 %v957_v18, %v341_v49  ;;  %v342_v59 = vmul.f32 %v774_v9, %v942_v3 }
  0x4f   : > { %v343_v8 = vmul.f32 %v775_v10, %v942_v3  ;;  %v406_v25 = vmax.f32 %v374_v1, 0.0  ;;  %v407_v26 = vmax.f32 %v375_v4, 0.0  ;;  %v408_v30 = vmax.f32 %v376_v54, 0.0 }
  0x50   : > { %v409_v32 = vmax.f32 %v377_v6, 0.0  ;;  %v410_v47 = vmax.f32 %v378_v29, 0.0  ;;  %v411_v31 = vmax.f32 %v379_v7, 0.0  ;;  %v380_v50 = vadd.f32 %v957_v18, %v342_v59 }
  0x51   : > { %v381_v9 = vadd.f32 %v957_v18, %v343_v8  ;;  %v704_v33 = vpack.c.bf16 %v406_v25, %v406_v25  ;;  %v705_v60 = vpack.c.bf16 %v407_v26, %v407_v26  ;;  %v706_v3 = vpack.c.bf16 %v408_v30, %v408_v30 }
  0x52   : > { %v707_v10 = vpack.c.bf16 %v409_v32, %v409_v32  ;;  %v708_v34 = vpack.c.bf16 %v410_v47, %v410_v47  ;;  %v709_v35 = vpack.c.bf16 %v411_v31, %v411_v31  ;;  %v412_v38 = vmax.f32 %v380_v50, 0.0 }
  0x53   : > { %v413_v39 = vmax.f32 %v381_v9, 0.0  ;;  %567 = vst.msk [vmem:[%s979_s6 + $0x60] sm:$0xf] %vm542_vm1, %v704_v33  ;;  %568 = vst.msk [vmem:[%s979_s6 + $0x64] sm:$0xf] %vm542_vm1, %v705_v60 }
  0x54   : > { %569 = vst.msk [vmem:[%s979_s6 + $0x68] sm:$0xf] %vm542_vm1, %v706_v3  ;;  %570 = vst.msk [vmem:[%s979_s6 + $0x6c] sm:$0xf] %vm542_vm1, %v707_v10  ;;  %v710_v18 = vpack.c.bf16 %v412_v38, %v412_v38 }
  0x55   : > { %571 = vst.msk [vmem:[%s979_s6 + $0x70] sm:$0xf] %vm542_vm1, %v708_v34  ;;  %572 = vst.msk [vmem:[%s979_s6 + $0x74] sm:$0xf] %vm542_vm1, %v709_v35  ;;  %v711_v40 = vpack.c.bf16 %v413_v39, %v413_v39 }
  0x56   : > { %573 = vst.msk [vmem:[%s979_s6 + $0x78] sm:$0xf] %vm542_vm1, %v710_v18 }
  0x57   : > { %574 = vst.msk [vmem:[%s979_s6 + $0x7c] sm:$0xf] %vm542_vm1, %v711_v40 }
  0x58 PF: > { %s14_s15 = sadd.s32 1, %s808_s15  }
  0x59   : > { %p11_p4 = scmp.ge.s32.totalorder %s14_s15, 4  }
  0x5b   :  { %13 = sbr.rel (!%p11_p4) target bundleno = 1 (0x1), region = 66 }

// kernel: mlc_forward.8
= control target key start
LH: loop header
LB: loop body
LE: loop exit
PB: predicated region body
PF: predicated region fallthrough
CT: control target
= control target key end

     0   :  { %s448_s15 = smov 0   ;;  %s492_s0 = inlined_call_operand.vmem [shape: bf16[8,2,8,16], index: 0, kind: input, shape index: {}]   ;;  %s493_s1 = inlined_call_operand.vmem [shape: f32[2,2,16], index: 1, kind: input, shape index: {}]   ;;  %s494_s2 = inlined_call_operand.vmem [shape: f32[1,16], index: 2, kind: input, shape index: {}]   ;;  %s495_s3 = inlined_call_operand.vmem [shape: f32[1,16], index: 3, kind: input, shape index: {}]   ;;  %s496_s4 = inlined_call_operand.vmem [shape: bf16[8,2,8,16], index: 4, kind: output, shape index: {}]  }
   0x1 LB: > { %s369_s16 = sadd.s32 4294967295, %s420_s15   ;;  %p373_p0 = scmp.ge.s32.totalorder %s420_s15, 1  ;;  %s420_s15 = sphi %s448_s15, %s14_s15  }
   0x2   : > { %p164_p1 = scmp.lt.s32.totalorder %s420_s15, 3 }
   0x4   : > { %p165_p2 = pnand %p373_p0, %p164_p1 }
   0x5   : > { %s374_s21 = sshll.u32 (!%p165_p2), %s369_s16, 2 }
   0x6   : > { %168 = sbr.rel (%p165_p2) target bundleno = 63 (0x3f), region = 36  ;;  %p193_p3 = scmp.lt.s32.totalorder (!%p165_p2), %s374_s21, 7 }
   0xb   : > { %v206_v0 = vld [vmem:[%s493_s1] sm:$0x3]  ;;  %v207_v1 = vld [vmem:[%s493_s1 + $0x2] sm:$0x3]  ;;  %vm208_vm0 = vcmask 123904   ;;  %v225_v12 = vlaneseq  ;;  %s498_s21 = smov (!%p193_p3, %s374_s21), 7 }
   0xc   : > { %v209_v2 = vsel %vm208_vm0, %v206_v0, 0.0  ;;  %v210_v3 = vsel %vm208_vm0, %v207_v1, 0.0  ;;  %v422_v10 = vmov 1966171168   ;;  %s382_s22 = sshll.u32 %s498_s21, 3  ;;  %vm302_vm1 = vcmask 125952  }
   0xd   : > { %v211_v4 = vadd.f32 %v210_v3, %v209_v2  ;;  %v223_v11 = vunpack.c.l.s4 %v422_v10  ;;  %v226_v14 = vshrl.u32 %v225_v12, 7  ;;  %s197_s25 = scalar_lea.vmem %s492_s0, %s382_s22  ;;  %v218_v19 = vld [vmem:[%s494_s2] sm:$0x1]  ;;  %s204_s6 = scalar_lea.vmem %s496_s4, %s382_s22 }
   0xe   : > { %v385_v20 = vld [vmem:[%s197_s25] sm:$0xff]   ;;  %v400_v21 = vld [vmem:[%s197_s25 + $0x8] sm:$0xff]   ;;  %v401_v24 = vld [vmem:[%s197_s25 + $0x10] sm:$0xff]  }
   0xf   : > { %v212_v5 = vmul.f32 0.0078125, %v211_v4  ;;  %v224_v13 = vunpack.c.0.s8 %v223_v11  ;;  %v261_v23 = vsub.s32 0, %v226_v14  ;;  %v402_v25 = vld [vmem:[%s197_s25 + $0x18] sm:$0xff]   ;;  %v386_v27 = vunpack.c.l.bf16 %v385_v20  ;;  %v239_v30 = vld [vmem:[%s495_s3] sm:$0x1] }
  0x10   : > { %v387_v28 = vunpack.c.h.bf16 %v385_v20  ;;  %v390_v29 = vunpack.c.l.bf16 %v400_v21  ;;  %v391_v31 = vunpack.c.h.bf16 %v400_v21  ;;  %v394_v32 = vunpack.c.l.bf16 %v401_v24 }
  0x11   : > { %v213_v6 = vmul.f32 %v212_v5, %v212_v5  ;;  %v227_v15 = vsub.s32 %v224_v13, %v226_v14  ;;  %v395_v33 = vunpack.c.h.bf16 %v401_v24  ;;  %v398_v34 = vunpack.c.l.bf16 %v402_v25 }
  0x12   : > { %v399_v37 = vunpack.c.h.bf16 %v402_v25 }
  0x13   : > { %v215_v7 = vrot.slane %v213_v6, 7 }
  0x15   : > { %v217_v8 = vsub.f32 %v212_v5, %v215_v7 }
  0x17   : > { %v219_v9 = vadd.f32 1e-05, %v217_v8 }
  0x19   : > { %412 = vrsqrt.f32 %v219_v9 }
  0x26   : > { %v413_v16 = vpop.eup %412 }
  0x27   : > { %v228_v17 = vrot.slane %v413_v16, %v227_v15 }
  0x29   : > { %v229_v18 = vcombine.high %v228_v17, %v228_v17 }
  0x2b   : > { %v236_v22 = vrot.slane %v229_v18, %v227_v15 }
  0x2d   : > { %v238_v26 = vmul.f32 %v236_v22, %v218_v19 }
  0x2f   : > { %v240_v35 = vmul.f32 %v238_v26, %v212_v5  ;;  %v262_v36 = vrot.slane %v238_v26, %v261_v23 }
  0x31   : > { %v241_v38 = vsub.f32 %v239_v30, %v240_v35  ;;  %v264_v39 = vmul.f32 %v386_v27, %v262_v36  ;;  %v265_v40 = vmul.f32 %v387_v28, %v262_v36  ;;  %v266_v41 = vmul.f32 %v390_v29, %v262_v36 }
  0x32   : > { %v267_v42 = vmul.f32 %v391_v31, %v262_v36  ;;  %v268_v43 = vmul.f32 %v394_v32, %v262_v36  ;;  %v269_v44 = vmul.f32 %v395_v33, %v262_v36  ;;  %v270_v45 = vmul.f32 %v398_v34, %v262_v36 }
  0x33   : > { %v276_v46 = vrot.slane %v241_v38, %v261_v23  ;;  %v271_v47 = vmul.f32 %v399_v37, %v262_v36 }
  0x35   : > { %v278_v48 = vadd.f32 %v276_v46, %v264_v39  ;;  %v279_v49 = vadd.f32 %v276_v46, %v265_v40  ;;  %v280_v50 = vadd.f32 %v276_v46, %v266_v41  ;;  %v281_v51 = vadd.f32 %v276_v46, %v267_v42 }
  0x36   : > { %v282_v52 = vadd.f32 %v276_v46, %v268_v43  ;;  %v283_v53 = vadd.f32 %v276_v46, %v269_v44  ;;  %v284_v54 = vadd.f32 %v276_v46, %v270_v45  ;;  %v285_v55 = vadd.f32 %v276_v46, %v271_v47 }
  0x37   : > { %v286_v56 = vmax.f32 %v278_v48, 0.0  ;;  %v287_v57 = vmax.f32 %v279_v49, 0.0  ;;  %v288_v58 = vmax.f32 %v280_v50, 0.0  ;;  %v289_v59 = vmax.f32 %v281_v51, 0.0 }
  0x38   : > { %v290_v60 = vmax.f32 %v282_v52, 0.0  ;;  %v291_v61 = vmax.f32 %v283_v53, 0.0  ;;  %v292_v62 = vmax.f32 %v284_v54, 0.0  ;;  %v293_v63 = vmax.f32 %v285_v55, 0.0 }
  0x39   : > { %v294_v0 = vpack.c.bf16 %v286_v56, %v286_v56  ;;  %v295_v1 = vpack.c.bf16 %v287_v57, %v287_v57  ;;  %v296_v2 = vpack.c.bf16 %v288_v58, %v288_v58  ;;  %v297_v3 = vpack.c.bf16 %v289_v59, %v289_v59 }
  0x3a   : > { %v298_v4 = vpack.c.bf16 %v290_v60, %v290_v60  ;;  %v299_v5 = vpack.c.bf16 %v291_v61, %v291_v61  ;;  %v300_v6 = vpack.c.bf16 %v292_v62, %v292_v62  ;;  %v301_v7 = vpack.c.bf16 %v293_v63, %v293_v63 }
  0x3b   : > { %303 = vst.msk [vmem:[%s204_s6] sm:$0xf] %vm302_vm1, %v294_v0  ;;  %304 = vst.msk [vmem:[%s204_s6 + $0x4] sm:$0xf] %vm302_vm1, %v295_v1 }
  0x3c   : > { %305 = vst.msk [vmem:[%s204_s6 + $0x8] sm:$0xf] %vm302_vm1, %v296_v2  ;;  %306 = vst.msk [vmem:[%s204_s6 + $0xc] sm:$0xf] %vm302_vm1, %v297_v3 }
  0x3d   : > { %307 = vst.msk [vmem:[%s204_s6 + $0x10] sm:$0xf] %vm302_vm1, %v298_v4  ;;  %308 = vst.msk [vmem:[%s204_s6 + $0x14] sm:$0xf] %vm302_vm1, %v299_v5 }
  0x3e   : > { %309 = vst.msk [vmem:[%s204_s6 + $0x18] sm:$0xf] %vm302_vm1, %v300_v6  ;;  %310 = vst.msk [vmem:[%s204_s6 + $0x1c] sm:$0xf] %vm302_vm1, %v301_v7 }
  0x3f PF: > { %s14_s15 = sadd.s32 1, %s420_s15  }
  0x40   : > { %p11_p4 = scmp.ge.s32.totalorder %s14_s15, 4  }
  0x42   :  { %13 = sbr.rel (!%p11_p4) target bundleno = 1 (0x1), region = 66 }

// kernel: mlc_forward.7
= control target key start
LH: loop header
LB: loop body
LE: loop exit
PB: predicated region body
PF: predicated region fallthrough
CT: control target
= control target key end

     0   :  { %s1540_s12 = smov 0   ;;  %s1859_s0 = inlined_call_operand.vmem [shape: bf16[4,9,2,9,8], index: 0, kind: input, shape index: {}]   ;;  %s1860_s1 = inlined_call_operand.vmem [shape: bf16[72,16], index: 1, kind: input, shape index: {}]   ;;  %s1861_s2 = inlined_call_operand.vmem [shape: bf16[8,2,8,16], index: 2, kind: output, shape index: {0}]   ;;  %s1862_s3 = inlined_call_operand.vmem [shape: f32[2,2,16], index: 3, kind: output, shape index: {1}]  }
   0x1 LB: > { %s1546_s13 = sadd.s32 4294967295, %s1510_s12   ;;  %p1217_p0 = scmp.ge.s32.totalorder %s1510_s12, 1  ;;  %s1510_s12 = sphi %s1540_s12, %s14_s12  }
   0x2   : > { %p130_p1 = scmp.lt.s32.totalorder %s1510_s12, 3 }
   0x4   : > { %p131_p2 = pnand %p1217_p0, %p130_p1 }
   0x5   : > { %s1373_s14 = sshll.u32 (!%p131_p2), %s1546_s13, 6  ;;  %s1512_s18 = smov (!%p131_p2), 8  }
   0x6   : > { %134 = sbr.rel (%p131_p2) target bundleno = 477 (0x1dd), region = 28  ;;  %s1554_s17 = scalar_lea.vmem (!%p131_p2), %s1859_s0, %s1373_s14 }
   0x7   : > { %s1513_s19 = smov (!%p131_p2), 16   ;;  %s1514_s20 = smov (!%p131_p2), 24  }
   0x8   : > { %s1515_s21 = smov (!%p131_p2), 32   ;;  %s1516_s22 = smov (!%p131_p2), 40  }
   0x9   : > { %s1517_s23 = smov (!%p131_p2), 48   ;;  %s1518_s30 = smov (!%p131_p2), 56  }
   0xa   : > { %s1519_s8 = smov (!%p131_p2), 64   ;;  %s1218_s9 = sshll.u32 (!%p131_p2), %s1546_s13, 2 }
   0xb   : > { %v1435_v0 = vld [vmem:[%s1554_s17 + $0xa0] ss:$0 sps:$4 sm:$0xff]   ;;  %v1436_v1 = vld [vmem:[%s1554_s17 + $0x90] ss:$0 sps:$4 sm:$0xff]   ;;  %v1437_v2 = vld [vmem:[%s1554_s17 + $0xa8] ss:$0 sps:$4 sm:$0xff]  }
   0xc   : > { %286 = vrot.lane.b32.xlu1 %v1435_v0, %s1512_s18  ;;  %v1438_v3 = vld [vmem:[%s1554_s17 + $0x98] ss:$0 sps:$4 sm:$0xff]   ;;  %v1562_v4 = vld [vmem:[%s1554_s17 + $0x8] sm:$0xf]  ;;  %282 = vrot.lane.b32.xlu0 %v1436_v1, %s1512_s18  ;;  %vm975_vm0 = vcmask 1043456   ;;  %vm762_vm1 = vcmask 64512  }
   0xd   : > { %v190_v5 = vld [vmem:[%s1554_s17 + $0xc] sm:$0x1]  ;;  %v1567_v6 = vld [vmem:[%s1554_s17] sm:$0xf]  ;;  %v189_v7 = vld [vmem:[%s1554_s17 + $0x4] sm:$0x1] }
   0xe   : > { %v1301_v8 = vcombine.low %v1562_v4, %v190_v5  ;;  %v1300_v9 = vcombine.low %v1567_v6, %v189_v7  ;;  %v1573_v10 = vld [vmem:[%s1554_s17 + $0x18] sm:$0xf]  ;;  %v192_v11 = vld [vmem:[%s1554_s17 + $0x1c] sm:$0x1]  ;;  %v1577_v12 = vld [vmem:[%s1554_s17 + $0x10] sm:$0xf] }
   0xf   : > { %v1303_v13 = vcombine.low %v1573_v10, %v192_v11  ;;  %v191_v14 = vld [vmem:[%s1554_s17 + $0x14] sm:$0x1]  ;;  %v1238_v32 = vld [vmem:[%s1554_s17 + $0x128] sm:$0xf]  ;;  %v1237_v33 = vld [vmem:[%s1554_s17 + $0x120] sm:$0xf] }
  0x10   : > { %288 = vrot.lane.b32.xlu1 %v1437_v2, %s1512_s18  ;;  %v346_v15 = vshrl.u32 %v1301_v8, 16  ;;  %v348_v16 = vshll.u32 %v1301_v8, 16  ;;  %v339_v17 = vshrl.u32 %v1300_v9, 16  ;;  %v341_v18 = vshll.u32 %v1300_v9, 16  ;;  %284 = vrot.lane.b32.xlu0 %v1438_v3, %s1512_s18  ;;  %v1256_v34 = vld [vmem:[%s1554_s17 + $0x12c] sm:$0x1] }
  0x11   : > { %v362_v19 = vshll.u32 %v1303_v13, 16  ;;  %v1302_v20 = vcombine.low %v1577_v12, %v191_v14  ;;  %v360_v23 = vshrl.u32 %v1303_v13, 16  ;;  %v1309_v35 = vcombine.low %v1238_v32, %v1238_v32  ;;  %v1255_v37 = vld [vmem:[%s1554_s17 + $0x124] sm:$0x1]  ;;  %v1240_v38 = vld [vmem:[%s1554_s17 + $0x138] sm:$0xf] }
  0x12   : > { %v350_v21 = vrot.slane %v348_v16, 1  ;;  %v343_v22 = vrot.slane %v341_v18, 1  ;;  %v1308_v36 = vcombine.low %v1237_v33, %v1237_v33  ;;  %v1239_v39 = vld [vmem:[%s1554_s17 + $0x130] sm:$0xf]  ;;  %v1325_v40 = vcombine.low %v1238_v32, %v1256_v34  ;;  %v1258_v44 = vld [vmem:[%s1554_s17 + $0x13c] sm:$0x1] }
  0x13   : > { %v364_v24 = vrot.slane %v362_v19, 1  ;;  %v353_v25 = vshrl.u32 %v1302_v20, 16  ;;  %v355_v26 = vshll.u32 %v1302_v20, 16  ;;  %v1324_v41 = vcombine.low %v1237_v33, %v1255_v37  ;;  %v1257_v45 = vld [vmem:[%s1554_s17 + $0x134] sm:$0x1]  ;;  %p155_p3 = scmp.lt.s32.totalorder %s1218_s9, 7 }
  0x14   : > { %v351_v27 = vor.u32 %v350_v21, %v346_v15  ;;  %v344_v28 = vor.u32 %v343_v22, %v339_v17  ;;  %v1311_v42 = vcombine.low %v1240_v38, %v1240_v38  ;;  %v1310_v43 = vcombine.low %v1239_v39, %v1239_v39  ;;  %v1451_v46 = vld [vmem:[%s1554_s17 + $0x1b8] ss:$0 sps:$4 sm:$0xff]   ;;  %v1452_v49 = vld [vmem:[%s1554_s17 + $0x1b0] ss:$0 sps:$4 sm:$0xff]   ;;  %v1453_v52 = vld [vmem:[%s1554_s17 + $0x1c8] ss:$0 sps:$4 sm:$0xff]  }
  0x15   : > { %v357_v29 = vrot.slane %v355_v26, 1  ;;  %v365_v30 = vor.u32 %v364_v24, %v360_v23  ;;  %v1327_v47 = vcombine.low %v1240_v38, %v1258_v44  ;;  %v1326_v48 = vcombine.low %v1239_v39, %v1257_v45  ;;  %v1454_v55 = vld [vmem:[%s1554_s17 + $0x1c0] ss:$0 sps:$4 sm:$0xff]   ;;  %v1266_v5 = vld [vmem:[%s1554_s17 + $0x18] sm:$0xf]  ;;  %v1502_v38 = vld [vmem:[%s1860_s1 + $0x8] sm:$0xff]  }
  0x16   : > { %396 = vrot.lane.b32.xlu1 %v351_v27, %s1513_s19  ;;  %394 = vrot.lane.b32.xlu0 %v344_v28, %s1513_s19  ;;  %v524_v50 = vshll.u32 %v1325_v40, 16  ;;  %v517_v51 = vshll.u32 %v1324_v41, 16  ;;  %v522_v53 = vshrl.u32 %v1325_v40, 16  ;;  %v515_v54 = vshrl.u32 %v1324_v41, 16  ;;  %v1265_v7 = vld [vmem:[%s1554_s17 + $0x10] sm:$0xf] }
  0x17   : > { %v358_v31 = vor.u32 %v357_v29, %v353_v25  ;;  %v538_v58 = vshll.u32 %v1327_v47, 16  ;;  %v531_v59 = vshll.u32 %v1326_v48, 16  ;;  %v536_v60 = vshrl.u32 %v1327_v47, 16  ;;  %v1285_v8 = vld [vmem:[%s1554_s17 + $0x1c] sm:$0x1]  ;;  %v1501_v29 = vld [vmem:[%s1860_s1 + $0x10] sm:$0xff]  }
  0x18   : > { %v526_v56 = vrot.slane %v524_v50, 1  ;;  %v519_v57 = vrot.slane %v517_v51, 1  ;;  %v529_v61 = vshrl.u32 %v1326_v48, 16  ;;  %v1333_v9 = vcombine.low %v1266_v5, %v1266_v5  ;;  %v1284_v11 = vld [vmem:[%s1554_s17 + $0x14] sm:$0x1]  ;;  %v1500_v24 = vld [vmem:[%s1860_s1 + $0x18] sm:$0xff]  }
  0x19   : > { %v540_v0 = vrot.slane %v538_v58, 1  ;;  %v533_v1 = vrot.slane %v531_v59, 1  ;;  %v1332_v13 = vcombine.low %v1265_v7, %v1265_v7  ;;  %v1268_v14 = vld [vmem:[%s1554_s17 + $0x28] sm:$0xf]  ;;  %v1267_v15 = vld [vmem:[%s1554_s17 + $0x20] sm:$0xf]  ;;  %v1349_v16 = vcombine.low %v1266_v5, %v1285_v8 }
  0x1a   : > { %400 = vrot.lane.b32.xlu1 %v365_v30, %s1513_s19  ;;  %398 = vrot.lane.b32.xlu0 %v358_v31, %s1513_s19  ;;  %v527_v62 = vor.u32 %v526_v56, %v522_v53  ;;  %v520_v63 = vor.u32 %v519_v57, %v515_v54  ;;  %v1348_v17 = vcombine.low %v1265_v7, %v1284_v11  ;;  %v1499_v20 = vld [vmem:[%s1860_s1 + $0x20] ss:$0 sps:$4 sm:$0xff]   ;;  %v1287_v21 = vld [vmem:[%s1554_s17 + $0x2c] sm:$0x1]  ;;  %vm787_vm2 = vcmask 130048   ;;  %s1864_s9 = smov (!%p155_p3, %s1218_s9), 7 }
  0x1b   : > { %v541_v2 = vor.u32 %v540_v0, %v536_v60  ;;  %v534_v3 = vor.u32 %v533_v1, %v529_v61  ;;  %v1335_v18 = vcombine.low %v1268_v14, %v1268_v14  ;;  %v1334_v19 = vcombine.low %v1267_v15, %v1267_v15  ;;  %v1286_v22 = vld [vmem:[%s1554_s17 + $0x24] sm:$0x1]  ;;  %v1463_v23 = vld [vmem:[%s1554_s17 + $0xa8] ss:$0 sps:$4 sm:$0xff]   ;;  %v1464_v25 = vld [vmem:[%s1554_s17 + $0xa0] ss:$0 sps:$4 sm:$0xff]   ;;  %1417 = vmatprep.subr.msk.bf16.mxu0 %vm975_vm0, %v1499_v20 }
  0x1c   : > { %v977_v26 = vsel %vm975_vm0, %v1499_v20, 0  ;;  %1418 = vmatprep.subr.msk.bf16.mxu1 %vm975_vm0, %v1499_v20  ;;  %v700_v27 = vshll.u32 %v1349_v16, 16  ;;  %v693_v28 = vshll.u32 %v1348_v17, 16  ;;  %v1351_v30 = vcombine.low %v1268_v14, %v1287_v21  ;;  %v1465_v32 = vld [vmem:[%s1554_s17 + $0xb8] ss:$0 sps:$4 sm:$0xff]   ;;  %v1503_v47 = vld [vmem:[%s1860_s1] sm:$0xff]  }
  0x1d   : > { %1390 = vmatpush3.bf16.msra.mxu0 %v977_v26  ;;  %1412 = vmatpush3.bf16.msra.mxu1 %v977_v26  ;;  %v1350_v31 = vcombine.low %v1267_v15, %v1286_v22  ;;  %v1466_v33 = vld [vmem:[%s1554_s17 + $0xb0] ss:$0 sps:$4 sm:$0xff]   ;;  %v698_v34 = vshrl.u32 %v1349_v16, 16  ;;  %v194_v44 = vld [vmem:[%s1554_s17 + $0x2c] sm:$0x1]  ;;  %vm804_vm3 = vcmask 195584  }
  0x1e   : > { %436 = vrot.lane.b32.xlu1 %v1309_v35, %s1514_s20  ;;  %434 = vrot.lane.b32.xlu0 %v1308_v36, %s1514_s20  ;;  %v702_v35 = vrot.slane %v700_v27, 1  ;;  %v691_v36 = vshrl.u32 %v1348_v17, 16  ;;  %v695_v37 = vrot.slane %v693_v28, 1  ;;  %v714_v39 = vshll.u32 %v1351_v30, 16  ;;  %v1649_v45 = vld [vmem:[%s1554_s17 + $0x20] sm:$0xf] }
  0x1f   : > { %1391 = vmatprep.subr.bf16.mxu0 %v1500_v24  ;;  %1408 = vmatprep.subr.bf16.mxu1 %v1500_v24  ;;  %v707_v40 = vshll.u32 %v1350_v31, 16  ;;  %v1467_v48 = vld [vmem:[%s1554_s17 + $0xb8] ss:$0 sps:$4 sm:$0xff]   ;;  %v705_v51 = vshrl.u32 %v1350_v31, 16  ;;  %v1468_v53 = vld [vmem:[%s1554_s17 + $0xb0] ss:$0 sps:$4 sm:$0xff]  }
  0x20   : > { %v703_v41 = vor.u32 %v702_v35, %v698_v34  ;;  %v716_v50 = vrot.slane %v714_v39, 1  ;;  %v1662_v56 = vld [vmem:[%s1554_s17 + $0x38] sm:$0xf]  ;;  %v196_v57 = vld [vmem:[%s1554_s17 + $0x3c] sm:$0x1]  ;;  %vm821_vm4 = vcmask 261120  }
  0x21   : > { %1392 = vmatpush3.bf16.msra.mxu0 %v1500_v24  ;;  %1413 = vmatpush3.bf16.msra.mxu1 %v1500_v24  ;;  %v1666_v58 = vld [vmem:[%s1554_s17 + $0x30] sm:$0xf]  ;;  %v195_v59 = vld [vmem:[%s1554_s17 + $0x34] sm:$0x1]  ;;  %v1307_v0 = vcombine.low %v1662_v56, %v196_v57  ;;  %v1470_v7 = vld [vmem:[%s1554_s17 + $0xc0] ss:$0 sps:$4 sm:$0xff]  }
  0x22   : > { %440 = vrot.lane.b32.xlu1 %v1311_v42, %s1514_s20  ;;  %438 = vrot.lane.b32.xlu0 %v1310_v43, %s1514_s20  ;;  %v696_v42 = vor.u32 %v695_v37, %v691_v36  ;;  %v1645_v43 = vld [vmem:[%s1554_s17 + $0x28] sm:$0xf]  ;;  %v1306_v1 = vcombine.low %v1666_v58, %v195_v59  ;;  %v1260_v24 = vld [vmem:[%s1554_s17 + $0x14c] sm:$0x1]  ;;  %vm838_vm5 = vcmask 326656   ;;  %vm855_vm6 = vcmask 392192  }
  0x23   : > { %1393 = vmatprep.subr.bf16.mxu0 %v1501_v29  ;;  %1409 = vmatprep.subr.bf16.mxu1 %v1501_v29  ;;  %v1305_v54 = vcombine.low %v1645_v43, %v194_v44  ;;  %v390_v11 = vshll.u32 %v1307_v0, 16  ;;  %v388_v14 = vshrl.u32 %v1307_v0, 16  ;;  %v1242_v22 = vld [vmem:[%s1554_s17 + $0x148] sm:$0xf]  ;;  %v1259_v27 = vld [vmem:[%s1554_s17 + $0x144] sm:$0x1] }
  0x24   : > { %v381_v15 = vshrl.u32 %v1306_v1, 16  ;;  %v1244_v28 = vld [vmem:[%s1554_s17 + $0x158] sm:$0xf]  ;;  %v1262_v34 = vld [vmem:[%s1554_s17 + $0x15c] sm:$0x1]  ;;  %vm872_vm7 = vcmask 457728  }
  0x25   : > { %1394 = vmatpush3.bf16.msra.mxu0 %v1501_v29  ;;  %1414 = vmatpush3.bf16.msra.mxu1 %v1501_v29  ;;  %v1243_v29 = vld [vmem:[%s1554_s17 + $0x150] sm:$0xf]  ;;  %v1261_v35 = vld [vmem:[%s1554_s17 + $0x154] sm:$0x1]  ;;  %v1331_v36 = vcombine.low %v1244_v28, %v1262_v34  ;;  %v1289_v0 = vld [vmem:[%s1554_s17 + $0x3c] sm:$0x1] }
  0x26   : > { %476 = vrot.lane.b32.xlu1 %v1451_v46, %s1515_s21  ;;  %474 = vrot.lane.b32.xlu0 %v1452_v49, %s1515_s21  ;;  %v193_v46 = vld [vmem:[%s1554_s17 + $0x24] sm:$0x1]  ;;  %v712_v49 = vshrl.u32 %v1351_v30, 16  ;;  %v1329_v30 = vcombine.low %v1242_v22, %v1260_v24  ;;  %v1330_v37 = vcombine.low %v1243_v29, %v1261_v35  ;;  %v1484_v39 = vld [vmem:[%s1554_s17 + $0x1d0] ss:$0 sps:$4 sm:$0xff]   ;;  %vm889_vm8 = vcmask 523264  }
  0x27   : > { %1395 = vmatprep.subr.bf16.mxu0 %v1502_v38  ;;  %1410 = vmatprep.subr.bf16.mxu1 %v1502_v38  ;;  %vm962_vm9 = vcmask 588800   ;;  %s1371_s10 = sshll.u32 %s1864_s9, 3  ;;  %vm1052_vm10 = vcmask 125952   ;;  %p161_p4 = scmp.lt.s32.totalorder %s1546_s13, 1  ;;  %vm1082_vm11 = vcmask 122880  }
  0x28   : > { %v717_v60 = vor.u32 %v716_v50, %v712_v49  ;;  %v550_v44 = vshrl.u32 %v1329_v30, 16  ;;  %v566_v50 = vshll.u32 %v1331_v36, 16  ;;  %s1817_s15 = scalar_lea.vmem %s1861_s2, %s1371_s10 }
  0x29   : > { %1396 = vmatpush3.bf16.msra.mxu0 %v1502_v38  ;;  %1415 = vmatpush3.bf16.msra.mxu1 %v1502_v38  ;;  %v1483_v38 = vld [vmem:[%s1554_s17 + $0x1d8] ss:$0 sps:$4 sm:$0xff]   ;;  %s1866_s13 = smov (!%p161_p4, %s1546_s13), 1 }
  0x2a   : > { %480 = vrot.lane.b32.xlu1 %v1453_v52, %s1515_s21  ;;  %478 = vrot.lane.b32.xlu0 %v1454_v55, %s1515_s21  ;;  %v709_v52 = vrot.slane %v707_v40, 1  ;;  %v1304_v55 = vcombine.low %v1649_v45, %v193_v46  ;;  %v552_v40 = vshll.u32 %v1329_v30, 16  ;;  %v568_v57 = vrot.slane %v566_v50, 1  ;;  %s1221_s16 = sshll.u32 %s1866_s13, 1 }
  0x2b   : > { %1397 = vmatprep.subr.bf16.mxu0 %v1503_v47  ;;  %1411 = vmatprep.subr.bf16.mxu1 %v1503_v47 }
  0x2c   : > { %v710_v61 = vor.u32 %v709_v52, %v705_v51  ;;  %v367_v5 = vshrl.u32 %v1304_v55, 16  ;;  %v559_v51 = vshll.u32 %v1330_v37, 16  ;;  %v564_v52 = vshrl.u32 %v1331_v36, 16 }
  0x2d   : > { %1398 = vmatpush3.bf16.msra.mxu0 %v1503_v47  ;;  %1416 = vmatpush3.bf16.msra.mxu1 %v1503_v47  ;;  %v1486_v47 = vld [vmem:[%s1554_s17 + $0x1e0] ss:$0 sps:$4 sm:$0xff]  }
  0x2e   : > { %572 = vrot.lane.b32.xlu1 %v527_v62, %s1516_s22  ;;  %570 = vrot.lane.b32.xlu0 %v520_v63, %s1516_s22  ;;  %v376_v62 = vshll.u32 %v1305_v54, 16  ;;  %v369_v63 = vshll.u32 %v1304_v55, 16  ;;  %v561_v59 = vrot.slane %v559_v51, 1 }
  0x30   : > { %v378_v8 = vrot.slane %v376_v62, 1  ;;  %v1270_v62 = vld [vmem:[%s1554_s17 + $0x38] sm:$0xf] }
  0x32   : > { %576 = vrot.lane.b32.xlu1 %v541_v2, %s1516_s22  ;;  %574 = vrot.lane.b32.xlu0 %v534_v3, %s1516_s22  ;;  %v1469_v2 = vld [vmem:[%s1554_s17 + $0xc8] ss:$0 sps:$4 sm:$0xff]   ;;  %v374_v3 = vshrl.u32 %v1305_v54, 16 }
  0x34   : > { %v379_v16 = vor.u32 %v378_v8, %v374_v3  ;;  %v1288_v3 = vld [vmem:[%s1554_s17 + $0x34] sm:$0x1]  ;;  %v1353_v8 = vcombine.low %v1270_v62, %v1289_v0 }
  0x36   : > { %612 = vrot.lane.b32.xlu1 %v1333_v9, %s1517_s23  ;;  %610 = vrot.lane.b32.xlu0 %v1332_v13, %s1517_s23  ;;  %v371_v9 = vrot.slane %v369_v63, 1  ;;  %v383_v13 = vshll.u32 %v1306_v1, 16  ;;  %v1269_v63 = vld [vmem:[%s1554_s17 + $0x30] sm:$0xf]  ;;  %v1337_v1 = vcombine.low %v1270_v62, %v1270_v62 }
  0x38   : > { %v372_v17 = vor.u32 %v371_v9, %v367_v5  ;;  %v1272_v5 = vld [vmem:[%s1554_s17 + $0x48] sm:$0xf]  ;;  %v1352_v9 = vcombine.low %v1269_v63, %v1288_v3 }
  0x3a   : > { %616 = vrot.lane.b32.xlu1 %v1335_v18, %s1517_s23  ;;  %614 = vrot.lane.b32.xlu0 %v1334_v19, %s1517_s23  ;;  %v392_v18 = vrot.slane %v390_v11, 1  ;;  %v385_v19 = vrot.slane %v383_v13, 1  ;;  %v1339_v11 = vcombine.low %v1272_v5, %v1272_v5  ;;  %v719_v24 = vshrl.u32 %v1352_v9, 16 }
  0x3c   : > { %v393_v20 = vor.u32 %v392_v18, %v388_v14  ;;  %v386_v21 = vor.u32 %v385_v19, %v381_v15  ;;  %v1291_v14 = vld [vmem:[%s1554_s17 + $0x4c] sm:$0x1]  ;;  %v1290_v15 = vld [vmem:[%s1554_s17 + $0x44] sm:$0x1]  ;;  %v1495_v18 = vld [vmem:[%s1554_s17 + $0xc8] ss:$0 sps:$4 sm:$0xff]  }
  0x3d   : > { %v1496_v19 = vld [vmem:[%s1554_s17 + $0xc0] ss:$0 sps:$4 sm:$0xff]  }
  0x3e   : > { %652 = vrot.lane.b32.xlu1 %v1463_v23, %s1518_s30  ;;  %650 = vrot.lane.b32.xlu0 %v1464_v25, %s1518_s30  ;;  %v1241_v23 = vld [vmem:[%s1554_s17 + $0x140] sm:$0xf]  ;;  %v1313_v25 = vcombine.low %v1242_v22, %v1242_v22  ;;  %v1497_v22 = vld [vmem:[%s1554_s17 + $0xd8] ss:$0 sps:$4 sm:$0xff]  }
  0x3f   : > { %v1312_v26 = vcombine.low %v1241_v23, %v1241_v23  ;;  %v1328_v31 = vcombine.low %v1241_v23, %v1259_v27  ;;  %v726_v23 = vshrl.u32 %v1353_v8, 16 }
  0x41   : > { %v543_v46 = vshrl.u32 %v1328_v31, 16 }
  0x42   : > { %656 = vrot.lane.b32.xlu1 %v1465_v32, %s1518_s30  ;;  %654 = vrot.lane.b32.xlu0 %v1466_v33, %s1518_s30  ;;  %v1315_v32 = vcombine.low %v1244_v28, %v1244_v28  ;;  %v1314_v33 = vcombine.low %v1243_v29, %v1243_v29 }
  0x46   : > { %748 = vrot.lane.b32.xlu1 %v703_v41, %s1519_s8  ;;  %746 = vrot.lane.b32.xlu0 %v696_v42, %s1519_s8  ;;  %v545_v41 = vshll.u32 %v1328_v31, 16  ;;  %v1485_v42 = vld [vmem:[%s1554_s17 + $0x1e8] ss:$0 sps:$4 sm:$0xff]  }
  0x48   : > { %v547_v49 = vrot.slane %v545_v41, 1 }
  0x4a   : > { %292 = vrot.lane.b32.xlu1 %v1467_v48, %s1512_s18  ;;  %290 = vrot.lane.b32.xlu0 %v1468_v53, %s1512_s18  ;;  %v554_v48 = vrot.slane %v552_v40, 1  ;;  %v557_v53 = vshrl.u32 %v1330_v37, 16  ;;  %v548_v55 = vor.u32 %v547_v49, %v543_v46 }
  0x4c   : > { %v555_v54 = vor.u32 %v554_v48, %v550_v44 }
  0x4e   : > { %752 = vrot.lane.b32.xlu1 %v717_v60, %s1519_s8  ;;  %750 = vrot.lane.b32.xlu0 %v710_v61, %s1519_s8  ;;  %v569_v60 = vor.u32 %v568_v57, %v564_v52  ;;  %v562_v61 = vor.u32 %v561_v59, %v557_v53 }
  0x52   : > { %296 = vrot.lane.b32.xlu1 %v1469_v2, %s1512_s18  ;;  %294 = vrot.lane.b32.xlu0 %v1470_v7, %s1512_s18  ;;  %v1336_v2 = vcombine.low %v1269_v63, %v1269_v63  ;;  %v1271_v7 = vld [vmem:[%s1554_s17 + $0x40] sm:$0xf] }
  0x53   : > { %v1338_v13 = vcombine.low %v1271_v7, %v1271_v7 }
  0x56   : > { %404 = vrot.lane.b32.xlu1 %v379_v16, %s1513_s19  ;;  %402 = vrot.lane.b32.xlu0 %v372_v17, %s1513_s19  ;;  %v1355_v16 = vcombine.low %v1272_v5, %v1291_v14  ;;  %v1354_v17 = vcombine.low %v1271_v7, %v1290_v15 }
  0x58   : > { %v742_v29 = vshll.u32 %v1355_v16, 16  ;;  %v735_v30 = vshll.u32 %v1354_v17, 16 }
  0x5a   : > { %408 = vrot.lane.b32.xlu1 %v393_v20, %s1513_s19  ;;  %406 = vrot.lane.b32.xlu0 %v386_v21, %s1513_s19  ;;  %v728_v20 = vshll.u32 %v1353_v8, 16  ;;  %v721_v21 = vshll.u32 %v1352_v9, 16  ;;  %v744_v37 = vrot.slane %v742_v29, 1  ;;  %s164_s19 = scalar_lea.vmem %s1862_s3, %s1221_s16 }
  0x5c   : > { %v730_v27 = vrot.slane %v728_v20, 1  ;;  %v723_v28 = vrot.slane %v721_v21, 1 }
  0x5e   : > { %444 = vrot.lane.b32.xlu1 %v1313_v25, %s1514_s20  ;;  %442 = vrot.lane.b32.xlu0 %v1312_v26, %s1514_s20  ;;  %v1498_v26 = vld [vmem:[%s1554_s17 + $0xd0] ss:$0 sps:$4 sm:$0xff]   ;;  %v731_v35 = vor.u32 %v730_v27, %v726_v23  ;;  %v724_v36 = vor.u32 %v723_v28, %v719_v24 }
  0x62   : > { %448 = vrot.lane.b32.xlu1 %v1315_v32, %s1514_s20  ;;  %446 = vrot.lane.b32.xlu0 %v1314_v33, %s1514_s20  ;;  %v740_v32 = vshrl.u32 %v1355_v16, 16  ;;  %v733_v33 = vshrl.u32 %v1354_v17, 16 }
  0x64   : > { %v745_v40 = vor.u32 %v744_v37, %v740_v32 }
  0x66   : > { %484 = vrot.lane.b32.xlu1 %v1483_v38, %s1515_s21  ;;  %482 = vrot.lane.b32.xlu0 %v1484_v39, %s1515_s21  ;;  %v737_v38 = vrot.slane %v735_v30, 1 }
  0x68   : > { %v738_v41 = vor.u32 %v737_v38, %v733_v33 }
  0x6a   : > { %488 = vrot.lane.b32.xlu1 %v1485_v42, %s1515_s21  ;;  %486 = vrot.lane.b32.xlu0 %v1486_v47, %s1515_s21 }
  0x6e   : > { %580 = vrot.lane.b32.xlu1 %v555_v54, %s1516_s22  ;;  %578 = vrot.lane.b32.xlu0 %v548_v55, %s1516_s22 }
  0x72   : > { %584 = vrot.lane.b32.xlu1 %v569_v60, %s1516_s22  ;;  %582 = vrot.lane.b32.xlu0 %v562_v61, %s1516_s22 }
  0x76   : > { %620 = vrot.lane.b32.xlu1 %v1337_v1, %s1517_s23  ;;  %618 = vrot.lane.b32.xlu0 %v1336_v2, %s1517_s23 }
  0x7a   : > { %624 = vrot.lane.b32.xlu1 %v1339_v11, %s1517_s23  ;;  %622 = vrot.lane.b32.xlu0 %v1338_v13, %s1517_s23 }
  0x7e   : > { %660 = vrot.lane.b32.xlu1 %v1495_v18, %s1518_s30  ;;  %658 = vrot.lane.b32.xlu0 %v1496_v19, %s1518_s30  ;;  %v1724_v25 = vpop.permute.xlu1 %286  ;;  %v283_v31 = vpop.permute.xlu0 %282 }
  0x7f   : > { %v765_v5 = vsel %vm762_vm1, %v1567_v6, %v283_v31  ;;  %v771_v27 = vsel %vm762_vm1, %v1577_v12, %v1724_v25 }
  0x82   : > { %664 = vrot.lane.b32.xlu1 %v1497_v22, %s1518_s30  ;;  %662 = vrot.lane.b32.xlu0 %v1498_v26, %s1518_s30  ;;  %v1729_v34 = vpop.permute.xlu1 %288  ;;  %v285_v39 = vpop.permute.xlu0 %284 }
  0x83   : > { %v768_v7 = vsel %vm762_vm1, %v1562_v4, %v285_v39  ;;  %v774_v28 = vsel %vm762_vm1, %v1573_v10, %v1729_v34 }
  0x86   : > { %756 = vrot.lane.b32.xlu1 %v731_v35, %s1519_s8  ;;  %754 = vrot.lane.b32.xlu0 %v724_v36, %s1519_s8 }
  0x88   : > { %v397_v42 = vpop.permute.xlu1 %396  ;;  %v395_v44 = vpop.permute.xlu0 %394 }
  0x89   : > { %v791_v8 = vsel %vm787_vm2, %v768_v7, %v397_v42  ;;  %v789_v9 = vsel %vm787_vm2, %v765_v5, %v395_v44 }
  0x8a   : > { %760 = vrot.lane.b32.xlu1 %v745_v40, %s1519_s8  ;;  %758 = vrot.lane.b32.xlu0 %v738_v41, %s1519_s8 }
  0x8c   : > { %v401_v46 = vpop.permute.xlu1 %400  ;;  %v399_v47 = vpop.permute.xlu0 %398 }
  0x8d   : > { %v795_v30 = vsel %vm787_vm2, %v774_v28, %v401_v46  ;;  %v793_v31 = vsel %vm787_vm2, %v771_v27, %v399_v47 }
  0x90   : > { %v437_v48 = vpop.permute.xlu1 %436  ;;  %v435_v49 = vpop.permute.xlu0 %434 }
  0x91   : > { %v808_v11 = vsel %vm804_vm3, %v791_v8, %v437_v48  ;;  %v806_v13 = vsel %vm804_vm3, %v789_v9, %v435_v49 }
  0x94   : > { %v441_v50 = vpop.permute.xlu1 %440  ;;  %v439_v51 = vpop.permute.xlu0 %438 }
  0x95   : > { %v812_v32 = vsel %vm804_vm3, %v795_v30, %v441_v50  ;;  %v810_v33 = vsel %vm804_vm3, %v793_v31, %v439_v51 }
  0x98   : > { %v477_v52 = vpop.permute.xlu1 %476  ;;  %v475_v53 = vpop.permute.xlu0 %474 }
  0x99   : > { %v825_v16 = vsel %vm821_vm4, %v808_v11, %v477_v52  ;;  %v823_v6 = vsel %vm821_vm4, %v806_v13, %v475_v53 }
  0x9c   : > { %v481_v54 = vpop.permute.xlu1 %480  ;;  %v479_v55 = vpop.permute.xlu0 %478 }
  0x9d   : > { %v829_v37 = vsel %vm821_vm4, %v812_v32, %v481_v54  ;;  %v827_v12 = vsel %vm821_vm4, %v810_v33, %v479_v55 }
  0xa0   : > { %v573_v57 = vpop.permute.xlu1 %572  ;;  %v571_v59 = vpop.permute.xlu0 %570 }
  0xa1   : > { %v842_v4 = vsel %vm838_vm5, %v825_v16, %v573_v57  ;;  %v840_v17 = vsel %vm838_vm5, %v823_v6, %v571_v59 }
  0xa4   : > { %v577_v60 = vpop.permute.xlu1 %576  ;;  %v575_v61 = vpop.permute.xlu0 %574 }
  0xa5   : > { %v846_v25 = vsel %vm838_vm5, %v829_v37, %v577_v60  ;;  %v844_v10 = vsel %vm838_vm5, %v827_v12, %v575_v61 }
  0xa8   : > { %v613_v62 = vpop.permute.xlu1 %612  ;;  %v611_v63 = vpop.permute.xlu0 %610 }
  0xa9   : > { %v859_v18 = vsel %vm855_vm6, %v842_v4, %v613_v62  ;;  %v857_v19 = vsel %vm855_vm6, %v840_v17, %v611_v63 }
  0xac   : > { %v617_v0 = vpop.permute.xlu1 %616  ;;  %v615_v1 = vpop.permute.xlu0 %614 }
  0xad   : > { %v863_v34 = vsel %vm855_vm6, %v846_v25, %v617_v0  ;;  %v861_v38 = vsel %vm855_vm6, %v844_v10, %v615_v1 }
  0xb0   : > { %v653_v2 = vpop.permute.xlu1 %652  ;;  %v651_v3 = vpop.permute.xlu0 %650 }
  0xb1   : > { %v876_v20 = vsel %vm872_vm7, %v859_v18, %v653_v2  ;;  %v874_v21 = vsel %vm872_vm7, %v857_v19, %v651_v3 }
  0xb4   : > { %v657_v14 = vpop.permute.xlu1 %656  ;;  %v655_v15 = vpop.permute.xlu0 %654 }
  0xb5   : > { %v880_v39 = vsel %vm872_vm7, %v863_v34, %v657_v14  ;;  %v878_v40 = vsel %vm872_vm7, %v861_v38, %v655_v15 }
  0xb8   : > { %v749_v22 = vpop.permute.xlu1 %748  ;;  %v747_v23 = vpop.permute.xlu0 %746 }
  0xb9   : > { %v893_v24 = vsel %vm889_vm8, %v876_v20, %v749_v22  ;;  %v891_v26 = vsel %vm889_vm8, %v874_v21, %v747_v23 }
  0xba   : > { %v1356_v29 = vcombine.low %v891_v26, %v893_v24 }
  0xbc   : > { %v293_v35 = vpop.permute.xlu1 %292  ;;  %1399 = vmatprep.mubr.msk.bf16.mxu0 %vm962_vm9, %v1356_v29  ;;  %v291_v36 = vpop.permute.xlu0 %290 }
  0xbd   : > { %v780_v14 = vsel %vm762_vm1, %v1645_v43, %v293_v35  ;;  %v777_v15 = vsel %vm762_vm1, %v1649_v45, %v291_v36 }
  0xc0   : > { %v753_v41 = vpop.permute.xlu1 %752  ;;  %v751_v42 = vpop.permute.xlu0 %750 }
  0xc1   : > { %v897_v44 = vsel %vm889_vm8, %v880_v39, %v753_v41  ;;  %v895_v46 = vsel %vm889_vm8, %v878_v40, %v751_v42 }
  0xc2   : > { %v1357_v47 = vcombine.low %v895_v46, %v897_v44 }
  0xc4   : > { %v297_v48 = vpop.permute.xlu1 %296  ;;  %1400 = vmatmul.mubr.msk.bf16.vlgmr.msra.gmra.mxu0 %vm962_vm9, %v1357_v47  ;;  %v295_v49 = vpop.permute.xlu0 %294 }
  0xc5   : > { %v786_v43 = vsel %vm762_vm1, %v1662_v56, %v297_v48  ;;  %v783_v45 = vsel %vm762_vm1, %v1666_v58, %v295_v49 }
  0xc8   : > { %v405_v50 = vpop.permute.xlu1 %404  ;;  %v403_v51 = vpop.permute.xlu0 %402 }
  0xc9   : > { %v799_v16 = vsel %vm787_vm2, %v780_v14, %v405_v50  ;;  %v797_v6 = vsel %vm787_vm2, %v777_v15, %v403_v51 }
  0xcc   : > { %v409_v52 = vpop.permute.xlu1 %408  ;;  %v407_v53 = vpop.permute.xlu0 %406 }
  0xcd   : > { %v803_v24 = vsel %vm787_vm2, %v786_v43, %v409_v52  ;;  %v801_v26 = vsel %vm787_vm2, %v783_v45, %v407_v53 }
  0xd0   : > { %v445_v54 = vpop.permute.xlu1 %444  ;;  %v443_v55 = vpop.permute.xlu0 %442 }
  0xd1   : > { %v816_v4 = vsel %vm804_vm3, %v799_v16, %v445_v54  ;;  %v814_v17 = vsel %vm804_vm3, %v797_v6, %v443_v55 }
  0xd4   : > { %v449_v57 = vpop.permute.xlu1 %448  ;;  %v447_v59 = vpop.permute.xlu0 %446 }
  0xd5   : > { %v820_v29 = vsel %vm804_vm3, %v803_v24, %v449_v57  ;;  %v818_v30 = vsel %vm804_vm3, %v801_v26, %v447_v59 }
  0xd8   : > { %v485_v60 = vpop.permute.xlu1 %484  ;;  %v483_v61 = vpop.permute.xlu0 %482 }
  0xd9   : > { %v833_v20 = vsel %vm821_vm4, %v816_v4, %v485_v60  ;;  %v831_v21 = vsel %vm821_vm4, %v814_v17, %v483_v61 }
  0xdc   : > { %v489_v62 = vpop.permute.xlu1 %488  ;;  %v487_v63 = vpop.permute.xlu0 %486 }
  0xdd   : > { %v837_v33 = vsel %vm821_vm4, %v820_v29, %v489_v62  ;;  %v835_v35 = vsel %vm821_vm4, %v818_v30, %v487_v63 }
  0xe0   : > { %v581_v0 = vpop.permute.xlu1 %580  ;;  %v579_v1 = vpop.permute.xlu0 %578 }
  0xe1   : > { %v850_v22 = vsel %vm838_vm5, %v833_v20, %v581_v0  ;;  %v848_v23 = vsel %vm838_vm5, %v831_v21, %v579_v1 }
  0xe4   : > { %v585_v2 = vpop.permute.xlu1 %584  ;;  %v583_v3 = vpop.permute.xlu0 %582 }
  0xe5   : > { %v854_v12 = vsel %vm838_vm5, %v837_v33, %v585_v2  ;;  %v852_v25 = vsel %vm838_vm5, %v835_v35, %v583_v3 }
  0xe8   : > { %v621_v5 = vpop.permute.xlu1 %620  ;;  %v619_v7 = vpop.permute.xlu0 %618 }
  0xe9   : > { %v867_v27 = vsel %vm855_vm6, %v850_v22, %v621_v5  ;;  %v865_v28 = vsel %vm855_vm6, %v848_v23, %v619_v7 }
  0xec   : > { %v625_v8 = vpop.permute.xlu1 %624  ;;  %v623_v9 = vpop.permute.xlu0 %622 }
  0xed   : > { %v871_v34 = vsel %vm855_vm6, %v854_v12, %v625_v8  ;;  %v869_v38 = vsel %vm855_vm6, %v852_v25, %v623_v9 }
  0xf0   : > { %v661_v11 = vpop.permute.xlu1 %660  ;;  %v659_v13 = vpop.permute.xlu0 %658 }
  0xf1   : > { %v884_v56 = vsel %vm872_vm7, %v867_v27, %v661_v11  ;;  %v882_v58 = vsel %vm872_vm7, %v865_v28, %v659_v13 }
  0xf4   : > { %v665_v18 = vpop.permute.xlu1 %664  ;;  %v663_v19 = vpop.permute.xlu0 %662 }
  0xf5   : > { %v888_v39 = vsel %vm872_vm7, %v871_v34, %v665_v18  ;;  %v886_v40 = vsel %vm872_vm7, %v869_v38, %v663_v19 }
  0xf8   : > { %v757_v31 = vpop.permute.xlu1 %756  ;;  %v755_v32 = vpop.permute.xlu0 %754 }
  0xf9   : > { %v901_v36 = vsel %vm889_vm8, %v884_v56, %v757_v31  ;;  %v899_v37 = vsel %vm889_vm8, %v882_v58, %v755_v32 }
  0xfa   : > { %v1358_v10 = vcombine.low %v899_v37, %v901_v36 }
  0xfc   : > { %v761_v41 = vpop.permute.xlu1 %760  ;;  %1403 = vmatprep.mubr.msk.bf16.mxu1 %vm962_vm9, %v1358_v10  ;;  %v759_v42 = vpop.permute.xlu0 %758 }
  0xfd   : > { %v905_v44 = vsel %vm889_vm8, %v888_v39, %v761_v41  ;;  %v903_v46 = vsel %vm889_vm8, %v886_v40, %v759_v42 }
  0xfe   : > { %v1359_v47 = vcombine.low %v903_v46, %v905_v44 }
 0x100   : > { %1404 = vmatmul.mubr.msk.bf16.vlgmr.msra.gmra.mxu1 %vm962_vm9, %v1359_v47 }
 0x184   : > { %v1401_v48 = vpop.f32.mrf.mxu0 }
 0x185   : > { %v1046_v51 = vpack.c.bf16 %v1401_v48, %v1401_v48  ;;  %v1086_v0 = vmul.f32 %v1401_v48, %v1401_v48  ;;  %v1064_v3 = vsel %vm787_vm2, %v1401_v48, 0.0 }
 0x186   : > { %v1013_v49 = vpop.f32.mrf.mxu0 }
 0x187   : > { %v1044_v50 = vpack.c.bf16 %v1013_v49, %v1013_v49  ;;  %1055 = vst.msk [vmem:[%s1817_s15 + $0x8] sm:$0xf] %vm1052_vm10, %v1046_v51  ;;  %v1084_v59 = vmul.f32 %v1013_v49, %v1013_v49  ;;  %v1061_v61 = vsel %vm787_vm2, %v1013_v49, 0.0  ;;  %v1095_v8 = vsel %vm787_vm2, %v1086_v0, 0.0 }
 0x188   : > { %v1402_v52 = vpop.f32.mrf.mxu0 }
 0x189   : > { %1053 = vst.msk [vmem:[%s1817_s15] sm:$0xf] %vm1052_vm10, %v1044_v50  ;;  %v1047_v55 = vpack.c.bf16 %v1402_v52, %v1402_v52  ;;  %v1092_v1 = vsel %vm787_vm2, %v1084_v59, 0.0  ;;  %v1087_v9 = vmul.f32 %v1402_v52, %v1402_v52  ;;  %v1066_v14 = vsel %vm787_vm2, %v1402_v52, 0.0 }
 0x18a   : > { %v1016_v53 = vpop.f32.mrf.mxu0 }
 0x18b   : > { %v1045_v54 = vpack.c.bf16 %v1016_v53, %v1016_v53  ;;  %1056 = vst.msk [vmem:[%s1817_s15 + $0xc] sm:$0xf] %vm1052_vm10, %v1047_v55  ;;  %v1085_v57 = vmul.f32 %v1016_v53, %v1016_v53  ;;  %v1062_v60 = vsel %vm787_vm2, %v1016_v53, 0.0  ;;  %v1097_v19 = vsel %vm787_vm2, %v1087_v9, 0.0 }
 0x18c   : > { %v1063_v63 = vadd.f32 %v1062_v60, %v1061_v61 }
 0x18d   : > { %1054 = vst.msk [vmem:[%s1817_s15 + $0x4] sm:$0xf] %vm1052_vm10, %v1045_v54  ;;  %v1093_v62 = vsel %vm787_vm2, %v1085_v57, 0.0 }
 0x18e   : > { %v1094_v2 = vadd.f32 %v1093_v62, %v1092_v1  ;;  %v1065_v5 = vadd.f32 %v1064_v3, %v1063_v63 }
 0x190   : > { %v1096_v11 = vadd.f32 %v1095_v8, %v1094_v2  ;;  %v1067_v17 = vadd.f32 %v1066_v14, %v1065_v5 }
 0x192   : > { %v1098_v43 = vadd.f32 %v1097_v19, %v1096_v11 }
 0x1c0   : > { %v1405_v7 = vpop.f32.mrf.mxu1 }
 0x1c1   : > { %v1050_v4 = vpack.c.bf16 %v1405_v7, %v1405_v7  ;;  %v1090_v22 = vmul.f32 %v1405_v7, %v1405_v7  ;;  %v1072_v30 = vsel %vm787_vm2, %v1405_v7, 0.0 }
 0x1c2   : > { %v1029_v13 = vpop.f32.mrf.mxu1 }
 0x1c3   : > { %v1048_v15 = vpack.c.bf16 %v1029_v13, %v1029_v13  ;;  %v1068_v16 = vsel %vm787_vm2, %v1029_v13, 0.0  ;;  %v1088_v6 = vmul.f32 %v1029_v13, %v1029_v13  ;;  %1059 = vst.msk [vmem:[%s1817_s15 + $0x18] sm:$0xf] %vm1052_vm10, %v1050_v4  ;;  %v1103_v33 = vsel %vm787_vm2, %v1090_v22, 0.0 }
 0x1c4   : > { %v1406_v18 = vpop.f32.mrf.mxu1  ;;  %v1069_v21 = vadd.f32 %v1068_v16, %v1067_v17 }
 0x1c5   : > { %1057 = vst.msk [vmem:[%s1817_s15 + $0x10] sm:$0xf] %vm1052_vm10, %v1048_v15  ;;  %v1099_v20 = vsel %vm787_vm2, %v1088_v6, 0.0  ;;  %v1051_v28 = vpack.c.bf16 %v1406_v18, %v1406_v18  ;;  %v1091_v56 = vmul.f32 %v1406_v18, %v1406_v18  ;;  %v1074_v35 = vsel %vm787_vm2, %v1406_v18, 0.0 }
 0x1c6   : > { %v1032_v45 = vpop.f32.mrf.mxu1  ;;  %v1100_v27 = vadd.f32 %v1099_v20, %v1098_v43 }
 0x1c7   : > { %v1049_v23 = vpack.c.bf16 %v1032_v45, %v1032_v45  ;;  %v1070_v24 = vsel %vm787_vm2, %v1032_v45, 0.0  ;;  %v1089_v26 = vmul.f32 %v1032_v45, %v1032_v45  ;;  %1060 = vst.msk [vmem:[%s1817_s15 + $0x1c] sm:$0xf] %vm1052_vm10, %v1051_v28  ;;  %v1105_v12 = vsel %vm787_vm2, %v1091_v56, 0.0 }
 0x1c8   : > { %v1071_v29 = vadd.f32 %v1070_v24, %v1069_v21 }
 0x1c9   : > { %1058 = vst.msk [vmem:[%s1817_s15 + $0x14] sm:$0xf] %vm1052_vm10, %v1049_v23  ;;  %v1101_v58 = vsel %vm787_vm2, %v1089_v26, 0.0 }
 0x1ca   : > { %v1073_v31 = vadd.f32 %v1072_v30, %v1071_v29  ;;  %v1102_v32 = vadd.f32 %v1101_v58, %v1100_v27 }
 0x1cc   : > { %v1075_v36 = vadd.f32 %v1074_v35, %v1073_v31  ;;  %v1104_v37 = vadd.f32 %v1103_v33, %v1102_v32 }
 0x1ce   : > { %v1076_v25 = vrot.slane %v1075_v36, 4  ;;  %v1106_v10 = vadd.f32 %v1105_v12, %v1104_v37 }
 0x1d0   : > { %v1077_v34 = vadd.f32 %v1076_v25, %v1075_v36  ;;  %v1107_v38 = vrot.slane %v1106_v10, 4 }
 0x1d2   : > { %v1078_v39 = vrot.slane %v1077_v34, 2  ;;  %v1108_v40 = vadd.f32 %v1107_v38, %v1106_v10 }
 0x1d4   : > { %v1079_v41 = vadd.f32 %v1078_v39, %v1077_v34  ;;  %v1109_v42 = vrot.slane %v1108_v40, 2 }
 0x1d6   : > { %v1080_v44 = vrot.slane %v1079_v41, 1  ;;  %v1110_v46 = vadd.f32 %v1109_v42, %v1108_v40 }
 0x1d8   : > { %v1081_v47 = vadd.f32 %v1080_v44, %v1079_v41  ;;  %v1111_v48 = vrot.slane %v1110_v46, 1 }
 0x1da   : > { %1083 = vst.msk [vmem:[%s164_s19] sm:$0x1] %vm1082_vm11, %v1081_v47  ;;  %v1112_v49 = vadd.f32 %v1111_v48, %v1110_v46 }
 0x1dc   : > { %1113 = vst.msk [vmem:[%s164_s19 + $0x1] sm:$0x1] %vm1082_vm11, %v1112_v49 }
 0x1dd PF: > { %s14_s12 = sadd.s32 1, %s1510_s12  }
 0x1de   : > { %p11_p5 = scmp.ge.s32.totalorder %s14_s12, 4  }
 0x1e0   :  { %13 = sbr.rel (!%p11_p5) target bundleno = 1 (0x1), region = 73 }

// kernel: mlc_forward.5
= control target key start
LH: loop header
LB: loop body
LE: loop exit
PB: predicated region body
PF: predicated region fallthrough
CT: control target
= control target key end

     0   :  { %s3417_s12 = smov 0   ;;  %s4669_s0 = inlined_call_operand.vmem [shape: bf16[1,18,2,18,4], index: 0, kind: input, shape index: {}]   ;;  %s4670_s1 = inlined_call_operand.vmem [shape: bf16[36,8], index: 1, kind: input, shape index: {}]   ;;  %s4671_s2 = inlined_call_operand.vmem [shape: bf16[16,2,16,8], index: 2, kind: output, shape index: {0}]   ;;  %s4672_s3 = inlined_call_operand.vmem [shape: f32[2,2,8], index: 3, kind: output, shape index: {1}]  }
   0x1 LB: > { %s3423_s13 = sadd.s32 4294967295, %s3387_s12   ;;  %p2782_p0 = scmp.ge.s32.totalorder %s3387_s12, 1  ;;  %s3387_s12 = sphi %s3417_s12, %s14_s12  }
   0x2   : > { %p130_p1 = scmp.lt.s32.totalorder %s3387_s12, 3 }
   0x4   : > { %p131_p2 = pnand %p2782_p0, %p130_p1 }
   0x5   : > { %s3120_s14 = smul.u32 (!%p131_p2), 192, %s3423_s13  ;;  %s3389_s18 = smov (!%p131_p2), 12  }
   0x6   : > { %134 = sbr.rel (%p131_p2) target bundleno = 611 (0x263), region = 28  ;;  %s3390_s19 = smov (!%p131_p2), 8  }
   0x7   : > { %s3431_s17 = scalar_lea.vmem (!%p131_p2), %s4669_s0, %s3120_s14  ;;  %s3391_s20 = smov (!%p131_p2), 4  }
   0x8   : > { %s3392_s21 = smov (!%p131_p2), 16   ;;  %s3393_s22 = smov (!%p131_p2), 20  }
   0x9   : > { %s3394_s23 = smov (!%p131_p2), 24   ;;  %s3395_s24 = smov (!%p131_p2), 28  }
   0xa   : > { %s3396_s25 = smov (!%p131_p2), 32   ;;  %s2783_s5 = sshll.u32 (!%p131_p2), %s3423_s13, 3 }
   0xb   : > { %v2794_v0 = vld [vmem:[%s3431_s17 + $0x24] sm:$0xf]  ;;  %v3435_v1 = vld [vmem:[%s3431_s17 + $0x28] sm:$0xf]  ;;  %vm771_vm0 = vcmask 1046528   ;;  %vm2193_vm2 = vcmask 1041408  }
   0xc   : > { %v2971_v2 = vcombine.low %v2794_v0, %v3435_v1  ;;  %v2792_v3 = vld [vmem:[%s3431_s17 + $0x18] sm:$0xf]  ;;  %v3440_v4 = vld [vmem:[%s3431_s17 + $0x1c] sm:$0xf]  ;;  %vm498_vm1 = vsmask.f32 7424 }
   0xd   : > { %v2970_v5 = vcombine.low %v2792_v3, %v3440_v4  ;;  %v171_v6 = vld [vmem:[%s3431_s17 + $0x4] sm:$0xf]  ;;  %v218_v7 = vld [vmem:[%s3431_s17] sm:$0xe]  ;;  %v172_v15 = vld [vmem:[%s3431_s17 + $0xc] sm:$0xf] }
   0xe   : > { %v2841_v8 = vld [vmem:[%s3431_s17 + $0x24] sm:$0xe]  ;;  %934 = vrot.lane.b32.xlu1 %v2971_v2, %s3389_s18  ;;  %v1027_v9 = vshll.u32 %v2971_v2, 16  ;;  %v3238_v10 = vld [vmem:[%s3431_s17 + $0x8] ss:$0 sps:$4 sm:$0x11]   ;;  %v2954_v11 = vcombine.low %v218_v7, %v171_v6 }
   0xf   : > { %v170_v12 = vld [vmem:[%s3431_s17] sm:$0xf]  ;;  %932 = vrot.lane.b32.xlu0 %v2970_v5, %s3389_s18  ;;  %v1015_v13 = vshll.u32 %v2970_v5, 16  ;;  %v173_v16 = vld [vmem:[%s3431_s17 + $0x10] sm:$0xf]  ;;  %v1025_v17 = vshrl.u32 %v2971_v2, 16  ;;  %v3003_v30 = vcombine.low %v2841_v8, %v3435_v1 }
  0x10   : > { %v3450_v14 = vcombine.low %v170_v12, %v171_v6  ;;  %v772_v18 = vrot.slane %v2954_v11, 1  ;;  %v773_v19 = vrot.slane %v3238_v10, 1  ;;  %v507_v20 = vshll.u32 %v3238_v10, 16  ;;  %v219_v24 = vld [vmem:[%s3431_s17 + $0xc] sm:$0xe]  ;;  %p155_p3 = scmp.lt.s32.totalorder %s2783_s5, 15 }
  0x11   : > { %v3454_v21 = vcombine.low %v172_v15, %v173_v16  ;;  %v3242_v27 = vld [vmem:[%s3431_s17 + $0x14] ss:$0 sps:$4 sm:$0x11]   ;;  %v2955_v28 = vcombine.low %v219_v24, %v173_v16  ;;  %v2840_v31 = vld [vmem:[%s3431_s17 + $0x18] sm:$0xe]  ;;  %v1029_v35 = vrot.slane %v1027_v9, 1 }
  0x12   : > { %v500_v22 = vshrl.u32 %v3450_v14, 16  ;;  %v502_v23 = vshll.u32 %v3450_v14, 16  ;;  %v774_v25 = vsel %vm771_vm0, %v772_v18, %v773_v19  ;;  %v509_v26 = vrot.slane %v507_v20, 1  ;;  %v3244_v34 = vld [vmem:[%s3431_s17 + $0x2c] ss:$0 sps:$4 sm:$0x11]  }
  0x13   : > { %v512_v29 = vshrl.u32 %v3454_v21, 16  ;;  %820 = vrot.lane.b32.xlu1 %v774_v25, %s3390_s19  ;;  %v514_v33 = vshll.u32 %v3454_v21, 16  ;;  %v775_v36 = vrot.slane %v2955_v28, 1  ;;  %v776_v37 = vrot.slane %v3242_v27, 1  ;;  %v2860_v48 = vld [vmem:[%s3431_s17 + $0x3c] sm:$0xf] }
  0x14   : > { %v504_v32 = vrot.slane %v502_v23, 1  ;;  %v519_v38 = vshll.u32 %v3242_v27, 16  ;;  %v1013_v39 = vshrl.u32 %v2970_v5, 16  ;;  %v1030_v42 = vor.u32 %v1029_v35, %v1025_v17  ;;  %v3245_v44 = vld [vmem:[%s3431_s17 + $0x20] ss:$0 sps:$4 sm:$0x11]  }
  0x15   : > { %v516_v41 = vrot.slane %v514_v33, 1  ;;  %v1032_v43 = vshll.u32 %v3244_v34, 16  ;;  %v777_v45 = vsel %vm771_vm0, %v775_v36, %v776_v37  ;;  %v1017_v47 = vrot.slane %v1015_v13, 1  ;;  %v3473_v53 = vld [vmem:[%s3431_s17 + $0x40] sm:$0xf]  ;;  %s4674_s5 = smov (!%p155_p3, %s2783_s5), 15 }
  0x16   : > { %v505_v40 = vor.u32 %v504_v32, %v500_v22  ;;  %v521_v46 = vrot.slane %v519_v38, 1  ;;  %v1020_v52 = vshll.u32 %v3245_v44, 16  ;;  %v3002_v54 = vcombine.low %v2840_v31, %v3440_v4  ;;  %v2858_v58 = vld [vmem:[%s3431_s17 + $0x30] sm:$0xf]  ;;  %v3482_v63 = vld [vmem:[%s3431_s17 + $0x34] sm:$0xf] }
  0x17   : > { %822 = vrot.lane.b32.xlu1 %v777_v45, %s3390_s19  ;;  %v517_v50 = vor.u32 %v516_v41, %v512_v29  ;;  %v1034_v51 = vrot.slane %v1032_v43, 1  ;;  %v1018_v55 = vor.u32 %v1017_v47, %v1013_v39  ;;  %v1287_v56 = vrot.slane %v3003_v30, 1  ;;  %v3486_v1 = vld [vmem:[%s3431_s17 + $0x44] ss:$0 sps:$4 sm:$0x11]   ;;  %s3119_s6 = sshll.u32 %s4674_s5, 4 }
  0x18   : > { %v510_v49 = vsel %vm498_vm1, %v505_v40, %v509_v26  ;;  %v1288_v57 = vrot.slane %v3244_v34, 1  ;;  %v1022_v61 = vrot.slane %v1020_v52, 1  ;;  %v3019_v62 = vcombine.low %v2860_v48, %v3473_v53  ;;  %v174_v4 = vld [vmem:[%s3431_s17 + $0x18] sm:$0xf]  ;;  %v3498_v13 = vld [vmem:[%s3431_s17 + $0x1c] sm:$0xf]  ;;  %s4509_s9 = scalar_lea.vmem %s4671_s2, %s3119_s6 }
  0x19   : > { %691 = vrot.lane.b32.xlu0 %v510_v49, %s3391_s20  ;;  %v522_v59 = vsel %vm498_vm1, %v517_v50, %v521_v46  ;;  %v1035_v60 = vsel %vm498_vm1, %v1030_v42, %v1034_v51  ;;  %v3018_v0 = vcombine.low %v2858_v58, %v3482_v63  ;;  %v1284_v6 = vrot.slane %v3002_v54, 1  ;;  %v3494_v9 = vld [vmem:[%s3431_s17 + $0x38] ss:$0 sps:$4 sm:$0x11]   ;;  %v176_v19 = vld [vmem:[%s3431_s17 + $0x24] sm:$0xf] }
  0x1a   : > { %v1539_v2 = vshll.u32 %v3019_v62, 16  ;;  %v1537_v3 = vshrl.u32 %v3019_v62, 16  ;;  %v1289_v5 = vsel %vm771_vm0, %v1287_v56, %v1288_v57  ;;  %v1285_v7 = vrot.slane %v3245_v44, 1  ;;  %v3504_v16 = vld [vmem:[%s3431_s17 + $0x20] ss:$0 sps:$4 sm:$0x11]  }
  0x1b   : > { %1206 = vrot.lane.b32.xlu1 %v1035_v60, %s3392_s21  ;;  %v1544_v8 = vshll.u32 %v3486_v1, 16  ;;  %v1023_v10 = vsel %vm498_vm1, %v1018_v55, %v1022_v61  ;;  %v1527_v11 = vshll.u32 %v3018_v0, 16  ;;  %v3501_v15 = vcombine.low %v174_v4, %v3498_v13  ;;  %v177_v20 = vld [vmem:[%s3431_s17 + $0x28] sm:$0xf]  ;;  %v2906_v31 = vld [vmem:[%s3431_s17 + $0x30] sm:$0xe] }
  0x1c   : > { %v1541_v12 = vrot.slane %v1539_v2, 1  ;;  %v1286_v22 = vsel %vm771_vm0, %v1284_v6, %v1285_v7  ;;  %v1525_v23 = vshrl.u32 %v3018_v0, 16  ;;  %v1532_v27 = vshll.u32 %v3494_v9, 16  ;;  %v3255_v30 = vld [vmem:[%s3431_s17 + $0x2c] ss:$0 sps:$4 sm:$0x11]  }
  0x1d   : > { %693 = vrot.lane.b32.xlu0 %v522_v59, %s3391_s20  ;;  %v1546_v18 = vrot.slane %v1544_v8, 1  ;;  %v524_v24 = vshrl.u32 %v3501_v15, 16  ;;  %v526_v25 = vshll.u32 %v3501_v15, 16  ;;  %v1529_v26 = vrot.slane %v1527_v11, 1  ;;  %v2907_v33 = vld [vmem:[%s3431_s17 + $0x3c] sm:$0xe] }
  0x1e   : > { %v1542_v17 = vor.u32 %v1541_v12, %v1537_v3  ;;  %v531_v28 = vshll.u32 %v3504_v16, 16  ;;  %v3515_v29 = vcombine.low %v176_v19, %v177_v20  ;;  %v543_v39 = vshll.u32 %v3255_v30, 16  ;;  %v221_v40 = vld [vmem:[%s3431_s17 + $0x24] sm:$0xe]  ;;  %v2798_v45 = vld [vmem:[%s3431_s17 + $0x3c] sm:$0xf] }
  0x1f   : > { %1334 = vrot.lane.b32.xlu1 %v1289_v5, %s3393_s22  ;;  %v528_v32 = vrot.slane %v526_v25, 1  ;;  %v3050_v41 = vcombine.low %v2906_v31, %v3482_v63  ;;  %v1530_v42 = vor.u32 %v1529_v26, %v1525_v23  ;;  %v1534_v43 = vrot.slane %v1532_v27, 1  ;;  %v3529_v46 = vld [vmem:[%s3431_s17 + $0x40] sm:$0xf]  ;;  %v220_v57 = vld [vmem:[%s3431_s17 + $0x18] sm:$0xe] }
  0x20   : > { %v1547_v34 = vsel %vm498_vm1, %v1542_v17, %v1546_v18  ;;  %v538_v35 = vshll.u32 %v3515_v29, 16  ;;  %v533_v37 = vrot.slane %v531_v28, 1  ;;  %v536_v38 = vshrl.u32 %v3515_v29, 16  ;;  %v3541_v58 = vld [vmem:[%s3431_s17 + $0x34] sm:$0xf]  ;;  %p161_p4 = scmp.lt.s32.totalorder %s3423_s13, 1 }
  0x21   : > { %1204 = vrot.lane.b32.xlu0 %v1023_v10, %s3392_s21  ;;  %v529_v36 = vor.u32 %v528_v32, %v524_v24  ;;  %v3051_v47 = vcombine.low %v2907_v33, %v3473_v53  ;;  %v2957_v48 = vcombine.low %v221_v40, %v177_v20  ;;  %v545_v51 = vrot.slane %v543_v39, 1  ;;  %v2796_v53 = vld [vmem:[%s3431_s17 + $0x30] sm:$0xf]  ;;  %v2843_v6 = vld [vmem:[%s3431_s17 + $0x3c] sm:$0xe] }
  0x22   : > { %v540_v44 = vrot.slane %v538_v35, 1  ;;  %v2973_v52 = vcombine.low %v2798_v45, %v3529_v46  ;;  %v1535_v54 = vsel %vm498_vm1, %v1530_v42, %v1534_v43  ;;  %v1796_v55 = vrot.slane %v3050_v41, 1  ;;  %v2864_v8 = vld [vmem:[%s3431_s17 + $0x54] sm:$0xf]  ;;  %v2842_v23 = vld [vmem:[%s3431_s17 + $0x30] sm:$0xe] }
  0x23   : > { %1446 = vrot.lane.b32.xlu1 %v3019_v62, %s3394_s23  ;;  %v534_v49 = vsel %vm498_vm1, %v529_v36, %v533_v37  ;;  %v1797_v56 = vrot.slane %v3494_v9, 1  ;;  %v1799_v59 = vrot.slane %v3051_v47, 1  ;;  %v781_v60 = vrot.slane %v2957_v48, 1  ;;  %v3263_v19 = vld [vmem:[%s3431_s17 + $0x38] ss:$0 sps:$4 sm:$0x11]  }
  0x24   : > { %v541_v50 = vor.u32 %v540_v44, %v536_v38  ;;  %v782_v61 = vrot.slane %v3255_v30, 1  ;;  %v1051_v63 = vshll.u32 %v2973_v52, 16  ;;  %v1800_v3 = vrot.slane %v3486_v1, 1  ;;  %v3557_v1 = vld [vmem:[%s3431_s17 + $0x58] sm:$0xf]  ;;  %s4676_s13 = smov (!%p161_p4, %s3423_s13), 1 }
  0x25   : > { %1332 = vrot.lane.b32.xlu0 %v1286_v22, %s3393_s22  ;;  %v1798_v2 = vsel %vm771_vm0, %v1796_v55, %v1797_v56  ;;  %v2956_v4 = vcombine.low %v220_v57, %v3498_v13  ;;  %v2972_v5 = vcombine.low %v2796_v53, %v3541_v58  ;;  %v1049_v7 = vshrl.u32 %v2973_v52, 16  ;;  %v2862_v27 = vld [vmem:[%s3431_s17 + $0x48] sm:$0xf]  ;;  %v178_v31 = vld [vmem:[%s3431_s17 + $0x30] sm:$0xf]  ;;  %s2786_s10 = sshll.u32 %s4676_s13, 1 }
  0x26   : > { %v546_v62 = vsel %vm498_vm1, %v541_v50, %v545_v51  ;;  %v783_v9 = vsel %vm771_vm0, %v781_v60, %v782_v61  ;;  %v1053_v10 = vrot.slane %v1051_v63, 1  ;;  %v1801_v12 = vsel %vm771_vm0, %v1799_v59, %v1800_v3  ;;  %v3571_v32 = vld [vmem:[%s3431_s17 + $0x34] sm:$0xf]  ;;  %v2863_v33 = vld [vmem:[%s3431_s17 + $0x4c] sm:$0xf]  ;;  %s164_s15 = scalar_lea.vmem %s4672_s3, %s2786_s10 }
  0x27   : > { %1718 = vrot.lane.b32.xlu1 %v1547_v34, %s3395_s24  ;;  %v778_v13 = vrot.slane %v2956_v4, 1  ;;  %v779_v17 = vrot.slane %v3504_v16, 1  ;;  %v1039_v18 = vshll.u32 %v2972_v5, 16  ;;  %v3021_v20 = vcombine.low %v2864_v8, %v3557_v1  ;;  %v3575_v34 = vld [vmem:[%s3431_s17 + $0x5c] ss:$0 sps:$4 sm:$0x11]  }
  0x28   : > { %v3005_v22 = vcombine.low %v2843_v6, %v3529_v46  ;;  %v1054_v24 = vor.u32 %v1053_v10, %v1049_v7  ;;  %v1037_v26 = vshrl.u32 %v2972_v5, 16  ;;  %v1044_v30 = vshll.u32 %v3263_v19, 16  ;;  %v180_v44 = vld [vmem:[%s3431_s17 + $0x3c] sm:$0xf]  ;;  %v3586_v45 = vld [vmem:[%s3431_s17 + $0x40] sm:$0xf] }
  0x29   : > { %1444 = vrot.lane.b32.xlu0 %v3018_v0, %s3394_s23  ;;  %v3262_v0 = vld [vmem:[%s3431_s17 + $0x44] ss:$0 sps:$4 sm:$0x11]   ;;  %v780_v16 = vsel %vm771_vm0, %v778_v13, %v779_v17  ;;  %v1041_v28 = vrot.slane %v1039_v18, 1  ;;  %v1563_v35 = vshll.u32 %v3021_v20, 16  ;;  %v3581_v39 = vcombine.low %v178_v31, %v3571_v32 }
  0x2a   : > { %v1056_v11 = vshll.u32 %v3262_v0, 16  ;;  %v1293_v37 = vrot.slane %v3005_v22, 1  ;;  %v1294_v38 = vrot.slane %v3262_v0, 1  ;;  %v3004_v40 = vcombine.low %v2842_v23, %v3541_v58  ;;  %v3269_v53 = vld [vmem:[%s3431_s17 + $0x50] ss:$0 sps:$4 sm:$0x11]  }
  0x2b   : > { %695 = vrot.lane.b32.xlu1 %v534_v49, %s3391_s20  ;;  %v1042_v41 = vor.u32 %v1041_v28, %v1037_v26  ;;  %v1046_v42 = vrot.slane %v1044_v30, 1  ;;  %v3020_v43 = vcombine.low %v2862_v27, %v2863_v33  ;;  %v1561_v46 = vshrl.u32 %v3021_v20, 16  ;;  %v3591_v49 = vld [vmem:[%s3431_s17 + $0x38] ss:$0 sps:$4 sm:$0x11]  }
  0x2c   : > { %v1058_v25 = vrot.slane %v1056_v11, 1  ;;  %v1568_v47 = vshll.u32 %v3575_v34, 16  ;;  %v1565_v48 = vrot.slane %v1563_v35, 1  ;;  %v1295_v50 = vsel %vm771_vm0, %v1293_v37, %v1294_v38  ;;  %v2908_v58 = vld [vmem:[%s3431_s17 + $0x48] sm:$0xe] }
  0x2d   : > { %1716 = vrot.lane.b32.xlu0 %v1535_v54, %s3395_s24  ;;  %v550_v51 = vshll.u32 %v3581_v39, 16  ;;  %v1047_v54 = vsel %vm498_vm1, %v1042_v41, %v1046_v42  ;;  %v1290_v55 = vrot.slane %v3004_v40, 1  ;;  %v1291_v56 = vrot.slane %v3263_v19, 1  ;;  %v223_v10 = vld [vmem:[%s3431_s17 + $0x3c] sm:$0xe] }
  0x2e   : > { %v1059_v36 = vsel %vm498_vm1, %v1054_v24, %v1058_v25  ;;  %v1551_v57 = vshll.u32 %v3020_v43, 16  ;;  %v1566_v59 = vor.u32 %v1565_v48, %v1561_v46  ;;  %v1570_v60 = vrot.slane %v1568_v47, 1  ;;  %v2802_v22 = vld [vmem:[%s3431_s17 + $0x54] sm:$0xf]  ;;  %v3616_v23 = vld [vmem:[%s3431_s17 + $0x58] sm:$0xf] }
  0x2f   : > { %697 = vrot.lane.b32.xlu1 %v546_v62, %s3391_s20  ;;  %v555_v61 = vshll.u32 %v3591_v49, 16  ;;  %v3273_v62 = vld [vmem:[%s3431_s17 + $0x44] ss:$0 sps:$4 sm:$0x11]   ;;  %v548_v63 = vshrl.u32 %v3581_v39, 16  ;;  %v552_v0 = vrot.slane %v550_v51, 1  ;;  %v1292_v3 = vsel %vm771_vm0, %v1290_v55, %v1291_v56 }
  0x30   : > { %v1549_v4 = vshrl.u32 %v3020_v43, 16  ;;  %v1556_v6 = vshll.u32 %v3269_v53, 16  ;;  %v3052_v7 = vcombine.low %v2908_v58, %v2863_v33  ;;  %v1571_v8 = vsel %vm498_vm1, %v1566_v59, %v1570_v60  ;;  %v222_v35 = vld [vmem:[%s3431_s17 + $0x30] sm:$0xe]  ;;  %v3629_v37 = vld [vmem:[%s3431_s17 + $0x4c] sm:$0xf] }
  0x31   : > { %1844 = vrot.lane.b32.xlu0 %v1798_v2, %s3396_s25  ;;  %v553_v11 = vor.u32 %v552_v0, %v548_v63  ;;  %v567_v17 = vshll.u32 %v3273_v62, 16  ;;  %v1803_v25 = vrot.slane %v3269_v53, 1  ;;  %v2959_v26 = vcombine.low %v223_v10, %v3586_v45  ;;  %v2845_v48 = vld [vmem:[%s3431_s17 + $0x54] sm:$0xe]  ;;  %v2868_v56 = vld [vmem:[%s3431_s17 + $0x6c] sm:$0xf] }
  0x32   : > { %v1558_v19 = vrot.slane %v1556_v6, 1  ;;  %v1802_v24 = vrot.slane %v3052_v7, 1  ;;  %v2975_v30 = vcombine.low %v2802_v22, %v3616_v23  ;;  %v788_v42 = vrot.slane %v3273_v62, 1  ;;  %v3281_v59 = vld [vmem:[%s3431_s17 + $0x50] ss:$0 sps:$4 sm:$0x11]  }
  0x33   : > { %826 = vrot.lane.b32.xlu1 %v783_v9, %s3390_s19  ;;  %v557_v9 = vrot.slane %v555_v61, 1  ;;  %v569_v28 = vrot.slane %v567_v17, 1  ;;  %v787_v41 = vrot.slane %v2959_v26, 1  ;;  %v2958_v46 = vcombine.low %v222_v35, %v3571_v32  ;;  %v2844_v6 = vld [vmem:[%s3431_s17 + $0x48] sm:$0xe] }
  0x34   : > { %v1804_v38 = vsel %vm771_vm0, %v1802_v24, %v1803_v25  ;;  %v785_v53 = vrot.slane %v3591_v49, 1  ;;  %v3007_v61 = vcombine.low %v2845_v48, %v3616_v23  ;;  %v1068_v49 = vshll.u32 %v3281_v59, 16  ;;  %v2866_v7 = vld [vmem:[%s3431_s17 + $0x60] sm:$0xf]  ;;  %v3677_v24 = vld [vmem:[%s3431_s17 + $0x58] sm:$0xf] }
  0x35   : > { %1846 = vrot.lane.b32.xlu0 %v1801_v12, %s3396_s25  ;;  %v558_v27 = vsel %vm498_vm1, %v553_v11, %v557_v9  ;;  %v789_v51 = vsel %vm771_vm0, %v787_v41, %v788_v42  ;;  %v784_v32 = vrot.slane %v2958_v46, 1  ;;  %v3666_v10 = vld [vmem:[%s3431_s17 + $0x74] ss:$0 sps:$4 sm:$0x11]   ;;  %vm1876_vm3 = vcmask 31744  }
  0x36   : > { %v1070_v22 = vrot.slane %v1068_v49, 1  ;;  %v3680_v25 = vld [vmem:[%s3431_s17 + $0x68] ss:$0 sps:$4 sm:$0x11]   ;;  %v3723_v49 = vld [vmem:[%s3431_s17 + $0x70] sm:$0xf] }
  0x37   : > { %938 = vrot.lane.b32.xlu1 %v2973_v52, %s3389_s18  ;;  %v3597_v52 = vcombine.low %v180_v44, %v3586_v45  ;;  %v1806_v45 = vrot.slane %v3575_v34, 1  ;;  %vm1909_vm4 = vcmask 64512   ;;  %vm1942_vm5 = vcmask 97280  }
  0x38   : > { %vm1975_vm6 = vcmask 130048   ;;  %vm2008_vm7 = vcmask 162816   ;;  %vm2041_vm8 = vcmask 195584   ;;  %vm2074_vm9 = vcmask 228352  }
  0x39   : > { %824 = vrot.lane.b32.xlu0 %v780_v16, %s3390_s19  ;;  %v562_v2 = vshll.u32 %v3597_v52, 16  ;;  %v560_v12 = vshrl.u32 %v3597_v52, 16  ;;  %vm2107_vm10 = vcmask 261120   ;;  %vm2160_vm11 = vcmask 293888  }
  0x3a   : > { %vm2486_vm12 = vcmask 60416   ;;  %vm2588_vm13 = vcmask 57344  }
  0x3b   : > { %1210 = vrot.lane.b32.xlu1 %v1059_v36, %s3392_s21  ;;  %v564_v13 = vrot.slane %v562_v2, 1  ;;  %v2800_v36 = vld [vmem:[%s3431_s17 + $0x48] sm:$0xf]  ;;  %v786_v2 = vsel %vm771_vm0, %v784_v32, %v785_v53  ;;  %v225_v53 = vld [vmem:[%s3431_s17 + $0x54] sm:$0xe] }
  0x3c   : > { %v2974_v47 = vcombine.low %v2800_v36, %v3629_v37 }
  0x3d   : > { %936 = vrot.lane.b32.xlu0 %v2972_v5, %s3389_s18  ;;  %v1553_v5 = vrot.slane %v1551_v57, 1  ;;  %v565_v16 = vor.u32 %v564_v13, %v560_v12  ;;  %v3645_v57 = vld [vmem:[%s3431_s17 + $0x70] sm:$0xf]  ;;  %v1299_v12 = vrot.slane %v3007_v61, 1 }
  0x3e   : > { %v1063_v58 = vshll.u32 %v2974_v47, 16  ;;  %v3023_v60 = vcombine.low %v2868_v56, %v3645_v57  ;;  %v1061_v0 = vshrl.u32 %v2974_v47, 16 }
  0x3f   : > { %1338 = vrot.lane.b32.xlu1 %v1295_v50, %s3393_s22  ;;  %v1554_v18 = vor.u32 %v1553_v5, %v1549_v4  ;;  %v570_v40 = vsel %vm498_vm1, %v565_v16, %v569_v28  ;;  %v1073_v50 = vshrl.u32 %v2975_v30, 16  ;;  %v182_v4 = vld [vmem:[%s3431_s17 + $0x48] sm:$0xf]  ;;  %v3657_v5 = vld [vmem:[%s3431_s17 + $0x4c] sm:$0xf]  ;;  %v1592_v16 = vshll.u32 %v3666_v10, 16 }
  0x40   : > { %v1587_v9 = vshll.u32 %v3023_v60, 16  ;;  %v3671_v17 = vcombine.low %v182_v4, %v3657_v5  ;;  %v1585_v26 = vshrl.u32 %v3023_v60, 16  ;;  %v3685_v28 = vld [vmem:[%s3431_s17 + $0x50] ss:$0 sps:$4 sm:$0x11]  }
  0x41   : > { %1208 = vrot.lane.b32.xlu0 %v1047_v54, %s3392_s21  ;;  %v1559_v33 = vsel %vm498_vm1, %v1554_v18, %v1558_v19  ;;  %v3006_v18 = vcombine.low %v2844_v6, %v3629_v37  ;;  %v1297_v37 = vrot.slane %v3281_v59, 1  ;;  %v1594_v42 = vrot.slane %v1592_v16, 1  ;;  %v2911_v4 = vld [vmem:[%s3431_s17 + $0x6c] sm:$0xe] }
  0x42   : > { %v2961_v6 = vcombine.low %v225_v53, %v3677_v24 }
  0x43   : > { %1450 = vrot.lane.b32.xlu1 %v3021_v20, %s3394_s23  ;;  %v2909_v20 = vld [vmem:[%s3431_s17 + $0x54] sm:$0xe]  ;;  %v1296_v36 = vrot.slane %v3006_v18, 1 }
  0x44   : > { %v3053_v31 = vcombine.low %v2909_v20, %v3557_v1  ;;  %v1075_v1 = vshll.u32 %v2975_v30, 16  ;;  %v184_v20 = vld [vmem:[%s3431_s17 + $0x54] sm:$0xf] }
  0x45   : > { %1336 = vrot.lane.b32.xlu0 %v1292_v3, %s3393_s22  ;;  %v1065_v3 = vrot.slane %v1063_v58, 1  ;;  %v1298_v48 = vsel %vm771_vm0, %v1296_v36, %v1297_v37 }
  0x46   : > { %v1805_v44 = vrot.slane %v3053_v31, 1  ;;  %v1077_v54 = vrot.slane %v1075_v1, 1  ;;  %v574_v31 = vshll.u32 %v3671_v17, 16  ;;  %v579_v1 = vshll.u32 %v3685_v28, 16 }
  0x47   : > { %1722 = vrot.lane.b32.xlu1 %v1571_v8, %s3395_s24  ;;  %v3662_v8 = vld [vmem:[%s3431_s17 + $0x64] sm:$0xf]  ;;  %v1066_v19 = vor.u32 %v1065_v3, %v1061_v0  ;;  %v2806_v0 = vld [vmem:[%s3431_s17 + $0x6c] sm:$0xf] }
  0x48   : > { %v1807_v34 = vsel %vm771_vm0, %v1805_v44, %v1806_v45  ;;  %v1078_v62 = vor.u32 %v1077_v54, %v1073_v50  ;;  %v3022_v23 = vcombine.low %v2866_v7, %v3662_v8  ;;  %v572_v44 = vshrl.u32 %v3671_v17, 16  ;;  %v3318_v54 = vld [vmem:[%s4670_s1 + $0x8] sm:$0xff]  }
  0x49   : > { %1448 = vrot.lane.b32.xlu0 %v3020_v43, %s3394_s23  ;;  %v3280_v43 = vld [vmem:[%s3431_s17 + $0x5c] ss:$0 sps:$4 sm:$0x11]   ;;  %v1071_v35 = vsel %vm498_vm1, %v1066_v19, %v1070_v22  ;;  %v576_v45 = vrot.slane %v574_v31, 1  ;;  %v581_v32 = vrot.slane %v579_v1, 1  ;;  %v1809_v22 = vrot.slane %v3680_v25, 1 }
  0x4a   : > { %v1080_v55 = vshll.u32 %v3280_v43, 16  ;;  %v1300_v13 = vrot.slane %v3280_v43, 1  ;;  %v3698_v43 = vld [vmem:[%s3431_s17 + $0x5c] ss:$0 sps:$4 sm:$0x11]   ;;  %v1573_v50 = vshrl.u32 %v3022_v23, 16 }
  0x4b   : > { %699 = vrot.lane.b32.xlu1 %v558_v27, %s3391_s20  ;;  %v1589_v27 = vrot.slane %v1587_v9, 1  ;;  %v577_v59 = vor.u32 %v576_v45, %v572_v44  ;;  %v2872_v1 = vld [vmem:[%s3431_s17 + $0x84] sm:$0xf] }
  0x4c   : > { %v1082_v63 = vrot.slane %v1080_v55, 1  ;;  %v2910_v55 = vld [vmem:[%s3431_s17 + $0x60] sm:$0xe] }
  0x4d   : > { %1720 = vrot.lane.b32.xlu0 %v1559_v33, %s3395_s24  ;;  %v3691_v33 = vcombine.low %v184_v20, %v3677_v24  ;;  %v1590_v41 = vor.u32 %v1589_v27, %v1585_v26  ;;  %v582_v7 = vsel %vm498_vm1, %v577_v59, %v581_v32  ;;  %v2804_v20 = vld [vmem:[%s3431_s17 + $0x60] sm:$0xf]  ;;  %v793_v26 = vrot.slane %v2961_v6, 1  ;;  %v2870_v59 = vld [vmem:[%s3431_s17 + $0x78] sm:$0xf] }
  0x4e   : > { %v1083_v11 = vsel %vm498_vm1, %v1078_v62, %v1082_v63  ;;  %v591_v63 = vshll.u32 %v3698_v43, 16  ;;  %v794_v27 = vrot.slane %v3698_v43, 1 }
  0x4f   : > { %701 = vrot.lane.b32.xlu1 %v570_v40, %s3391_s20  ;;  %v1580_v40 = vshll.u32 %v3680_v25, 16  ;;  %v586_v46 = vshll.u32 %v3691_v33, 16  ;;  %v584_v61 = vshrl.u32 %v3691_v33, 16 }
  0x51   : > { %1848 = vrot.lane.b32.xlu0 %v1804_v38, %s3396_s25  ;;  %v1575_v38 = vshll.u32 %v3022_v23, 16  ;;  %v1582_v56 = vrot.slane %v1580_v40, 1  ;;  %v588_v62 = vrot.slane %v586_v46, 1  ;;  %v3299_v46 = vld [vmem:[%s3431_s17 + $0x68] ss:$0 sps:$4 sm:$0x11]  }
  0x52   : > { %v1092_v53 = vshll.u32 %v3299_v46, 16 }
  0x53   : > { %830 = vrot.lane.b32.xlu1 %v789_v51, %s3390_s19  ;;  %v1577_v51 = vrot.slane %v1575_v38, 1  ;;  %v589_v9 = vor.u32 %v588_v62, %v584_v61  ;;  %v791_v38 = vrot.slane %v3685_v28, 1  ;;  %v2846_v28 = vld [vmem:[%s3431_s17 + $0x60] sm:$0xe]  ;;  %v3768_v61 = vld [vmem:[%s3431_s17 + $0x7c] sm:$0xf] }
  0x54   : > { %v3024_v6 = vcombine.low %v2870_v59, %v3768_v61 }
  0x55   : > { %1850 = vrot.lane.b32.xlu0 %v1807_v34, %s3396_s25  ;;  %v1595_v34 = vsel %vm498_vm1, %v1590_v41, %v1594_v42  ;;  %v1578_v3 = vor.u32 %v1577_v51, %v1573_v50  ;;  %v795_v41 = vsel %vm771_vm0, %v793_v26, %v794_v27  ;;  %v3305_v26 = vld [vmem:[%s3431_s17 + $0x80] ss:$0 sps:$4 sm:$0x11]  }
  0x57   : > { %942 = vrot.lane.b32.xlu1 %v2975_v30, %s3389_s18  ;;  %v1301_v30 = vsel %vm771_vm0, %v1299_v12, %v1300_v13  ;;  %v2977_v12 = vcombine.low %v2806_v0, %v3723_v49  ;;  %v3055_v13 = vcombine.low %v2911_v4, %v3645_v57  ;;  %v1583_v18 = vsel %vm498_vm1, %v1578_v3, %v1582_v56  ;;  %v3764_v56 = vld [vmem:[%s3431_s17 + $0x64] sm:$0xf]  ;;  %v3772_v0 = vld [vmem:[%s3431_s17 + $0x8c] ss:$0 sps:$4 sm:$0x11]  }
  0x58   : > { %v1094_v4 = vrot.slane %v1092_v53, 1  ;;  %v2913_v53 = vld [vmem:[%s3431_s17 + $0x84] sm:$0xe] }
  0x59   : > { %828 = vrot.lane.b32.xlu0 %v786_v2, %s3390_s19  ;;  %v3054_v2 = vcombine.low %v2910_v55, %v3662_v8  ;;  %v224_v8 = vld [vmem:[%s3431_s17 + $0x48] sm:$0xe]  ;;  %v1099_v16 = vshll.u32 %v2977_v12, 16  ;;  %v1811_v31 = vrot.slane %v3055_v13, 1  ;;  %v1097_v40 = vshrl.u32 %v2977_v12, 16 }
  0x5a   : > { %v2960_v24 = vcombine.low %v224_v8, %v3657_v5  ;;  %v2847_v5 = vld [vmem:[%s3431_s17 + $0x6c] sm:$0xe]  ;;  %v186_v55 = vld [vmem:[%s3431_s17 + $0x60] sm:$0xf] }
  0x5b   : > { %1214 = vrot.lane.b32.xlu1 %v1083_v11, %s3392_s21  ;;  %v593_v11 = vrot.slane %v591_v63, 1  ;;  %v1808_v19 = vrot.slane %v3054_v2, 1  ;;  %v1101_v42 = vrot.slane %v1099_v16, 1  ;;  %v3009_v44 = vcombine.low %v2847_v5, %v3723_v49  ;;  %v3788_v13 = vld [vmem:[%s3431_s17 + $0x68] ss:$0 sps:$4 sm:$0x11]  }
  0x5c   : > { %v790_v37 = vrot.slane %v2960_v24, 1 }
  0x5d   : > { %940 = vrot.lane.b32.xlu0 %v2974_v47, %s3389_s18  ;;  %v3314_v47 = vld [vmem:[%s4670_s1 + $0x10] ss:$0 sps:$4 sm:$0x33]   ;;  %v594_v57 = vsel %vm498_vm1, %v589_v9, %v593_v11  ;;  %v1810_v25 = vsel %vm771_vm0, %v1808_v19, %v1809_v22  ;;  %v1102_v50 = vor.u32 %v1101_v42, %v1097_v40  ;;  %v1303_v19 = vrot.slane %v3299_v46, 1  ;;  %v2912_v42 = vld [vmem:[%s3431_s17 + $0x78] sm:$0xe] }
  0x5e   : > { %3216 = vmatprep.subr.msk.bf16.mxu0 %vm2193_vm2, %v3314_v47  ;;  %v2195_v58 = vsel %vm2193_vm2, %v3314_v47, 0  ;;  %3217 = vmatprep.subr.msk.bf16.mxu1 %vm2193_vm2, %v3314_v47  ;;  %v3755_v47 = vld [vmem:[%s3431_s17 + $0x88] sm:$0xf]  ;;  %v3782_v9 = vld [vmem:[%s3431_s17 + $0x70] sm:$0xf] }
  0x5f   : > { %1342 = vrot.lane.b32.xlu1 %v1301_v30, %s3393_s22  ;;  %3173 = vmatpush3.bf16.msra.mxu0 %v2195_v58  ;;  %v3298_v30 = vld [vmem:[%s3431_s17 + $0x74] ss:$0 sps:$4 sm:$0x11]  }
  0x60   : > { %3174 = vmatprep.subr.bf16.mxu0 %v3318_v54  ;;  %3213 = vmatpush3.bf16.msra.mxu1 %v2195_v58  ;;  %v1305_v58 = vrot.slane %v3009_v44, 1  ;;  %v1306_v63 = vrot.slane %v3298_v30, 1 }
  0x61   : > { %1212 = vrot.lane.b32.xlu0 %v1071_v35, %s3392_s21  ;;  %3211 = vmatprep.subr.bf16.mxu1 %v3318_v54  ;;  %v1812_v35 = vrot.slane %v3666_v10, 1  ;;  %v1104_v10 = vshll.u32 %v3298_v30, 16 }
  0x62   : > { %v1307_v11 = vsel %vm771_vm0, %v1305_v58, %v1306_v63 }
  0x63   : > { %1454 = vrot.lane.b32.xlu1 %v3023_v60, %s3394_s23  ;;  %v3320_v60 = vld [vmem:[%s4670_s1] sm:$0xff]   ;;  %3175 = vmatpush3.bf16.msra.mxu0 %v3318_v54  ;;  %v1813_v43 = vsel %vm771_vm0, %v1811_v31, %v1812_v35  ;;  %v1106_v51 = vrot.slane %v1104_v10, 1 }
  0x64   : > { %3176 = vmatprep.subr.bf16.mxu0 %v3320_v60  ;;  %3214 = vmatpush3.bf16.msra.mxu1 %v3318_v54  ;;  %v3025_v54 = vcombine.low %v2872_v1, %v3755_v47 }
  0x65   : > { %1340 = vrot.lane.b32.xlu0 %v1298_v48, %s3393_s22  ;;  %3212 = vmatprep.subr.bf16.mxu1 %v3320_v60  ;;  %v792_v48 = vsel %vm771_vm0, %v790_v37, %v791_v38  ;;  %v1107_v2 = vsel %vm498_vm1, %v1102_v50, %v1106_v51  ;;  %v1597_v38 = vshrl.u32 %v3024_v6, 16  ;;  %v3815_v50 = vld [vmem:[%s3431_s17 + $0x88] sm:$0xf] }
  0x66   : > { %v1611_v3 = vshll.u32 %v3025_v54, 16  ;;  %v1609_v22 = vshrl.u32 %v3025_v54, 16 }
  0x67   : > { %1726 = vrot.lane.b32.xlu1 %v1595_v34, %s3395_s24  ;;  %3177 = vmatpush3.bf16.msra.mxu0 %v3320_v60 }
  0x68   : > { %3215 = vmatpush3.bf16.msra.mxu1 %v3320_v60  ;;  %v3775_v60 = vcombine.low %v186_v55, %v3764_v56 }
  0x69   : > { %1452 = vrot.lane.b32.xlu0 %v3022_v23, %s3394_s23  ;;  %v2805_v23 = vld [vmem:[%s3431_s17 + $0x64] sm:$0xf] }
  0x6a   : > { %v2976_v36 = vcombine.low %v2804_v20, %v2805_v23  ;;  %v3008_v62 = vcombine.low %v2846_v28, %v2805_v23  ;;  %v1613_v20 = vrot.slane %v1611_v3, 1  ;;  %v596_v16 = vshrl.u32 %v3775_v60, 16 }
  0x6b   : > { %703 = vrot.lane.b32.xlu1 %v582_v7, %s3391_s20  ;;  %v188_v7 = vld [vmem:[%s3431_s17 + $0x6c] sm:$0xf] }
  0x6c   : > { %v1087_v45 = vshll.u32 %v2976_v36, 16  ;;  %v1085_v34 = vshrl.u32 %v2976_v36, 16  ;;  %v1302_v8 = vrot.slane %v3008_v62, 1  ;;  %v3793_v23 = vcombine.low %v188_v7, %v3782_v9 }
  0x6d   : > { %1724 = vrot.lane.b32.xlu0 %v1583_v18, %s3395_s24  ;;  %v598_v18 = vshll.u32 %v3775_v60, 16  ;;  %v1614_v35 = vor.u32 %v1613_v20, %v1609_v22  ;;  %v1815_v7 = vrot.slane %v3305_v26, 1  ;;  %v3846_v20 = vld [vmem:[%s3431_s17 + $0x8c] ss:$0 sps:$4 sm:$0x11]  }
  0x6e   : > { %v1089_v32 = vrot.slane %v1087_v45, 1  ;;  %v610_v5 = vshll.u32 %v3793_v23, 16  ;;  %v1304_v37 = vsel %vm771_vm0, %v1302_v8, %v1303_v19  ;;  %v608_v1 = vshrl.u32 %v3793_v23, 16  ;;  %v3835_v8 = vld [vmem:[%s3431_s17 + $0x7c] sm:$0xf] }
  0x6f   : > { %705 = vrot.lane.b32.xlu1 %v594_v57, %s3391_s20  ;;  %v1599_v57 = vshll.u32 %v3024_v6, 16  ;;  %v600_v30 = vrot.slane %v598_v18, 1 }
  0x70   : > { %v1090_v49 = vor.u32 %v1089_v32, %v1085_v34  ;;  %v612_v46 = vrot.slane %v610_v5, 1  ;;  %v227_v32 = vld [vmem:[%s3431_s17 + $0x6c] sm:$0xe]  ;;  %v3857_v5 = vld [vmem:[%s3431_s17 + $0x80] ss:$0 sps:$4 sm:$0x11]  }
  0x71   : > { %1852 = vrot.lane.b32.xlu0 %v1810_v25, %s3396_s25  ;;  %v603_v25 = vshll.u32 %v3788_v13, 16  ;;  %v1601_v40 = vrot.slane %v1599_v57, 1  ;;  %v601_v45 = vor.u32 %v600_v30, %v596_v16 }
  0x72   : > { %v1095_v24 = vsel %vm498_vm1, %v1090_v49, %v1094_v4  ;;  %v613_v62 = vor.u32 %v612_v46, %v608_v1  ;;  %v797_v1 = vrot.slane %v3788_v13, 1  ;;  %v2848_v46 = vld [vmem:[%s3431_s17 + $0x78] sm:$0xe] }
  0x73   : > { %834 = vrot.lane.b32.xlu1 %v795_v41, %s3390_s19  ;;  %v1604_v41 = vshll.u32 %v3305_v26, 16  ;;  %v605_v10 = vrot.slane %v603_v25, 1  ;;  %v1602_v55 = vor.u32 %v1601_v40, %v1597_v38  ;;  %v2849_v25 = vld [vmem:[%s3431_s17 + $0x84] sm:$0xe]  ;;  %v2876_v40 = vld [vmem:[%s3431_s17 + $0x9c] sm:$0xf] }
  0x75   : > { %1854 = vrot.lane.b32.xlu0 %v1813_v43, %s3396_s25  ;;  %v1606_v34 = vrot.slane %v1604_v41, 1  ;;  %v606_v59 = vsel %vm498_vm1, %v601_v45, %v605_v10  ;;  %v3011_v45 = vcombine.low %v2849_v25, %v3815_v50 }
  0x77   : > { %946 = vrot.lane.b32.xlu1 %v2977_v12, %s3389_s18  ;;  %v1616_v12 = vshll.u32 %v3772_v0, 16  ;;  %v1607_v49 = vsel %vm498_vm1, %v1602_v55, %v1606_v34  ;;  %v1116_v34 = vshll.u32 %v3857_v5, 16 }
  0x79   : > { %832 = vrot.lane.b32.xlu0 %v792_v48, %s3390_s19  ;;  %v1618_v27 = vrot.slane %v1616_v12, 1  ;;  %v2810_v48 = vld [vmem:[%s3431_s17 + $0x84] sm:$0xf] }
  0x7a   : > { %v3824_v58 = vcombine.low %v2810_v48, %v3815_v50 }
  0x7b   : > { %1218 = vrot.lane.b32.xlu1 %v1107_v2, %s3392_s21  ;;  %v1619_v44 = vsel %vm498_vm1, %v1614_v35, %v1618_v27  ;;  %v3057_v2 = vcombine.low %v2913_v53, %v3755_v47  ;;  %v1818_v27 = vrot.slane %v3772_v0, 1  ;;  %v1128_v0 = vshll.u32 %v3846_v20, 16  ;;  %v190_v53 = vld [vmem:[%s3431_s17 + $0x78] sm:$0xf] }
  0x7c   : > { %v1123_v18 = vshll.u32 %v3824_v58, 16  ;;  %v1121_v35 = vshrl.u32 %v3824_v58, 16 }
  0x7d   : > { %944 = vrot.lane.b32.xlu0 %v2976_v36, %s3389_s18  ;;  %v3309_v36 = vld [vmem:[%s3431_s17 + $0x74] ss:$0 sps:$4 sm:$0x11]   ;;  %v1817_v26 = vrot.slane %v3057_v2, 1 }
  0x7e   : > { %v615_v28 = vshll.u32 %v3309_v36, 16  ;;  %v800_v19 = vrot.slane %v3309_v36, 1  ;;  %v1125_v36 = vrot.slane %v1123_v18, 1  ;;  %v3892_v2 = vld [vmem:[%s3431_s17 + $0x94] sm:$0xf] }
  0x7f   : > { %1346 = vrot.lane.b32.xlu1 %v1307_v11, %s3393_s22  ;;  %v2808_v11 = vld [vmem:[%s3431_s17 + $0x78] sm:$0xf] }
  0x80   : > { %v3801_v31 = vpop.permute.xlu1 %934  ;;  %v617_v63 = vrot.slane %v615_v28, 1  ;;  %v3843_v22 = vcombine.low %v2808_v11, %v3835_v8  ;;  %v1126_v13 = vor.u32 %v1125_v36, %v1121_v35  ;;  %v3899_v11 = vld [vmem:[%s3431_s17 + $0xa4] ss:$0 sps:$4 sm:$0x11]  }
  0x81   : > { %1216 = vrot.lane.b32.xlu0 %v1095_v24, %s3392_s21  ;;  %v3810_v43 = vpop.permute.xlu0 %932  ;;  %v1640_v36 = vshll.u32 %v3899_v11, 16 }
  0x82   : > { %v618_v47 = vsel %vm498_vm1, %v613_v62, %v617_v63  ;;  %v1111_v38 = vshll.u32 %v3843_v22, 16  ;;  %v1109_v28 = vshrl.u32 %v3843_v22, 16  ;;  %v3010_v63 = vcombine.low %v2848_v46, %v3835_v8 }
  0x83   : > { %1458 = vrot.lane.b32.xlu1 %v3025_v54, %s3394_s23  ;;  %v3056_v54 = vcombine.low %v2912_v42, %v3768_v61  ;;  %v2963_v61 = vcombine.low %v227_v32, %v3782_v9  ;;  %v1819_v42 = vsel %vm771_vm0, %v1817_v26, %v1818_v27  ;;  %v1309_v26 = vrot.slane %v3857_v5, 1 }
  0x84   : > { %v1113_v55 = vrot.slane %v1111_v38, 1 }
  0x85   : > { %1344 = vrot.lane.b32.xlu0 %v1304_v37, %s3393_s22  ;;  %v3817_v51 = vpop.permute.xlu1 %820  ;;  %v1814_v4 = vrot.slane %v3056_v54, 1  ;;  %v799_v9 = vrot.slane %v2963_v61, 1  ;;  %v1130_v54 = vrot.slane %v1128_v0, 1  ;;  %v2874_v61 = vld [vmem:[%s3431_s17 + $0x90] sm:$0xf] }
  0x87   : > { %1730 = vrot.lane.b32.xlu1 %v1619_v44, %s3395_s24  ;;  %v1816_v57 = vsel %vm771_vm0, %v1814_v4, %v1815_v7  ;;  %v801_v37 = vsel %vm771_vm0, %v799_v9, %v800_v19  ;;  %v1312_v4 = vrot.slane %v3846_v20, 1  ;;  %v1131_v18 = vsel %vm498_vm1, %v1126_v13, %v1130_v54 }
  0x88   : > { %v1114_v9 = vor.u32 %v1113_v55, %v1109_v28  ;;  %v1118_v19 = vrot.slane %v1116_v34, 1  ;;  %v3913_v20 = vcombine.low %v2874_v61, %v3892_v2  ;;  %v1642_v13 = vrot.slane %v1640_v36, 1  ;;  %v3955_v55 = vld [vmem:[%s3431_s17 + $0x8c] ss:$0 sps:$4 sm:$0x11]  }
  0x89   : > { %1456 = vrot.lane.b32.xlu0 %v3024_v6, %s3394_s23  ;;  %v3830_v3 = vpop.permute.xlu1 %822  ;;  %v226_v6 = vld [vmem:[%s3431_s17 + $0x60] sm:$0xe] }
  0x8a   : > { %v2962_v16 = vcombine.low %v226_v6, %v3764_v56  ;;  %v3865_v56 = vld [vmem:[%s3431_s17 + $0xa0] sm:$0xf]  ;;  %v1623_v0 = vshll.u32 %v3913_v20, 16 }
  0x8b   : > { %v692_v12 = vpop.permute.xlu0 %691  ;;  %707 = vrot.lane.b32.xlu1 %v606_v59, %s3391_s20  ;;  %v3878_v48 = vcombine.low %v2876_v40, %v3865_v56  ;;  %v3887_v59 = vld [vmem:[%s3431_s17 + $0x7c] sm:$0xf]  ;;  %v3942_v40 = vld [vmem:[%s3431_s17 + $0x98] ss:$0 sps:$4 sm:$0x11]  }
  0x8c   : > { %v796_v10 = vrot.slane %v2962_v16, 1  ;;  %v1878_v6 = vsel %vm1876_vm3, %v3450_v14, %v692_v12  ;;  %v192_v14 = vld [vmem:[%s3431_s17 + $0x84] sm:$0xf]  ;;  %v3917_v12 = vld [vmem:[%s3431_s17 + $0x88] sm:$0xf]  ;;  %v1625_v61 = vrot.slane %v1623_v0, 1 }
  0x8d   : > { %1728 = vrot.lane.b32.xlu0 %v1607_v49, %s3395_s24  ;;  %v3848_v24 = vpop.permute.xlu1 %1206  ;;  %v1311_v49 = vrot.slane %v3011_v45, 1  ;;  %v1635_v7 = vshll.u32 %v3878_v48, 16  ;;  %v1633_v27 = vshrl.u32 %v3878_v48, 16  ;;  %v3922_v16 = vld [vmem:[%s3431_s17 + $0x80] ss:$0 sps:$4 sm:$0x11]   ;;  %v3935_v38 = vcombine.low %v192_v14, %v3917_v12 }
  0x8e   : > { %v798_v50 = vsel %vm771_vm0, %v796_v10, %v797_v1  ;;  %v1621_v45 = vshrl.u32 %v3913_v20, 16  ;;  %v627_v54 = vshll.u32 %v3922_v16, 16  ;;  %v3988_v36 = vld [vmem:[%s3431_s17 + $0xa0] sm:$0xf] }
  0x8f   : > { %v694_v30 = vpop.permute.xlu0 %693  ;;  %709 = vrot.lane.b32.xlu1 %v618_v47, %s3391_s20  ;;  %v1637_v35 = vrot.slane %v1635_v7, 1  ;;  %v1313_v5 = vsel %vm771_vm0, %v1311_v49, %v1312_v4  ;;  %v1628_v49 = vshll.u32 %v3942_v40, 16  ;;  %v2914_v7 = vld [vmem:[%s3431_s17 + $0x90] sm:$0xe] }
  0x90   : > { %v1880_v8 = vsel %vm1876_vm3, %v3454_v21, %v694_v30  ;;  %v1308_v21 = vrot.slane %v3010_v63, 1  ;;  %v1911_v30 = vsel %vm1909_vm4, %v1878_v6, %v3817_v51 }
  0x91   : > { %1856 = vrot.lane.b32.xlu0 %v1816_v57, %s3396_s25  ;;  %v3867_v41 = vpop.permute.xlu1 %1334  ;;  %v1913_v25 = vsel %vm1909_vm4, %v1880_v8, %v3830_v3  ;;  %v1119_v3 = vsel %vm498_vm1, %v1114_v9, %v1118_v19  ;;  %v1638_v28 = vor.u32 %v1637_v35, %v1633_v27  ;;  %v629_v8 = vrot.slane %v627_v54, 1  ;;  %v2915_v19 = vld [vmem:[%s3431_s17 + $0x9c] sm:$0xe] }
  0x92   : > { %v1310_v1 = vsel %vm771_vm0, %v1308_v21, %v1309_v26  ;;  %v639_v21 = vshll.u32 %v3955_v55, 16  ;;  %v1630_v35 = vrot.slane %v1628_v49, 1 }
  0x93   : > { %v3871_v44 = vpop.permute.xlu0 %1204  ;;  %838 = vrot.lane.b32.xlu1 %v801_v37, %s3390_s19 }
  0x95   : > { %1858 = vrot.lane.b32.xlu0 %v1819_v42, %s3396_s25  ;;  %v3882_v32 = vpop.permute.xlu1 %1446  ;;  %v1944_v42 = vsel %vm1942_vm5, %v1911_v30, %v3810_v43  ;;  %v3058_v30 = vcombine.low %v2914_v7, %v3892_v2 }
  0x96   : > { %v1977_v46 = vsel %vm1975_vm6, %v1944_v42, %v3871_v44 }
  0x97   : > { %v1333_v62 = vpop.permute.xlu0 %1332  ;;  %950 = vrot.lane.b32.xlu1 %v3824_v58, %s3389_s18  ;;  %v3908_v58 = vcombine.low %v190_v53, %v3887_v59 }
  0x99   : > { %836 = vrot.lane.b32.xlu0 %v798_v50, %s3390_s19  ;;  %v3910_v47 = vpop.permute.xlu1 %1718  ;;  %v622_v37 = vshll.u32 %v3908_v58, 16  ;;  %v620_v43 = vshrl.u32 %v3908_v58, 16  ;;  %v634_v50 = vshll.u32 %v3935_v38, 16 }
  0x9b   : > { %v1445_v57 = vpop.permute.xlu0 %1444  ;;  %1222 = vrot.lane.b32.xlu1 %v1131_v18, %s3392_s21  ;;  %v624_v34 = vrot.slane %v622_v37, 1  ;;  %v632_v18 = vshrl.u32 %v3935_v38, 16 }
  0x9d   : > { %948 = vrot.lane.b32.xlu0 %v3843_v22, %s3389_s18  ;;  %v3937_v51 = vpop.permute.xlu1 %695  ;;  %v1946_v22 = vsel %vm1942_vm5, %v1913_v25, %v3801_v31  ;;  %v2010_v31 = vsel %vm2008_vm7, %v1977_v46, %v1333_v62  ;;  %v625_v14 = vor.u32 %v624_v34, %v620_v43  ;;  %v1626_v25 = vor.u32 %v1625_v61, %v1621_v45  ;;  %v228_v46 = vld [vmem:[%s3431_s17 + $0x78] sm:$0xe]  ;;  %v4017_v34 = vld [vmem:[%s3431_s17 + $0xa4] ss:$0 sps:$4 sm:$0x11]  }
  0x9e   : > { %v1979_v44 = vsel %vm1975_vm6, %v1946_v22, %v3848_v24  ;;  %v2043_v53 = vsel %vm2041_vm8, %v2010_v31, %v1445_v57  ;;  %v1643_v24 = vsel %vm498_vm1, %v1638_v28, %v1642_v13  ;;  %v636_v57 = vrot.slane %v634_v50, 1  ;;  %v4010_v28 = vld [vmem:[%s3431_s17 + $0x94] sm:$0xf] }
  0x9f   : > { %v1717_v10 = vpop.permute.xlu0 %1716  ;;  %1350 = vrot.lane.b32.xlu1 %v1313_v5, %s3393_s22  ;;  %v2012_v9 = vsel %vm2008_vm7, %v1979_v44, %v3867_v41  ;;  %v2814_v41 = vld [vmem:[%s3431_s17 + $0x9c] sm:$0xf]  ;;  %v630_v2 = vsel %vm498_vm1, %v625_v14, %v629_v8  ;;  %v641_v22 = vrot.slane %v639_v21, 1  ;;  %v1821_v45 = vrot.slane %v3942_v40, 1 }
  0xa0   : > { %v2076_v62 = vsel %vm2074_vm9, %v2043_v53, %v1717_v10  ;;  %v2045_v26 = vsel %vm2041_vm8, %v2012_v9, %v3882_v32  ;;  %v2981_v42 = vcombine.low %v2814_v41, %v3988_v36  ;;  %v1631_v10 = vsel %vm498_vm1, %v1626_v25, %v1630_v35  ;;  %v4052_v41 = vld [vmem:[%s3431_s17 + $0x94] sm:$0xf] }
  0xa1   : > { %1220 = vrot.lane.b32.xlu0 %v1119_v3, %s3392_s21  ;;  %v3964_v63 = vpop.permute.xlu1 %697  ;;  %v2078_v5 = vsel %vm2074_vm9, %v2045_v26, %v3910_v47  ;;  %v3059_v3 = vcombine.low %v2915_v19, %v3865_v56  ;;  %v637_v47 = vor.u32 %v636_v57, %v632_v18  ;;  %v806_v43 = vrot.slane %v3955_v55, 1  ;;  %v4030_v55 = vld [vmem:[%s3431_s17 + $0xb8] sm:$0xf]  ;;  %v2850_v26 = vld [vmem:[%s3431_s17 + $0x90] sm:$0xe] }
  0xa2   : > { %v1147_v40 = vshll.u32 %v2981_v42, 16  ;;  %v1824_v53 = vrot.slane %v3899_v11, 1  ;;  %v2964_v61 = vcombine.low %v228_v46, %v3887_v59  ;;  %v1152_v59 = vshll.u32 %v4017_v34, 16  ;;  %v4041_v57 = vld [vmem:[%s3431_s17 + $0x98] ss:$0 sps:$4 sm:$0x11]  }
  0xa3   : > { %v1845_v4 = vpop.permute.xlu0 %1844  ;;  %1462 = vrot.lane.b32.xlu1 %v3878_v48, %s3394_s23  ;;  %v229_v48 = vld [vmem:[%s3431_s17 + $0x84] sm:$0xe]  ;;  %v1823_v13 = vrot.slane %v3059_v3, 1  ;;  %v642_v54 = vsel %vm498_vm1, %v637_v47, %v641_v22  ;;  %v803_v19 = vrot.slane %v3922_v16, 1  ;;  %v194_v16 = vld [vmem:[%s3431_s17 + $0x90] sm:$0xf] }
  0xa4   : > { %v2109_v6 = vsel %vm2107_vm10, %v2076_v62, %v1845_v4  ;;  %v2965_v32 = vcombine.low %v229_v48, %v3917_v12  ;;  %v2880_v4 = vld [vmem:[%s3431_s17 + $0xb4] sm:$0xf]  ;;  %v1149_v11 = vrot.slane %v1147_v40, 1  ;;  %v802_v9 = vrot.slane %v2964_v61, 1 }
  0xa5   : > { %1348 = vrot.lane.b32.xlu0 %v1310_v1, %s3393_s22  ;;  %3178 = vmatprep.mubr.msk.bf16.mxu0 %vm2160_vm11, %v2109_v6  ;;  %v3983_v27 = vpop.permute.xlu1 %826  ;;  %v1820_v1 = vrot.slane %v3058_v30, 1  ;;  %v2851_v6 = vld [vmem:[%s3431_s17 + $0x9c] sm:$0xe]  ;;  %v1825_v18 = vsel %vm771_vm0, %v1823_v13, %v1824_v53  ;;  %v4044_v48 = vcombine.low %v2880_v4, %v4030_v55  ;;  %v1154_v35 = vrot.slane %v1152_v59, 1 }
  0xa6   : > { %v805_v31 = vrot.slane %v2965_v32, 1  ;;  %v3013_v30 = vcombine.low %v2851_v6, %v3988_v36  ;;  %v1140_v32 = vshll.u32 %v4041_v57, 16  ;;  %v4061_v36 = vld [vmem:[%s3431_s17 + $0xac] sm:$0xf]  ;;  %v1318_v13 = vrot.slane %v4017_v34, 1 }
  0xa7   : > { %v1847_v37 = vpop.permute.xlu0 %1846  ;;  %1734 = vrot.lane.b32.xlu1 %v1643_v24, %s3395_s24  ;;  %v1822_v44 = vsel %vm771_vm0, %v1820_v1, %v1821_v45  ;;  %v1145_v24 = vshrl.u32 %v2981_v42, 16  ;;  %v1659_v22 = vshll.u32 %v4044_v48, 16  ;;  %v3012_v1 = vcombine.low %v2850_v26, %v4010_v28 }
  0xa8   : > { %v2111_v0 = vsel %vm2107_vm10, %v2078_v5, %v1847_v37  ;;  %v807_v7 = vsel %vm771_vm0, %v805_v31, %v806_v43  ;;  %v804_v37 = vsel %vm771_vm0, %v802_v9, %v803_v19  ;;  %v4069_v45 = vcombine.low %v194_v16, %v4052_v41 }
  0xa9   : > { %1460 = vrot.lane.b32.xlu0 %v3913_v20, %s3394_s23  ;;  %3179 = vmatmul.mubr.msk.bf16.vlgmr.msra.gmra.mxu0 %vm2160_vm11, %v2111_v0  ;;  %v4001_v56 = vpop.permute.xlu1 %938  ;;  %v2812_v20 = vld [vmem:[%s3431_s17 + $0x90] sm:$0xf]  ;;  %v1150_v25 = vor.u32 %v1149_v11, %v1145_v24  ;;  %v1142_v43 = vrot.slane %v1140_v32, 1  ;;  %v1657_v53 = vshrl.u32 %v4044_v48, 16  ;;  %v1661_v61 = vrot.slane %v1659_v22, 1 }
  0xaa   : > { %v2980_v49 = vcombine.low %v2812_v20, %v4010_v28  ;;  %v1317_v20 = vrot.slane %v3013_v30, 1  ;;  %v4081_v28 = vld [vmem:[%s3431_s17 + $0xa0] sm:$0xf]  ;;  %v1314_v34 = vrot.slane %v3012_v1, 1  ;;  %v646_v6 = vshll.u32 %v4069_v45, 16 }
  0xab   : > { %v4005_v12 = vpop.permute.xlu0 %824  ;;  %711 = vrot.lane.b32.xlu1 %v630_v2, %s3391_s20  ;;  %v2878_v2 = vld [vmem:[%s3431_s17 + $0xa8] sm:$0xf]  ;;  %v1155_v46 = vsel %vm498_vm1, %v1150_v25, %v1154_v35  ;;  %v1882_v24 = vsel %vm1876_vm3, %v3501_v15, %v3937_v51  ;;  %v1315_v59 = vrot.slane %v4041_v57, 1  ;;  %v4106_v15 = vld [vmem:[%s3431_s17 + $0xb0] ss:$0 sps:$4 sm:$0x11]   ;;  %v1884_v51 = vsel %vm1876_vm3, %v3515_v29, %v3964_v63 }
  0xac   : > { %v1135_v14 = vshll.u32 %v2980_v49, 16  ;;  %v1133_v3 = vshrl.u32 %v2980_v49, 16  ;;  %v4077_v40 = vcombine.low %v2878_v2, %v4061_v36  ;;  %v1319_v11 = vsel %vm771_vm0, %v1317_v20, %v1318_v13  ;;  %v2916_v13 = vld [vmem:[%s3431_s17 + $0xa8] sm:$0xe] }
  0xad   : > { %1732 = vrot.lane.b32.xlu0 %v1631_v10, %s3395_s24  ;;  %v4019_v50 = vpop.permute.xlu1 %1210  ;;  %v4064_v10 = vld [vmem:[%s3431_s17 + $0xbc] ss:$0 sps:$4 sm:$0x11]   ;;  %v1915_v9 = vsel %vm1909_vm4, %v1882_v24, %v4005_v12  ;;  %v1662_v30 = vor.u32 %v1661_v61, %v1657_v53  ;;  %v644_v35 = vshrl.u32 %v4069_v45, 16  ;;  %v648_v16 = vrot.slane %v646_v6, 1 }
  0xae   : > { %v1137_v0 = vrot.slane %v1135_v14, 1  ;;  %v1664_v4 = vshll.u32 %v4064_v10, 16  ;;  %v1647_v26 = vshll.u32 %v4077_v40, 16  ;;  %v1316_v29 = vsel %vm771_vm0, %v1314_v34, %v1315_v59  ;;  %v4155_v59 = vld [vmem:[%s3431_s17 + $0xb8] sm:$0xf] }
  0xaf   : > { %v4025_v62 = vpop.permute.xlu0 %936  ;;  %713 = vrot.lane.b32.xlu1 %v642_v54, %s3391_s20  ;;  %v1645_v63 = vshrl.u32 %v4077_v40, 16  ;;  %v3060_v6 = vcombine.low %v2916_v13, %v4061_v36 }
  0xb0   : > { %v1138_v31 = vor.u32 %v1137_v0, %v1133_v3  ;;  %v1666_v25 = vrot.slane %v1664_v4, 1  ;;  %v1917_v0 = vsel %vm1909_vm4, %v1884_v51, %v3983_v27  ;;  %v1649_v22 = vrot.slane %v1647_v26, 1  ;;  %v231_v4 = vld [vmem:[%s3431_s17 + $0x9c] sm:$0xe] }
  0xb1   : > { %1860 = vrot.lane.b32.xlu0 %v1822_v44, %s3396_s25  ;;  %v4036_v8 = vpop.permute.xlu1 %1338  ;;  %v1950_v1 = vsel %vm1942_vm5, %v1917_v0, %v4001_v56  ;;  %v4186_v0 = vld [vmem:[%s3431_s17 + $0xbc] ss:$0 sps:$4 sm:$0x11]  }
  0xb2   : > { %v1143_v14 = vsel %vm498_vm1, %v1138_v31, %v1142_v43  ;;  %v1667_v31 = vsel %vm498_vm1, %v1662_v30, %v1666_v25  ;;  %v1983_v27 = vsel %vm1975_vm6, %v1950_v1, %v4019_v50  ;;  %v1650_v24 = vor.u32 %v1649_v22, %v1645_v63 }
  0xb3   : > { %v1209_v21 = vpop.permute.xlu0 %1208  ;;  %842 = vrot.lane.b32.xlu1 %v807_v7, %s3390_s19  ;;  %v4087_v7 = vld [vmem:[%s3431_s17 + $0x98] ss:$0 sps:$4 sm:$0x11]   ;;  %v2016_v56 = vsel %vm2008_vm7, %v1983_v27, %v4036_v8 }
  0xb5   : > { %1862 = vrot.lane.b32.xlu0 %v1825_v18, %s3396_s25  ;;  %v4054_v5 = vpop.permute.xlu1 %1450 }
  0xb7   : > { %v1337_v47 = vpop.permute.xlu0 %1336  ;;  %954 = vrot.lane.b32.xlu1 %v2981_v42, %s3389_s18  ;;  %v196_v42 = vld [vmem:[%s3431_s17 + $0x9c] sm:$0xf] }
  0xb8   : > { %v4097_v18 = vcombine.low %v196_v42, %v4081_v28  ;;  %v649_v42 = vor.u32 %v648_v16, %v644_v35  ;;  %v1827_v16 = vrot.slane %v4106_v15, 1 }
  0xb9   : > { %840 = vrot.lane.b32.xlu0 %v804_v37, %s3390_s19  ;;  %v4074_v54 = vpop.permute.xlu1 %1722  ;;  %v651_v37 = vshll.u32 %v4087_v7, 16 }
  0xba   : > { %v656_v53 = vshrl.u32 %v4097_v18, 16 }
  0xbb   : > { %v1449_v44 = vpop.permute.xlu0 %1448  ;;  %1226 = vrot.lane.b32.xlu1 %v1155_v46, %s3392_s21 }
  0xbd   : > { %952 = vrot.lane.b32.xlu0 %v2980_v49, %s3389_s18  ;;  %v4101_v19 = vpop.permute.xlu1 %699  ;;  %v1948_v49 = vsel %vm1942_vm5, %v1915_v9, %v4025_v62  ;;  %v4122_v62 = vld [vmem:[%s3431_s17 + $0xa4] ss:$0 sps:$4 sm:$0x11]  }
  0xbe   : > { %v1981_v12 = vsel %vm1975_vm6, %v1948_v49, %v1209_v21  ;;  %v658_v21 = vshll.u32 %v4097_v18, 16  ;;  %v663_v61 = vshll.u32 %v4122_v62, 16 }
  0xbf   : > { %v1721_v57 = vpop.permute.xlu0 %1720  ;;  %1354 = vrot.lane.b32.xlu1 %v1319_v11, %s3393_s22  ;;  %v2014_v3 = vsel %vm2008_vm7, %v1981_v12, %v1337_v47  ;;  %v1652_v47 = vshll.u32 %v4106_v15, 16  ;;  %v2818_v11 = vld [vmem:[%s3431_s17 + $0xb4] sm:$0xf] }
  0xc0   : > { %v2047_v32 = vsel %vm2041_vm8, %v2014_v3, %v1449_v44  ;;  %v653_v44 = vrot.slane %v651_v37, 1  ;;  %v660_v50 = vrot.slane %v658_v21, 1  ;;  %v2983_v30 = vcombine.low %v2818_v11, %v4155_v59  ;;  %v2816_v37 = vld [vmem:[%s3431_s17 + $0xa8] sm:$0xf]  ;;  %v4178_v3 = vld [vmem:[%s3431_s17 + $0xac] sm:$0xf] }
  0xc1   : > { %1224 = vrot.lane.b32.xlu0 %v1143_v14, %s3392_s21  ;;  %v4128_v2 = vpop.permute.xlu1 %701  ;;  %v2080_v46 = vsel %vm2074_vm9, %v2047_v32, %v1721_v57  ;;  %v1654_v8 = vrot.slane %v1652_v47, 1  ;;  %v2917_v14 = vld [vmem:[%s3431_s17 + $0xb4] sm:$0xe]  ;;  %v665_v57 = vrot.slane %v663_v61, 1  ;;  %v812_v21 = vrot.slane %v4122_v62, 1 }
  0xc2   : > { %v654_v36 = vsel %vm498_vm1, %v649_v42, %v653_v44  ;;  %v661_v49 = vor.u32 %v660_v50, %v656_v53  ;;  %v3061_v25 = vcombine.low %v2917_v14, %v4030_v55  ;;  %v1171_v15 = vshll.u32 %v2983_v30, 16  ;;  %v4202_v42 = vld [vmem:[%s3431_s17 + $0xd0] sm:$0xf] }
  0xc3   : > { %v1849_v20 = vpop.permute.xlu0 %1848  ;;  %1466 = vrot.lane.b32.xlu1 %v4044_v48, %s3394_s23  ;;  %v2049_v48 = vsel %vm2041_vm8, %v2016_v56, %v4054_v5  ;;  %v2967_v5 = vcombine.low %v231_v4, %v4081_v28  ;;  %v1655_v35 = vsel %vm498_vm1, %v1650_v24, %v1654_v8  ;;  %v1826_v28 = vrot.slane %v3060_v6, 1  ;;  %v3354_v53 = vld [vmem:[%s3431_s17 + $0xb0] ss:$0 sps:$4 sm:$0x11]   ;;  %v2852_v4 = vld [vmem:[%s3431_s17 + $0xa8] sm:$0xe] }
  0xc4   : > { %v2113_v43 = vsel %vm2107_vm10, %v2080_v46, %v1849_v20  ;;  %v2082_v9 = vsel %vm2074_vm9, %v2049_v48, %v4074_v54  ;;  %v230_v54 = vld [vmem:[%s3431_s17 + $0x90] sm:$0xe]  ;;  %v666_v55 = vsel %vm498_vm1, %v661_v49, %v665_v57  ;;  %v1829_v47 = vrot.slane %v3061_v25, 1  ;;  %v4226_v25 = vld [vmem:[%s3431_s17 + $0xc4] sm:$0xf] }
  0xc5   : > { %1352 = vrot.lane.b32.xlu0 %v1316_v29, %s3393_s22  ;;  %3182 = vmatprep.mubr.msk.bf16.mxu0 %vm2160_vm11, %v2113_v43  ;;  %v4150_v34 = vpop.permute.xlu1 %830  ;;  %v2966_v29 = vcombine.low %v230_v54, %v4052_v41  ;;  %v811_v63 = vrot.slane %v2967_v5, 1  ;;  %v1828_v22 = vsel %vm771_vm0, %v1826_v28, %v1827_v16  ;;  %v1830_v41 = vrot.slane %v4064_v10, 1  ;;  %v2884_v10 = vld [vmem:[%s3431_s17 + $0xcc] sm:$0xf]  ;;  %v198_v5 = vld [vmem:[%s3431_s17 + $0xa8] sm:$0xf] }
  0xc6   : > { %v2982_v1 = vcombine.low %v2816_v37, %v4178_v3  ;;  %v809_v20 = vrot.slane %v4087_v7, 1  ;;  %v1169_v13 = vshrl.u32 %v2983_v30, 16  ;;  %v1173_v27 = vrot.slane %v1171_v15, 1  ;;  %v2853_v7 = vld [vmem:[%s3431_s17 + $0xb4] sm:$0xe] }
  0xc7   : > { %v1851_v26 = vpop.permute.xlu0 %1850  ;;  %1738 = vrot.lane.b32.xlu1 %v1667_v31, %s3395_s24  ;;  %v808_v62 = vrot.slane %v2966_v29, 1  ;;  %v813_v31 = vsel %vm771_vm0, %v811_v63, %v812_v21  ;;  %v1176_v43 = vshll.u32 %v4186_v0, 16  ;;  %v1831_v56 = vsel %vm771_vm0, %v1829_v47, %v1830_v41  ;;  %v2882_v54 = vld [vmem:[%s3431_s17 + $0xc0] sm:$0xf]  ;;  %v200_v21 = vld [vmem:[%s3431_s17 + $0xb4] sm:$0xf] }
  0xc8   : > { %v2115_v51 = vsel %vm2107_vm10, %v2082_v9, %v1851_v26  ;;  %v1159_v50 = vshll.u32 %v2982_v1, 16  ;;  %v4212_v48 = vcombine.low %v2884_v10, %v4202_v42  ;;  %v1174_v6 = vor.u32 %v1173_v27, %v1169_v13  ;;  %v4246_v15 = vld [vmem:[%s3431_s17 + $0xb8] sm:$0xf] }
  0xc9   : > { %1464 = vrot.lane.b32.xlu0 %v4077_v40, %s3394_s23  ;;  %3183 = vmatmul.mubr.msk.bf16.gmra.mxu0 %vm2160_vm11, %v2115_v51  ;;  %v4170_v12 = vpop.permute.xlu1 %942  ;;  %v1178_v24 = vrot.slane %v1176_v43, 1  ;;  %v1157_v8 = vshrl.u32 %v2982_v1, 16  ;;  %v3015_v11 = vcombine.low %v2853_v7, %v4155_v59  ;;  %v810_v14 = vsel %vm771_vm0, %v808_v62, %v809_v20  ;;  %v4230_v59 = vld [vmem:[%s3431_s17 + $0xd4] ss:$0 sps:$4 sm:$0x11]  }
  0xca   : > { %v1161_v26 = vrot.slane %v1159_v50, 1  ;;  %v1164_v51 = vshll.u32 %v3354_v53, 16  ;;  %v3014_v57 = vcombine.low %v2852_v4, %v4178_v3  ;;  %v1324_v37 = vrot.slane %v4186_v0, 1  ;;  %v4249_v62 = vld [vmem:[%s3431_s17 + $0xb0] ss:$0 sps:$4 sm:$0x11]  }
  0xcb   : > { %v4174_v40 = vpop.permute.xlu0 %828  ;;  %715 = vrot.lane.b32.xlu1 %v654_v36, %s3391_s20  ;;  %v4221_v36 = vld [vmem:[%s3431_s17 + $0xac] sm:$0xf]  ;;  %v1179_v28 = vsel %vm498_vm1, %v1174_v6, %v1178_v24  ;;  %v1323_v16 = vrot.slane %v3015_v11, 1  ;;  %v1321_v41 = vrot.slane %v3354_v53, 1  ;;  %v1681_v0 = vshrl.u32 %v4212_v48, 16 }
  0xcc   : > { %v4237_v3 = vcombine.low %v198_v5, %v4221_v36  ;;  %v1166_v63 = vrot.slane %v1164_v51, 1  ;;  %v1320_v47 = vrot.slane %v3014_v57, 1  ;;  %v1688_v13 = vshll.u32 %v4230_v59, 16  ;;  %v4269_v7 = vld [vmem:[%s3431_s17 + $0xc8] ss:$0 sps:$4 sm:$0x11]  }
  0xcd   : > { %1736 = vrot.lane.b32.xlu0 %v1655_v35, %s3395_s24  ;;  %v4188_v32 = vpop.permute.xlu1 %1214  ;;  %v1683_v35 = vshll.u32 %v4212_v48, 16  ;;  %v1325_v27 = vsel %vm771_vm0, %v1323_v16, %v1324_v37  ;;  %v4261_v10 = vcombine.low %v200_v21, %v4246_v15 }
  0xce   : > { %v670_v43 = vshll.u32 %v4237_v3, 16  ;;  %v1322_v6 = vsel %vm771_vm0, %v1320_v47, %v1321_v41  ;;  %v1690_v11 = vrot.slane %v1688_v13, 1 }
  0xcf   : > { %v4193_v46 = vpop.permute.xlu0 %940  ;;  %717 = vrot.lane.b32.xlu1 %v666_v55, %s3391_s20  ;;  %v1162_v55 = vor.u32 %v1161_v26, %v1157_v8  ;;  %v1685_v20 = vrot.slane %v1683_v35, 1  ;;  %v2918_v26 = vld [vmem:[%s3431_s17 + $0xc0] sm:$0xe]  ;;  %v682_v5 = vshll.u32 %v4261_v10, 16 }
  0xd1   : > { %1864 = vrot.lane.b32.xlu0 %v1828_v22, %s3396_s25  ;;  %v4204_v44 = vpop.permute.xlu1 %1342  ;;  %v1167_v50 = vsel %vm498_vm1, %v1162_v55, %v1166_v63  ;;  %v1686_v8 = vor.u32 %v1685_v20, %v1681_v0  ;;  %v3062_v63 = vcombine.low %v2918_v26, %v4226_v25  ;;  %v233_v0 = vld [vmem:[%s3431_s17 + $0xb4] sm:$0xe] }
  0xd3   : > { %v1213_v61 = vpop.permute.xlu0 %1212  ;;  %846 = vrot.lane.b32.xlu1 %v813_v31, %s3390_s19  ;;  %v1886_v31 = vsel %vm1876_vm3, %v3581_v39, %v4101_v19  ;;  %v1888_v19 = vsel %vm1876_vm3, %v3597_v52, %v4128_v2  ;;  %v668_v52 = vshrl.u32 %v4237_v3, 16  ;;  %v672_v2 = vrot.slane %v670_v43, 1  ;;  %v4319_v43 = vld [vmem:[%s3431_s17 + $0xd0] sm:$0xf] }
  0xd5   : > { %1866 = vrot.lane.b32.xlu0 %v1831_v56, %s3396_s25  ;;  %v4216_v9 = vpop.permute.xlu1 %1454  ;;  %v1919_v56 = vsel %vm1909_vm4, %v1886_v31, %v4174_v40  ;;  %v675_v40 = vshll.u32 %v4249_v62, 16 }
  0xd7   : > { %v1341_v49 = vpop.permute.xlu0 %1340  ;;  %958 = vrot.lane.b32.xlu1 %v2983_v30, %s3389_s18  ;;  %v4242_v30 = vcombine.low %v2882_v54, %v4226_v25  ;;  %v677_v55 = vrot.slane %v675_v40, 1  ;;  %v684_v25 = vrot.slane %v682_v5, 1  ;;  %v3371_v5 = vld [vmem:[%s3431_s17 + $0xd4] ss:$0 sps:$4 sm:$0x11]  }
  0xd9   : > { %844 = vrot.lane.b32.xlu0 %v810_v14, %s3390_s19  ;;  %v4239_v29 = vpop.permute.xlu1 %1726  ;;  %v1671_v39 = vshll.u32 %v4242_v30, 16  ;;  %v1669_v14 = vshrl.u32 %v4242_v30, 16 }
  0xdb   : > { %v1453_v22 = vpop.permute.xlu0 %1452  ;;  %1230 = vrot.lane.b32.xlu1 %v1179_v28, %s3392_s21  ;;  %v1673_v35 = vrot.slane %v1671_v39, 1  ;;  %v1676_v28 = vshll.u32 %v4269_v7, 16 }
  0xdd   : > { %956 = vrot.lane.b32.xlu0 %v2982_v1, %s3389_s18  ;;  %v4265_v53 = vpop.permute.xlu1 %703  ;;  %v1952_v1 = vsel %vm1942_vm5, %v1919_v56, %v4193_v46  ;;  %v4287_v46 = vld [vmem:[%s3431_s17 + $0xbc] ss:$0 sps:$4 sm:$0x11]   ;;  %v1674_v13 = vor.u32 %v1673_v35, %v1669_v14  ;;  %v1678_v31 = vrot.slane %v1676_v28, 1  ;;  %v2820_v14 = vld [vmem:[%s3431_s17 + $0xc0] sm:$0xf] }
  0xde   : > { %v1985_v24 = vsel %vm1975_vm6, %v1952_v1, %v1213_v61  ;;  %v1921_v61 = vsel %vm1909_vm4, %v1888_v19, %v4150_v34  ;;  %v687_v41 = vshll.u32 %v4287_v46, 16  ;;  %v1833_v19 = vrot.slane %v4269_v7, 1 }
  0xdf   : > { %v1725_v4 = vpop.permute.xlu0 %1724  ;;  %1358 = vrot.lane.b32.xlu1 %v1325_v27, %s3393_s22  ;;  %v2018_v51 = vsel %vm2008_vm7, %v1985_v24, %v1341_v49  ;;  %v1954_v49 = vsel %vm1942_vm5, %v1921_v61, %v4170_v12  ;;  %v680_v12 = vshrl.u32 %v4261_v10, 16  ;;  %v2822_v27 = vld [vmem:[%s3431_s17 + $0xcc] sm:$0xf]  ;;  %v2969_v1 = vcombine.low %v233_v0, %v4246_v15  ;;  %v232_v15 = vld [vmem:[%s3431_s17 + $0xa8] sm:$0xe] }
  0xe0   : > { %v2051_v57 = vsel %vm2041_vm8, %v2018_v51, %v1453_v22  ;;  %v1987_v34 = vsel %vm1975_vm6, %v1954_v49, %v4188_v32  ;;  %v1691_v22 = vsel %vm498_vm1, %v1686_v8, %v1690_v11  ;;  %v673_v32 = vor.u32 %v672_v2, %v668_v52 }
  0xe1   : > { %1228 = vrot.lane.b32.xlu0 %v1167_v50, %s3392_s21  ;;  %v4293_v54 = vpop.permute.xlu1 %705  ;;  %v2084_v16 = vsel %vm2074_vm9, %v2051_v57, %v1725_v4  ;;  %v2020_v47 = vsel %vm2008_vm7, %v1987_v34, %v4204_v44  ;;  %v2919_v50 = vld [vmem:[%s3431_s17 + $0xcc] sm:$0xe]  ;;  %v685_v4 = vor.u32 %v684_v25, %v680_v12  ;;  %v2985_v40 = vcombine.low %v2822_v27, %v4319_v43 }
  0xe2   : > { %v1679_v8 = vsel %vm498_vm1, %v1674_v13, %v1678_v31  ;;  %v3063_v7 = vcombine.low %v2919_v50, %v4202_v42  ;;  %v817_v52 = vrot.slane %v2969_v1, 1  ;;  %v818_v2 = vrot.slane %v4287_v46, 1  ;;  %v2854_v13 = vld [vmem:[%s3431_s17 + $0xc0] sm:$0xe]  ;;  %v4378_v1 = vld [vmem:[%s3431_s17 + $0xdc] sm:$0xf] }
  0xe3   : > { %v1853_v37 = vpop.permute.xlu0 %1852  ;;  %1470 = vrot.lane.b32.xlu1 %v4212_v48, %s3394_s23  ;;  %v2053_v48 = vsel %vm2041_vm8, %v2020_v47, %v4216_v9  ;;  %v1832_v9 = vrot.slane %v3062_v63, 1  ;;  %v1195_v42 = vshll.u32 %v2985_v40, 16  ;;  %v1836_v35 = vrot.slane %v4230_v59, 1 }
  0xe4   : > { %v2117_v21 = vsel %vm2107_vm10, %v2084_v16, %v1853_v37  ;;  %v2086_v44 = vsel %vm2074_vm9, %v2053_v48, %v4239_v29  ;;  %v678_v29 = vsel %vm498_vm1, %v673_v32, %v677_v55  ;;  %v1835_v57 = vrot.slane %v3063_v7, 1  ;;  %v4355_v55 = vld [vmem:[%s3431_s17 + $0xc8] ss:$0 sps:$4 sm:$0x11]   ;;  %v2888_v32 = vld [vmem:[%s3431_s17 + $0xe4] sm:$0xf] }
  0xe5   : > { %1356 = vrot.lane.b32.xlu0 %v1322_v6, %s3393_s22  ;;  %3186 = vmatprep.mubr.msk.bf16.mxu0 %vm2160_vm11, %v2117_v21  ;;  %v4315_v20 = vpop.permute.xlu1 %834  ;;  %v689_v6 = vrot.slane %v687_v41, 1  ;;  %v1834_v26 = vsel %vm771_vm0, %v1832_v9, %v1833_v19  ;;  %v2968_v28 = vcombine.low %v232_v15, %v4221_v36  ;;  %v815_v37 = vrot.slane %v4249_v62, 1  ;;  %v2855_v21 = vld [vmem:[%s3431_s17 + $0xcc] sm:$0xe]  ;;  %v4365_v62 = vld [vmem:[%s3431_s17 + $0xe8] sm:$0xf] }
  0xe6   : > { %v819_v46 = vsel %vm771_vm0, %v817_v52, %v818_v2  ;;  %v1193_v63 = vshrl.u32 %v2985_v40, 16  ;;  %v1197_v34 = vrot.slane %v1195_v42, 1  ;;  %v1200_v59 = vshll.u32 %v3371_v5, 16  ;;  %v2886_v19 = vld [vmem:[%s3431_s17 + $0xd8] sm:$0xf] }
  0xe7   : > { %v1855_v56 = vpop.permute.xlu0 %1854  ;;  %1742 = vrot.lane.b32.xlu1 %v1691_v22, %s3395_s24  ;;  %v690_v51 = vsel %vm498_vm1, %v685_v4, %v689_v6  ;;  %v1837_v22 = vsel %vm771_vm0, %v1835_v57, %v1836_v35  ;;  %v814_v12 = vrot.slane %v2968_v28, 1  ;;  %v3017_v48 = vcombine.low %v2855_v21, %v4319_v43  ;;  %v4382_v4 = vld [vmem:[%s3431_s17 + $0xec] ss:$0 sps:$4 sm:$0x11]  }
  0xe8   : > { %v2119_v39 = vsel %vm2107_vm10, %v2086_v44, %v1855_v56  ;;  %v1198_v41 = vor.u32 %v1197_v34, %v1193_v63  ;;  %v1202_v0 = vrot.slane %v1200_v59, 1  ;;  %v3033_v31 = vcombine.low %v2888_v32, %v4365_v62  ;;  %v2921_v34 = vld [vmem:[%s3431_s17 + $0xe4] sm:$0xe] }
  0xe9   : > { %1468 = vrot.lane.b32.xlu0 %v4242_v30, %s3394_s23  ;;  %3187 = vmatmul.mubr.msk.bf16.gmra.mxu0 %vm2160_vm11, %v2119_v39  ;;  %v4333_v24 = vpop.permute.xlu1 %946  ;;  %v2821_v30 = vld [vmem:[%s3431_s17 + $0xc4] sm:$0xf]  ;;  %v816_v44 = vsel %vm771_vm0, %v814_v12, %v815_v37  ;;  %v1188_v39 = vshll.u32 %v4355_v55, 16  ;;  %v1329_v6 = vrot.slane %v3017_v48, 1  ;;  %v1712_v2 = vshll.u32 %v4382_v4, 16 }
  0xea   : > { %v2984_v49 = vcombine.low %v2820_v14, %v2821_v30  ;;  %v1203_v43 = vsel %vm498_vm1, %v1198_v41, %v1202_v0  ;;  %v1707_v7 = vshll.u32 %v3033_v31, 16  ;;  %v1705_v57 = vshrl.u32 %v3033_v31, 16 }
  0xeb   : > { %v4337_v11 = vpop.permute.xlu0 %832  ;;  %719 = vrot.lane.b32.xlu1 %v678_v29, %s3391_s20  ;;  %v3016_v29 = vcombine.low %v2854_v13, %v2821_v30  ;;  %v1327_v30 = vrot.slane %v4355_v55, 1  ;;  %v3378_v55 = vld [vmem:[%s3431_s17 + $0xe0] ss:$0 sps:$4 sm:$0x11]   ;;  %v1714_v21 = vrot.slane %v1712_v2, 1  ;;  %v3065_v32 = vcombine.low %v2921_v34, %v4365_v62 }
  0xec   : > { %v1183_v47 = vshll.u32 %v2984_v49, 16  ;;  %v1181_v56 = vshrl.u32 %v2984_v49, 16  ;;  %v1709_v35 = vrot.slane %v1707_v7, 1  ;;  %v1700_v41 = vshll.u32 %v3378_v55, 16 }
  0xed   : > { %1740 = vrot.lane.b32.xlu0 %v1679_v8, %s3395_s24  ;;  %v4348_v61 = vpop.permute.xlu1 %1218  ;;  %v1330_v8 = vrot.slane %v3371_v5, 1  ;;  %v1890_v5 = vsel %vm1876_vm3, %v3671_v17, %v4265_v53  ;;  %v1892_v17 = vsel %vm1876_vm3, %v3691_v33, %v4293_v54 }
  0xee   : > { %v1185_v50 = vrot.slane %v1183_v47, 1  ;;  %v1923_v28 = vsel %vm1909_vm4, %v1890_v5, %v4337_v11  ;;  %v1710_v12 = vor.u32 %v1709_v35, %v1705_v57  ;;  %v1925_v33 = vsel %vm1909_vm4, %v1892_v17, %v4315_v20 }
  0xef   : > { %v945_v16 = vpop.permute.xlu0 %944  ;;  %721 = vrot.lane.b32.xlu1 %v690_v51, %s3391_s20  ;;  %v3032_v51 = vcombine.low %v2886_v19, %v4378_v1  ;;  %v1331_v42 = vsel %vm771_vm0, %v1329_v6, %v1330_v8  ;;  %v1958_v0 = vsel %vm1942_vm5, %v1925_v33, %v4333_v24 }
  0xf0   : > { %v1186_v14 = vor.u32 %v1185_v50, %v1181_v56  ;;  %v1956_v53 = vsel %vm1942_vm5, %v1923_v28, %v945_v16  ;;  %v1991_v56 = vsel %vm1975_vm6, %v1958_v0, %v4348_v61  ;;  %v1715_v24 = vsel %vm498_vm1, %v1710_v12, %v1714_v21 }
  0xf1   : > { %1868 = vrot.lane.b32.xlu0 %v1834_v26, %s3396_s25  ;;  %v4360_v36 = vpop.permute.xlu1 %1346  ;;  %v1190_v26 = vrot.slane %v1188_v39, 1  ;;  %v1695_v63 = vshll.u32 %v3032_v51, 16  ;;  %v1693_v47 = vshrl.u32 %v3032_v51, 16  ;;  %v1841_v50 = vrot.slane %v3065_v32, 1 }
  0xf2   : > { %v2024_v20 = vsel %vm2008_vm7, %v1991_v56, %v4360_v36  ;;  %v1842_v39 = vrot.slane %v4382_v4, 1 }
  0xf3   : > { %v1217_v25 = vpop.permute.xlu0 %1216  ;;  %850 = vrot.lane.b32.xlu1 %v819_v46, %s3390_s19  ;;  %v1191_v46 = vsel %vm498_vm1, %v1186_v14, %v1190_v26  ;;  %v1839_v14 = vrot.slane %v3378_v55, 1 }
  0xf4   : > { %v1989_v59 = vsel %vm1975_vm6, %v1956_v53, %v1217_v25  ;;  %v1697_v25 = vrot.slane %v1695_v63, 1  ;;  %v1843_v4 = vsel %vm771_vm0, %v1841_v50, %v1842_v39 }
  0xf5   : > { %1870 = vrot.lane.b32.xlu0 %v1837_v22, %s3396_s25  ;;  %v4372_v27 = vpop.permute.xlu1 %1458 }
  0xf6   : > { %v1698_v19 = vor.u32 %v1697_v25, %v1693_v47 }
  0xf7   : > { %v1345_v9 = vpop.permute.xlu0 %1344  ;;  %962 = vrot.lane.b32.xlu1 %v2985_v40, %s3389_s18  ;;  %v1326_v40 = vrot.slane %v3016_v29, 1  ;;  %v1702_v29 = vrot.slane %v1700_v41, 1 }
  0xf8   : > { %v2022_v22 = vsel %vm2008_vm7, %v1989_v59, %v1345_v9  ;;  %v2057_v9 = vsel %vm2041_vm8, %v2024_v20, %v4372_v27 }
  0xf9   : > { %848 = vrot.lane.b32.xlu0 %v816_v44, %s3390_s19  ;;  %v1731_v15 = vpop.permute.xlu1 %1730  ;;  %v1328_v11 = vsel %vm771_vm0, %v1326_v40, %v1327_v30  ;;  %v2920_v44 = vld [vmem:[%s3431_s17 + $0xd8] sm:$0xe]  ;;  %v1703_v27 = vsel %vm498_vm1, %v1698_v19, %v1702_v29 }
  0xfb   : > { %v1457_v52 = vpop.permute.xlu0 %1456  ;;  %1234 = vrot.lane.b32.xlu1 %v1203_v43, %s3392_s21  ;;  %v2090_v43 = vsel %vm2074_vm9, %v2057_v9, %v1731_v15 }
  0xfc   : > { %v2055_v54 = vsel %vm2041_vm8, %v2022_v22, %v1457_v52 }
  0xfd   : > { %960 = vrot.lane.b32.xlu0 %v2984_v49, %s3389_s18  ;;  %v4397_v37 = vpop.permute.xlu1 %707 }
  0xfe   : > { %v1894_v57 = vsel %vm1876_vm3, %v3775_v60, %v4397_v37 }
  0xff   : > { %v1729_v49 = vpop.permute.xlu0 %1728  ;;  %1362 = vrot.lane.b32.xlu1 %v1331_v42, %s3393_s22 }
 0x100   : > { %v2088_v48 = vsel %vm2074_vm9, %v2055_v54, %v1729_v49 }
 0x101   : > { %1232 = vrot.lane.b32.xlu0 %v1191_v46, %s3392_s21  ;;  %v710_v16 = vpop.permute.xlu1 %709 }
 0x102   : > { %v1896_v46 = vsel %vm1876_vm3, %v3793_v23, %v710_v16 }
 0x103   : > { %v1857_v13 = vpop.permute.xlu0 %1856  ;;  %1474 = vrot.lane.b32.xlu1 %v3033_v31, %s3394_s23  ;;  %v3064_v31 = vcombine.low %v2920_v44, %v4378_v1 }
 0x104   : > { %v2121_v62 = vsel %vm2107_vm10, %v2088_v48, %v1857_v13 }
 0x105   : > { %1360 = vrot.lane.b32.xlu0 %v1328_v11, %s3393_s22  ;;  %3190 = vmatprep.mubr.msk.bf16.mxu0 %vm2160_vm11, %v2121_v62  ;;  %v839_v61 = vpop.permute.xlu1 %838  ;;  %v1838_v7 = vrot.slane %v3064_v31, 1 }
 0x106   : > { %v1929_v53 = vsel %vm1909_vm4, %v1896_v46, %v839_v61 }
 0x107   : > { %v1859_v36 = vpop.permute.xlu0 %1858  ;;  %1746 = vrot.lane.b32.xlu1 %v1715_v24, %s3395_s24  ;;  %v1840_v15 = vsel %vm771_vm0, %v1838_v7, %v1839_v14 }
 0x108   : > { %v2123_v6 = vsel %vm2107_vm10, %v2090_v43, %v1859_v36 }
 0x109   : > { %1472 = vrot.lane.b32.xlu0 %v3032_v51, %s3394_s23  ;;  %3191 = vmatmul.mubr.msk.bf16.gmra.mxu0 %vm2160_vm11, %v2123_v6  ;;  %v951_v8 = vpop.permute.xlu1 %950 }
 0x10a   : > { %v1962_v60 = vsel %vm1942_vm5, %v1929_v53, %v951_v8 }
 0x10b   : > { %v837_v26 = vpop.permute.xlu0 %836  ;;  %1874 = vrot.lane.b32.xlu1 %v1843_v4, %s3396_s25 }
 0x10c   : > { %v1927_v35 = vsel %vm1909_vm4, %v1894_v57, %v837_v26 }
 0x10d   : > { %1744 = vrot.lane.b32.xlu0 %v1703_v27, %s3395_s24  ;;  %v1223_v1 = vpop.permute.xlu1 %1222 }
 0x10e   : > { %v1995_v21 = vsel %vm1975_vm6, %v1962_v60, %v1223_v1 }
 0x10f   : > { %v949_v52 = vpop.permute.xlu0 %948 }
 0x110   : > { %v1960_v55 = vsel %vm1942_vm5, %v1927_v35, %v949_v52 }
 0x111   : > { %1872 = vrot.lane.b32.xlu0 %v1840_v15, %s3396_s25  ;;  %v1351_v51 = vpop.permute.xlu1 %1350 }
 0x112   : > { %v2028_v22 = vsel %vm2008_vm7, %v1995_v21, %v1351_v51 }
 0x113   : > { %v1221_v40 = vpop.permute.xlu0 %1220 }
 0x114   : > { %v1993_v34 = vsel %vm1975_vm6, %v1960_v55, %v1221_v40 }
 0x115   : > { %v1463_v30 = vpop.permute.xlu1 %1462 }
 0x116   : > { %v2061_v12 = vsel %vm2041_vm8, %v2028_v22, %v1463_v30 }
 0x117   : > { %v1349_v2 = vpop.permute.xlu0 %1348 }
 0x118   : > { %v2026_v17 = vsel %vm2008_vm7, %v1993_v34, %v1349_v2 }
 0x119   : > { %v1735_v5 = vpop.permute.xlu1 %1734 }
 0x11a   : > { %v2094_v32 = vsel %vm2074_vm9, %v2061_v12, %v1735_v5 }
 0x11b   : > { %v1461_v42 = vpop.permute.xlu0 %1460 }
 0x11c   : > { %v2059_v49 = vsel %vm2041_vm8, %v2026_v17, %v1461_v42 }
 0x11d   : > { %v712_v28 = vpop.permute.xlu1 %711 }
 0x11e   : > { %v1898_v24 = vsel %vm1876_vm3, %v3908_v58, %v712_v28 }
 0x11f   : > { %v1733_v63 = vpop.permute.xlu0 %1732 }
 0x120   : > { %v2092_v37 = vsel %vm2074_vm9, %v2059_v49, %v1733_v63 }
 0x121   : > { %v714_v59 = vpop.permute.xlu1 %713 }
 0x122   : > { %v1900_v9 = vsel %vm1876_vm3, %v3935_v38, %v714_v59 }
 0x123   : > { %v1861_v11 = vpop.permute.xlu0 %1860 }
 0x124   : > { %v2125_v23 = vsel %vm2107_vm10, %v2092_v37, %v1861_v11 }
 0x125   : > { %3194 = vmatprep.mubr.msk.bf16.mxu1 %vm2160_vm11, %v2125_v23  ;;  %v843_v47 = vpop.permute.xlu1 %842 }
 0x126   : > { %v1933_v43 = vsel %vm1909_vm4, %v1900_v9, %v843_v47 }
 0x127   : > { %v1863_v33 = vpop.permute.xlu0 %1862 }
 0x128   : > { %v2127_v54 = vsel %vm2107_vm10, %v2094_v32, %v1863_v33 }
 0x129   : > { %3195 = vmatmul.mubr.msk.bf16.vlgmr.msra.gmra.mxu1 %vm2160_vm11, %v2127_v54  ;;  %v955_v16 = vpop.permute.xlu1 %954 }
 0x12a   : > { %v1966_v58 = vsel %vm1942_vm5, %v1933_v43, %v955_v16 }
 0x12b   : > { %v841_v25 = vpop.permute.xlu0 %840 }
 0x12c   : > { %v1931_v50 = vsel %vm1909_vm4, %v1898_v24, %v841_v25 }
 0x12d   : > { %v1227_v41 = vpop.permute.xlu1 %1226 }
 0x12e   : > { %v1999_v27 = vsel %vm1975_vm6, %v1966_v58, %v1227_v41 }
 0x12f   : > { %v953_v0 = vpop.permute.xlu0 %952 }
 0x130   : > { %v1964_v61 = vsel %vm1942_vm5, %v1931_v50, %v953_v0 }
 0x131   : > { %v1355_v48 = vpop.permute.xlu1 %1354 }
 0x132   : > { %v2032_v7 = vsel %vm2008_vm7, %v1999_v27, %v1355_v48 }
 0x133   : > { %v1225_v13 = vpop.permute.xlu0 %1224 }
 0x134   : > { %v1997_v29 = vsel %vm1975_vm6, %v1964_v61, %v1225_v13 }
 0x135   : > { %v1467_v44 = vpop.permute.xlu1 %1466 }
 0x136   : > { %v2065_v14 = vsel %vm2041_vm8, %v2032_v7, %v1467_v44 }
 0x137   : > { %v1353_v56 = vpop.permute.xlu0 %1352 }
 0x138   : > { %v2030_v31 = vsel %vm2008_vm7, %v1997_v29, %v1353_v56 }
 0x139   : > { %v1739_v62 = vpop.permute.xlu1 %1738 }
 0x13a   : > { %v2098_v1 = vsel %vm2074_vm9, %v2065_v14, %v1739_v62 }
 0x13b   : > { %v1465_v20 = vpop.permute.xlu0 %1464 }
 0x13c   : > { %v2063_v36 = vsel %vm2041_vm8, %v2030_v31, %v1465_v20 }
 0x13d   : > { %v716_v39 = vpop.permute.xlu1 %715 }
 0x13e   : > { %v1902_v55 = vsel %vm1876_vm3, %v4069_v45, %v716_v39 }
 0x13f   : > { %v1737_v19 = vpop.permute.xlu0 %1736 }
 0x140   : > { %v2096_v4 = vsel %vm2074_vm9, %v2063_v36, %v1737_v19 }
 0x141   : > { %v718_v6 = vpop.permute.xlu1 %717 }
 0x142   : > { %v1904_v17 = vsel %vm1876_vm3, %v4097_v18, %v718_v6 }
 0x143   : > { %v1865_v8 = vpop.permute.xlu0 %1864 }
 0x144   : > { %v2129_v38 = vsel %vm2107_vm10, %v2096_v4, %v1865_v8 }
 0x145   : > { %3198 = vmatprep.mubr.msk.bf16.mxu1 %vm2160_vm11, %v2129_v38  ;;  %v847_v26 = vpop.permute.xlu1 %846 }
 0x146   : > { %v1937_v37 = vsel %vm1909_vm4, %v1904_v17, %v847_v26 }
 0x147   : > { %v1867_v15 = vpop.permute.xlu0 %1866 }
 0x148   : > { %v2131_v52 = vsel %vm2107_vm10, %v2098_v1, %v1867_v15 }
 0x149   : > { %3199 = vmatmul.mubr.msk.bf16.gmra.mxu1 %vm2160_vm11, %v2131_v52  ;;  %v959_v51 = vpop.permute.xlu1 %958 }
 0x14a   : > { %v1970_v21 = vsel %vm1942_vm5, %v1937_v37, %v959_v51 }
 0x14b   : > { %v845_v40 = vpop.permute.xlu0 %844 }
 0x14c   : > { %v1935_v63 = vsel %vm1909_vm4, %v1902_v55, %v845_v40 }
 0x14d   : > { %v1231_v30 = vpop.permute.xlu1 %1230 }
 0x14e   : > { %v2003_v18 = vsel %vm1975_vm6, %v1970_v21, %v1231_v30 }
 0x14f   : > { %v957_v2 = vpop.permute.xlu0 %956 }
 0x150   : > { %v1968_v53 = vsel %vm1942_vm5, %v1935_v63, %v957_v2 }
 0x151   : > { %v1359_v5 = vpop.permute.xlu1 %1358 }
 0x152   : > { %v2036_v47 = vsel %vm2008_vm7, %v2003_v18, %v1359_v5 }
 0x153   : > { %v1229_v42 = vpop.permute.xlu0 %1228 }
 0x154   : > { %v2001_v59 = vsel %vm1975_vm6, %v1968_v53, %v1229_v42 }
 0x155   : > { %v1471_v57 = vpop.permute.xlu1 %1470 }
 0x156   : > { %v2069_v32 = vsel %vm2041_vm8, %v2036_v47, %v1471_v57 }
 0x157   : > { %v1357_v35 = vpop.permute.xlu0 %1356 }
 0x158   : > { %v2034_v60 = vsel %vm2008_vm7, %v2001_v59, %v1357_v35 }
 0x159   : > { %v1743_v28 = vpop.permute.xlu1 %1742 }
 0x15a   : > { %v2102_v54 = vsel %vm2074_vm9, %v2069_v32, %v1743_v28 }
 0x15b   : > { %v1469_v46 = vpop.permute.xlu0 %1468 }
 0x15c   : > { %v2067_v11 = vsel %vm2041_vm8, %v2034_v60, %v1469_v46 }
 0x15d   : > { %v4488_v34 = vpop.permute.xlu1 %719 }
 0x15e   : > { %v1906_v35 = vsel %vm1876_vm3, %v4237_v3, %v4488_v34 }
 0x15f   : > { %v1741_v49 = vpop.permute.xlu0 %1740 }
 0x160   : > { %v2100_v23 = vsel %vm2074_vm9, %v2067_v11, %v1741_v49 }
 0x161   : > { %v722_v45 = vpop.permute.xlu1 %721 }
 0x162   : > { %v1908_v42 = vsel %vm1876_vm3, %v4261_v10, %v722_v45 }
 0x163   : > { %v1869_v22 = vpop.permute.xlu0 %1868 }
 0x164   : > { %v2133_v12 = vsel %vm2107_vm10, %v2100_v23, %v1869_v22 }
 0x165   : > { %3202 = vmatprep.mubr.msk.bf16.mxu1 %vm2160_vm11, %v2133_v12  ;;  %v851_v33 = vpop.permute.xlu1 %850 }
 0x166   : > { %v1941_v46 = vsel %vm1909_vm4, %v1908_v42, %v851_v33 }
 0x167   : > { %v1871_v16 = vpop.permute.xlu0 %1870 }
 0x168   : > { %v2135_v25 = vsel %vm2107_vm10, %v2102_v54, %v1871_v16 }
 0x169   : > { %v3180_v41 = vpop.f32.mrf.mxu0  ;;  %3203 = vmatmul.mubr.msk.bf16.gmra.mxu1 %vm2160_vm11, %v2135_v25  ;;  %v963_v48 = vpop.permute.xlu1 %962 }
 0x16a   : > { %v3123_v0 = vpack.c.bf16 %v3180_v41, %v3180_v41  ;;  %v2592_v39 = vmul.f32 %v3180_v41, %v3180_v41  ;;  %v2522_v6 = vsel %vm1909_vm4, %v3180_v41, 0.0  ;;  %v1974_v17 = vsel %vm1942_vm5, %v1941_v46, %v963_v48 }
 0x16b   : > { %v2231_v13 = vpop.f32.mrf.mxu0  ;;  %v849_v44 = vpop.permute.xlu0 %848 }
 0x16c   : > { %2489 = vst.msk [vmem:[%s4509_s9 + $0x8] sm:$0xf] %vm2486_vm12, %v3123_v0  ;;  %v3121_v56 = vpack.c.bf16 %v2231_v13, %v2231_v13  ;;  %v2590_v20 = vmul.f32 %v2231_v13, %v2231_v13  ;;  %v2519_v19 = vsel %vm1909_vm4, %v2231_v13, 0.0  ;;  %v2625_v26 = vsel %vm1909_vm4, %v2592_v39, 0.0 }
 0x16d   : > { %v3181_v62 = vpop.f32.mrf.mxu0  ;;  %v1235_v50 = vpop.permute.xlu1 %1234  ;;  %v1939_v28 = vsel %vm1909_vm4, %v1906_v35, %v849_v44 }
 0x16e   : > { %2487 = vst.msk [vmem:[%s4509_s9] sm:$0xf] %vm2486_vm12, %v3121_v56  ;;  %v3124_v24 = vpack.c.bf16 %v3181_v62, %v3181_v62  ;;  %v2622_v58 = vsel %vm1909_vm4, %v2590_v20, 0.0  ;;  %v2593_v4 = vmul.f32 %v3181_v62, %v3181_v62  ;;  %v2524_v1 = vsel %vm1909_vm4, %v3181_v62, 0.0 }
 0x16f   : > { %v2234_v9 = vpop.f32.mrf.mxu0  ;;  %v961_v61 = vpop.permute.xlu0 %960  ;;  %v2007_v49 = vsel %vm1975_vm6, %v1974_v17, %v1235_v50 }
 0x170   : > { %2490 = vst.msk [vmem:[%s4509_s9 + $0xc] sm:$0xf] %vm2486_vm12, %v3124_v24  ;;  %v3122_v29 = vpack.c.bf16 %v2234_v9, %v2234_v9  ;;  %v2520_v31 = vsel %vm1909_vm4, %v2234_v9, 0.0  ;;  %v2591_v43 = vmul.f32 %v2234_v9, %v2234_v9  ;;  %v2627_v51 = vsel %vm1909_vm4, %v2593_v4, 0.0 }
 0x171   : > { %v2521_v36 = vadd.f32 %v2520_v31, %v2519_v19  ;;  %v1363_v27 = vpop.permute.xlu1 %1362  ;;  %v1972_v55 = vsel %vm1942_vm5, %v1939_v28, %v961_v61 }
 0x172   : > { %2488 = vst.msk [vmem:[%s4509_s9 + $0x4] sm:$0xf] %vm2486_vm12, %v3122_v29  ;;  %v2623_v8 = vsel %vm1909_vm4, %v2591_v43, 0.0  ;;  %v2040_v59 = vsel %vm2008_vm7, %v2007_v49, %v1363_v27 }
 0x173   : > { %v2523_v38 = vadd.f32 %v2522_v6, %v2521_v36  ;;  %v2624_v7 = vadd.f32 %v2623_v8, %v2622_v58  ;;  %v1233_v14 = vpop.permute.xlu0 %1232 }
 0x174   : > { %v2005_v53 = vsel %vm1975_vm6, %v1972_v55, %v1233_v14 }
 0x175   : > { %v2626_v15 = vadd.f32 %v2625_v26, %v2624_v7  ;;  %v2525_v52 = vadd.f32 %v2524_v1, %v2523_v38  ;;  %v1475_v40 = vpop.permute.xlu1 %1474 }
 0x176   : > { %v2073_v60 = vsel %vm2041_vm8, %v2040_v59, %v1475_v40 }
 0x177   : > { %v1361_v30 = vpop.permute.xlu0 %1360  ;;  %v2628_v2 = vadd.f32 %v2627_v51, %v2626_v15 }
 0x178   : > { %v2038_v10 = vsel %vm2008_vm7, %v2005_v53, %v1361_v30 }
 0x179   : > { %v1747_v57 = vpop.permute.xlu1 %1746 }
 0x17a   : > { %v2106_v45 = vsel %vm2074_vm9, %v2073_v60, %v1747_v57 }
 0x17b   : > { %v1473_v5 = vpop.permute.xlu0 %1472 }
 0x17c   : > { %v2071_v3 = vsel %vm2041_vm8, %v2038_v10, %v1473_v5 }
 0x17d   : > { %v1875_v34 = vpop.permute.xlu1 %1874 }
 0x17e   : > { %v2139_v23 = vsel %vm2107_vm10, %v2106_v45, %v1875_v34 }
 0x17f   : > { %v1745_v63 = vpop.permute.xlu0 %1744 }
 0x180   : > { %v2104_v37 = vsel %vm2074_vm9, %v2071_v3, %v1745_v63 }
 0x183   : > { %v1873_v11 = vpop.permute.xlu0 %1872 }
 0x184   : > { %v2137_v21 = vsel %vm2107_vm10, %v2104_v37, %v1873_v11 }
 0x185   : > { %3206 = vmatprep.mubr.msk.bf16.mxu1 %vm2160_vm11, %v2137_v21 }
 0x186   : > { %3207 = vmatmul.mubr.msk.bf16.gmra.mxu1 %vm2160_vm11, %v2139_v23 }
 0x189   : > { %v3184_v22 = vpop.f32.mrf.mxu0 }
 0x18a   : > { %v3127_v18 = vpack.c.bf16 %v3184_v22, %v3184_v22  ;;  %v2596_v13 = vmul.f32 %v3184_v22, %v3184_v22  ;;  %v2530_v24 = vsel %vm1909_vm4, %v3184_v22, 0.0 }
 0x18b   : > { %v2247_v12 = vpop.f32.mrf.mxu0 }
 0x18c   : > { %2493 = vst.msk [vmem:[%s4509_s9 + $0x18] sm:$0xf] %vm2486_vm12, %v3127_v18  ;;  %v3125_v47 = vpack.c.bf16 %v2247_v12, %v2247_v12  ;;  %v2526_v32 = vsel %vm1909_vm4, %v2247_v12, 0.0  ;;  %v2594_v33 = vmul.f32 %v2247_v12, %v2247_v12  ;;  %v2633_v19 = vsel %vm1909_vm4, %v2596_v13, 0.0 }
 0x18d   : > { %v2527_v54 = vadd.f32 %v2526_v32, %v2525_v52  ;;  %v3185_v16 = vpop.f32.mrf.mxu0 }
 0x18e   : > { %2491 = vst.msk [vmem:[%s4509_s9 + $0x10] sm:$0xf] %vm2486_vm12, %v3125_v47  ;;  %v2629_v25 = vsel %vm1909_vm4, %v2594_v33, 0.0  ;;  %v3128_v41 = vpack.c.bf16 %v3185_v16, %v3185_v16  ;;  %v2597_v50 = vmul.f32 %v3185_v16, %v3185_v16  ;;  %v2532_v29 = vsel %vm1909_vm4, %v3185_v16, 0.0 }
 0x18f   : > { %v2630_v0 = vadd.f32 %v2629_v25, %v2628_v2  ;;  %v2250_v48 = vpop.f32.mrf.mxu0 }
 0x190   : > { %2494 = vst.msk [vmem:[%s4509_s9 + $0x1c] sm:$0xf] %vm2486_vm12, %v3128_v41  ;;  %v3126_v44 = vpack.c.bf16 %v2250_v48, %v2250_v48  ;;  %v2528_v56 = vsel %vm1909_vm4, %v2250_v48, 0.0  ;;  %v2595_v62 = vmul.f32 %v2250_v48, %v2250_v48  ;;  %v2635_v36 = vsel %vm1909_vm4, %v2597_v50, 0.0 }
 0x191   : > { %v2529_v20 = vadd.f32 %v2528_v56, %v2527_v54 }
 0x192   : > { %2492 = vst.msk [vmem:[%s4509_s9 + $0x14] sm:$0xf] %vm2486_vm12, %v3126_v44  ;;  %v2631_v39 = vsel %vm1909_vm4, %v2595_v62, 0.0 }
 0x193   : > { %v2531_v9 = vadd.f32 %v2530_v24, %v2529_v20  ;;  %v2632_v61 = vadd.f32 %v2631_v39, %v2630_v0 }
 0x195   : > { %v2634_v31 = vadd.f32 %v2633_v19, %v2632_v61  ;;  %v2533_v43 = vadd.f32 %v2532_v29, %v2531_v9 }
 0x197   : > { %v2636_v6 = vadd.f32 %v2635_v36, %v2634_v31 }
 0x1a9   : > { %v3188_v58 = vpop.f32.mrf.mxu0 }
 0x1aa   : > { %v3131_v4 = vpack.c.bf16 %v3188_v58, %v3188_v58  ;;  %v2600_v40 = vmul.f32 %v3188_v58, %v3188_v58  ;;  %v2538_v57 = vsel %vm1909_vm4, %v3188_v58, 0.0 }
 0x1ab   : > { %v2263_v8 = vpop.f32.mrf.mxu0 }
 0x1ac   : > { %2497 = vst.msk [vmem:[%s4509_s9 + $0x28] sm:$0xf] %vm2486_vm12, %v3131_v4  ;;  %v3129_v27 = vpack.c.bf16 %v2263_v8, %v2263_v8  ;;  %v2534_v38 = vsel %vm1909_vm4, %v2263_v8, 0.0  ;;  %v2598_v7 = vmul.f32 %v2263_v8, %v2263_v8  ;;  %v2641_v63 = vsel %vm1909_vm4, %v2600_v40, 0.0 }
 0x1ad   : > { %v2535_v14 = vadd.f32 %v2534_v38, %v2533_v43  ;;  %v3189_v26 = vpop.f32.mrf.mxu0 }
 0x1ae   : > { %2495 = vst.msk [vmem:[%s4509_s9 + $0x20] sm:$0xf] %vm2486_vm12, %v3129_v27  ;;  %v2637_v1 = vsel %vm1909_vm4, %v2598_v7, 0.0  ;;  %v3132_v15 = vpack.c.bf16 %v3189_v26, %v3189_v26  ;;  %v2601_v35 = vmul.f32 %v3189_v26, %v3189_v26  ;;  %v2540_v17 = vsel %vm1909_vm4, %v3189_v26, 0.0 }
 0x1af   : > { %v2638_v52 = vadd.f32 %v2637_v1, %v2636_v6  ;;  %v2266_v51 = vpop.f32.mrf.mxu0 }
 0x1b0   : > { %2498 = vst.msk [vmem:[%s4509_s9 + $0x2c] sm:$0xf] %vm2486_vm12, %v3132_v15  ;;  %v3130_v30 = vpack.c.bf16 %v2266_v51, %v2266_v51  ;;  %v2536_v2 = vsel %vm1909_vm4, %v2266_v51, 0.0  ;;  %v2599_v5 = vmul.f32 %v2266_v51, %v2266_v51  ;;  %v2643_v10 = vsel %vm1909_vm4, %v2601_v35, 0.0 }
 0x1b1   : > { %v2537_v42 = vadd.f32 %v2536_v2, %v2535_v14 }
 0x1b2   : > { %2496 = vst.msk [vmem:[%s4509_s9 + $0x24] sm:$0xf] %vm2486_vm12, %v3130_v30  ;;  %v2639_v28 = vsel %vm1909_vm4, %v2599_v5, 0.0 }
 0x1b3   : > { %v2539_v46 = vadd.f32 %v2538_v57, %v2537_v42  ;;  %v2640_v55 = vadd.f32 %v2639_v28, %v2638_v52 }
 0x1b5   : > { %v2642_v53 = vadd.f32 %v2641_v63, %v2640_v55  ;;  %v2541_v49 = vadd.f32 %v2540_v17, %v2539_v46 }
 0x1b7   : > { %v2644_v59 = vadd.f32 %v2643_v10, %v2642_v53 }
 0x1c9   : > { %v3192_v3 = vpop.f32.mrf.mxu0 }
 0x1ca   : > { %v3135_v34 = vpack.c.bf16 %v3192_v3, %v3192_v3  ;;  %v2604_v32 = vmul.f32 %v3192_v3, %v3192_v3  ;;  %v2546_v41 = vsel %vm1909_vm4, %v3192_v3, 0.0 }
 0x1cb   : > { %v2279_v60 = vpop.f32.mrf.mxu0 }
 0x1cc   : > { %2501 = vst.msk [vmem:[%s4509_s9 + $0x38] sm:$0xf] %vm2486_vm12, %v3135_v34  ;;  %v3133_v37 = vpack.c.bf16 %v2279_v60, %v2279_v60  ;;  %v2542_v11 = vsel %vm1909_vm4, %v2279_v60, 0.0  ;;  %v2602_v45 = vmul.f32 %v2279_v60, %v2279_v60  ;;  %v2649_v56 = vsel %vm1909_vm4, %v2604_v32, 0.0 }
 0x1cd   : > { %v2543_v21 = vadd.f32 %v2542_v11, %v2541_v49  ;;  %v3193_v23 = vpop.f32.mrf.mxu0 }
 0x1ce   : > { %2499 = vst.msk [vmem:[%s4509_s9 + $0x30] sm:$0xf] %vm2486_vm12, %v3133_v37  ;;  %v2645_v22 = vsel %vm1909_vm4, %v2602_v45, 0.0  ;;  %v3136_v18 = vpack.c.bf16 %v3193_v23, %v3193_v23  ;;  %v2605_v0 = vmul.f32 %v3193_v23, %v3193_v23  ;;  %v2548_v62 = vsel %vm1909_vm4, %v3193_v23, 0.0 }
 0x1cf   : > { %v2646_v12 = vadd.f32 %v2645_v22, %v2644_v59  ;;  %v2282_v47 = vpop.f32.mrf.mxu0 }
 0x1d0   : > { %2502 = vst.msk [vmem:[%s4509_s9 + $0x3c] sm:$0xf] %vm2486_vm12, %v3136_v18  ;;  %v3134_v33 = vpack.c.bf16 %v2282_v47, %v2282_v47  ;;  %v2544_v54 = vsel %vm1909_vm4, %v2282_v47, 0.0  ;;  %v2603_v16 = vmul.f32 %v2282_v47, %v2282_v47  ;;  %v2651_v50 = vsel %vm1909_vm4, %v2605_v0, 0.0 }
 0x1d1   : > { %v2545_v25 = vadd.f32 %v2544_v54, %v2543_v21 }
 0x1d2   : > { %2500 = vst.msk [vmem:[%s4509_s9 + $0x34] sm:$0xf] %vm2486_vm12, %v3134_v33  ;;  %v2647_v48 = vsel %vm1909_vm4, %v2603_v16, 0.0 }
 0x1d3   : > { %v2547_v13 = vadd.f32 %v2546_v41, %v2545_v25  ;;  %v2648_v44 = vadd.f32 %v2647_v48, %v2646_v12 }
 0x1d5   : > { %v2650_v20 = vadd.f32 %v2649_v56, %v2648_v44  ;;  %v2549_v24 = vadd.f32 %v2548_v62, %v2547_v13 }
 0x1d7   : > { %v2652_v39 = vadd.f32 %v2651_v50, %v2650_v20 }
 0x1e9   : > { %v3196_v9 = vpop.f32.mrf.mxu1 }
 0x1ea   : > { %v3139_v61 = vpack.c.bf16 %v3196_v9, %v3196_v9  ;;  %v2608_v38 = vmul.f32 %v3196_v9, %v3196_v9  ;;  %v2554_v15 = vsel %vm1909_vm4, %v3196_v9, 0.0 }
 0x1eb   : > { %v2295_v19 = vpop.f32.mrf.mxu1 }
 0x1ec   : > { %2505 = vst.msk [vmem:[%s4509_s9 + $0x48] sm:$0xf] %vm2486_vm12, %v3139_v61  ;;  %v3137_v29 = vpack.c.bf16 %v2295_v19, %v2295_v19  ;;  %v2550_v31 = vsel %vm1909_vm4, %v2295_v19, 0.0  ;;  %v2606_v43 = vmul.f32 %v2295_v19, %v2295_v19  ;;  %v2657_v2 = vsel %vm1909_vm4, %v2608_v38, 0.0 }
 0x1ed   : > { %v2551_v36 = vadd.f32 %v2550_v31, %v2549_v24  ;;  %v3197_v6 = vpop.f32.mrf.mxu1 }
 0x1ee   : > { %2503 = vst.msk [vmem:[%s4509_s9 + $0x40] sm:$0xf] %vm2486_vm12, %v3137_v29  ;;  %v2653_v58 = vsel %vm1909_vm4, %v2606_v43, 0.0  ;;  %v3140_v4 = vpack.c.bf16 %v3197_v6, %v3197_v6  ;;  %v2609_v52 = vmul.f32 %v3197_v6, %v3197_v6  ;;  %v2556_v5 = vsel %vm1909_vm4, %v3197_v6, 0.0 }
 0x1ef   : > { %v2654_v8 = vadd.f32 %v2653_v58, %v2652_v39  ;;  %v2298_v27 = vpop.f32.mrf.mxu1 }
 0x1f0   : > { %2506 = vst.msk [vmem:[%s4509_s9 + $0x4c] sm:$0xf] %vm2486_vm12, %v3140_v4  ;;  %v3138_v7 = vpack.c.bf16 %v2298_v27, %v2298_v27  ;;  %v2552_v14 = vsel %vm1909_vm4, %v2298_v27, 0.0  ;;  %v2607_v26 = vmul.f32 %v2298_v27, %v2298_v27  ;;  %v2659_v35 = vsel %vm1909_vm4, %v2609_v52, 0.0 }
 0x1f1   : > { %v2553_v1 = vadd.f32 %v2552_v14, %v2551_v36 }
 0x1f2   : > { %2504 = vst.msk [vmem:[%s4509_s9 + $0x44] sm:$0xf] %vm2486_vm12, %v3138_v7  ;;  %v2655_v51 = vsel %vm1909_vm4, %v2607_v26, 0.0 }
 0x1f3   : > { %v2555_v40 = vadd.f32 %v2554_v15, %v2553_v1  ;;  %v2656_v30 = vadd.f32 %v2655_v51, %v2654_v8 }
 0x1f5   : > { %v2658_v42 = vadd.f32 %v2657_v2, %v2656_v30  ;;  %v2557_v57 = vadd.f32 %v2556_v5, %v2555_v40 }
 0x1f7   : > { %v2660_v28 = vadd.f32 %v2659_v35, %v2658_v42 }
 0x209   : > { %v3200_v46 = vpop.f32.mrf.mxu1 }
 0x20a   : > { %v3143_v55 = vpack.c.bf16 %v3200_v46, %v3200_v46  ;;  %v2612_v41 = vmul.f32 %v3200_v46, %v3200_v46  ;;  %v2562_v48 = vsel %vm1909_vm4, %v3200_v46, 0.0 }
 0x20b   : > { %v2311_v63 = vpop.f32.mrf.mxu1 }
 0x20c   : > { %2509 = vst.msk [vmem:[%s4509_s9 + $0x58] sm:$0xf] %vm2486_vm12, %v3143_v55  ;;  %v3141_v17 = vpack.c.bf16 %v2311_v63, %v2311_v63  ;;  %v2610_v21 = vmul.f32 %v2311_v63, %v2311_v63  ;;  %v2558_v18 = vsel %vm1909_vm4, %v2311_v63, 0.0  ;;  %v2665_v44 = vsel %vm1909_vm4, %v2612_v41, 0.0 }
 0x20d   : > { %v3201_v53 = vpop.f32.mrf.mxu1  ;;  %v2559_v33 = vadd.f32 %v2558_v18, %v2557_v57 }
 0x20e   : > { %2507 = vst.msk [vmem:[%s4509_s9 + $0x50] sm:$0xf] %vm2486_vm12, %v3141_v17  ;;  %v3144_v49 = vpack.c.bf16 %v3201_v53, %v3201_v53  ;;  %v2661_v47 = vsel %vm1909_vm4, %v2610_v21, 0.0  ;;  %v2613_v56 = vmul.f32 %v3201_v53, %v3201_v53  ;;  %v2564_v24 = vsel %vm1909_vm4, %v3201_v53, 0.0 }
 0x20f   : > { %v2314_v10 = vpop.f32.mrf.mxu1  ;;  %v2662_v16 = vadd.f32 %v2661_v47, %v2660_v28 }
 0x210   : > { %2510 = vst.msk [vmem:[%s4509_s9 + $0x5c] sm:$0xf] %vm2486_vm12, %v3144_v49  ;;  %v3142_v59 = vpack.c.bf16 %v2314_v10, %v2314_v10  ;;  %v2611_v12 = vmul.f32 %v2314_v10, %v2314_v10  ;;  %v2560_v32 = vsel %vm1909_vm4, %v2314_v10, 0.0  ;;  %v2667_v61 = vsel %vm1909_vm4, %v2613_v56, 0.0 }
 0x211   : > { %v2561_v25 = vadd.f32 %v2560_v32, %v2559_v33 }
 0x212   : > { %2508 = vst.msk [vmem:[%s4509_s9 + $0x54] sm:$0xf] %vm2486_vm12, %v3142_v59  ;;  %v2663_v54 = vsel %vm1909_vm4, %v2611_v12, 0.0 }
 0x213   : > { %v2664_v0 = vadd.f32 %v2663_v54, %v2662_v16  ;;  %v2563_v13 = vadd.f32 %v2562_v48, %v2561_v25 }
 0x215   : > { %v2666_v20 = vadd.f32 %v2665_v44, %v2664_v0  ;;  %v2565_v9 = vadd.f32 %v2564_v24, %v2563_v13 }
 0x217   : > { %v2668_v43 = vadd.f32 %v2667_v61, %v2666_v20 }
 0x229   : > { %v3204_v3 = vpop.f32.mrf.mxu1 }
 0x22a   : > { %v3147_v34 = vpack.c.bf16 %v3204_v3, %v3204_v3  ;;  %v2616_v4 = vmul.f32 %v3204_v3, %v3204_v3  ;;  %v2570_v27 = vsel %vm1909_vm4, %v3204_v3, 0.0 }
 0x22b   : > { %v2327_v60 = vpop.f32.mrf.mxu1 }
 0x22c   : > { %2513 = vst.msk [vmem:[%s4509_s9 + $0x68] sm:$0xf] %vm2486_vm12, %v3147_v34  ;;  %v3145_v37 = vpack.c.bf16 %v2327_v60, %v2327_v60  ;;  %v2614_v62 = vmul.f32 %v2327_v60, %v2327_v60  ;;  %v2566_v50 = vsel %vm1909_vm4, %v2327_v60, 0.0  ;;  %v2673_v14 = vsel %vm1909_vm4, %v2616_v4, 0.0 }
 0x22d   : > { %v3205_v11 = vpop.f32.mrf.mxu1  ;;  %v2567_v31 = vadd.f32 %v2566_v50, %v2565_v9 }
 0x22e   : > { %2511 = vst.msk [vmem:[%s4509_s9 + $0x60] sm:$0xf] %vm2486_vm12, %v3145_v37  ;;  %v3148_v45 = vpack.c.bf16 %v3205_v11, %v3205_v11  ;;  %v2669_v19 = vsel %vm1909_vm4, %v2614_v62, 0.0  ;;  %v2617_v26 = vmul.f32 %v3205_v11, %v3205_v11  ;;  %v2572_v51 = vsel %vm1909_vm4, %v3205_v11, 0.0 }
 0x22f   : > { %v2330_v23 = vpop.f32.mrf.mxu1  ;;  %v2670_v6 = vadd.f32 %v2669_v19, %v2668_v43 }
 0x230   : > { %2514 = vst.msk [vmem:[%s4509_s9 + $0x6c] sm:$0xf] %vm2486_vm12, %v3148_v45  ;;  %v3146_v22 = vpack.c.bf16 %v2330_v23, %v2330_v23  ;;  %v2615_v39 = vmul.f32 %v2330_v23, %v2330_v23  ;;  %v2568_v29 = vsel %vm1909_vm4, %v2330_v23, 0.0  ;;  %v2675_v57 = vsel %vm1909_vm4, %v2617_v26, 0.0 }
 0x231   : > { %v2569_v58 = vadd.f32 %v2568_v29, %v2567_v31 }
 0x232   : > { %2512 = vst.msk [vmem:[%s4509_s9 + $0x64] sm:$0xf] %vm2486_vm12, %v3146_v22  ;;  %v2671_v36 = vsel %vm1909_vm4, %v2615_v39, 0.0 }
 0x233   : > { %v2672_v8 = vadd.f32 %v2671_v36, %v2670_v6  ;;  %v2571_v38 = vadd.f32 %v2570_v27, %v2569_v58 }
 0x235   : > { %v2674_v15 = vadd.f32 %v2673_v14, %v2672_v8  ;;  %v2573_v5 = vadd.f32 %v2572_v51, %v2571_v38 }
 0x237   : > { %v2676_v55 = vadd.f32 %v2675_v57, %v2674_v15 }
 0x246   : > { %v3208_v7 = vpop.f32.mrf.mxu1 }
 0x247   : > { %v3151_v1 = vpack.c.bf16 %v3208_v7, %v3208_v7  ;;  %v2620_v17 = vmul.f32 %v3208_v7, %v3208_v7  ;;  %v2578_v34 = vsel %vm1909_vm4, %v3208_v7, 0.0 }
 0x248   : > { %v2343_v52 = vpop.f32.mrf.mxu1 }
 0x249   : > { %2517 = vst.msk [vmem:[%s4509_s9 + $0x78] sm:$0xf] %vm2486_vm12, %v3151_v1  ;;  %v3149_v40 = vpack.c.bf16 %v2343_v52, %v2343_v52  ;;  %v2574_v30 = vsel %vm1909_vm4, %v2343_v52, 0.0  ;;  %v2618_v2 = vmul.f32 %v2343_v52, %v2343_v52  ;;  %v2681_v21 = vsel %vm1909_vm4, %v2620_v17, 0.0 }
 0x24a   : > { %v3209_v42 = vpop.f32.mrf.mxu1  ;;  %v2575_v46 = vadd.f32 %v2574_v30, %v2573_v5 }
 0x24b   : > { %2515 = vst.msk [vmem:[%s4509_s9 + $0x70] sm:$0xf] %vm2486_vm12, %v3149_v40  ;;  %v2677_v35 = vsel %vm1909_vm4, %v2618_v2, 0.0  ;;  %v3152_v28 = vpack.c.bf16 %v3209_v42, %v3209_v42  ;;  %v2621_v60 = vmul.f32 %v3209_v42, %v3209_v42  ;;  %v2580_v23 = vsel %vm1909_vm4, %v3209_v42, 0.0 }
 0x24c   : > { %v2346_v63 = vpop.f32.mrf.mxu1  ;;  %v2678_v59 = vadd.f32 %v2677_v35, %v2676_v55 }
 0x24d   : > { %2518 = vst.msk [vmem:[%s4509_s9 + $0x7c] sm:$0xf] %vm2486_vm12, %v3152_v28  ;;  %v3150_v53 = vpack.c.bf16 %v2346_v63, %v2346_v63  ;;  %v2576_v49 = vsel %vm1909_vm4, %v2346_v63, 0.0  ;;  %v2619_v10 = vmul.f32 %v2346_v63, %v2346_v63  ;;  %v2683_v12 = vsel %vm1909_vm4, %v2621_v60, 0.0 }
 0x24e   : > { %v2577_v3 = vadd.f32 %v2576_v49, %v2575_v46 }
 0x24f   : > { %2516 = vst.msk [vmem:[%s4509_s9 + $0x74] sm:$0xf] %vm2486_vm12, %v3150_v53  ;;  %v2679_v37 = vsel %vm1909_vm4, %v2619_v10, 0.0 }
 0x250   : > { %v2579_v11 = vadd.f32 %v2578_v34, %v2577_v3  ;;  %v2680_v45 = vadd.f32 %v2679_v37, %v2678_v59 }
 0x252   : > { %v2581_v22 = vadd.f32 %v2580_v23, %v2579_v11  ;;  %v2682_v18 = vadd.f32 %v2681_v21, %v2680_v45 }
 0x254   : > { %v2582_v47 = vrot.slane %v2581_v22, 4  ;;  %v2684_v32 = vadd.f32 %v2683_v12, %v2682_v18 }
 0x256   : > { %v2583_v33 = vadd.f32 %v2582_v47, %v2581_v22  ;;  %v2685_v54 = vrot.slane %v2684_v32, 4 }
 0x258   : > { %v2584_v16 = vrot.slane %v2583_v33, 2  ;;  %v2686_v25 = vadd.f32 %v2685_v54, %v2684_v32 }
 0x25a   : > { %v2585_v41 = vadd.f32 %v2584_v16, %v2583_v33  ;;  %v2687_v0 = vrot.slane %v2686_v25, 2 }
 0x25c   : > { %v2586_v48 = vrot.slane %v2585_v41, 1  ;;  %v2688_v13 = vadd.f32 %v2687_v0, %v2686_v25 }
 0x25e   : > { %v2587_v44 = vadd.f32 %v2586_v48, %v2585_v41  ;;  %v2689_v56 = vrot.slane %v2688_v13, 1 }
 0x260   : > { %2589 = vst.msk [vmem:[%s164_s15] sm:$0x1] %vm2588_vm13, %v2587_v44  ;;  %v2690_v62 = vadd.f32 %v2689_v56, %v2688_v13 }
 0x262   : > { %2691 = vst.msk [vmem:[%s164_s15 + $0x1] sm:$0x1] %vm2588_vm13, %v2690_v62 }
 0x263 PF: > { %s14_s12 = sadd.s32 1, %s3387_s12  }
 0x264   : > { %p11_p5 = scmp.ge.s32.totalorder %s14_s12, 4  }
 0x266   :  { %13 = sbr.rel (!%p11_p5) target bundleno = 1 (0x1), region = 70 }

// kernel: mlc_forward.9
= control target key start
LH: loop header
LB: loop body
LE: loop exit
PB: predicated region body
PF: predicated region fallthrough
CT: control target
= control target key end

     0   :  { %v268_v3 = vmov 0.0   ;;  %vm269_vm0 = vmmov 0   ;;  %vm47_vm1 = vcmask 130048   ;;  %s346_s0 = inlined_call_operand.vmem [shape: bf16[8,2,8,16], index: 0, kind: input, shape index: {}]   ;;  %s347_s1 = inlined_call_operand.vmem [shape: f32[16,128], index: 1, kind: input, shape index: {}]   ;;  %s348_s2 = inlined_call_operand.vmem [shape: f32[1,128], index: 2, kind: input, shape index: {}]   ;;  %s349_s3 = inlined_call_operand.hbm [shape: f32[2,128], index: 3, kind: output, shape index: {}]  }
   0x1   :  { %v93_v0 = vld [vmem:[%s347_s1 + $0x8] sm:$0xff]  ;;  %v92_v1 = vld [vmem:[%s347_s1] sm:$0xff]  ;;  %236 = vmatprep.subr.mxu0 %v268_v3  ;;  %240 = vmatprep.mubr.msk.f32.mxu0 %vm269_vm0, %v268_v3  ;;  %v227_v6 = vld [vmem:[%s346_s0 + $0x10] sm:$0xff]  }
   0x2   :  { %v195_v2 = vld [vmem:[%s346_s0] sm:$0xff]   ;;  %v226_v5 = vld [vmem:[%s346_s0 + $0x8] sm:$0xff]   ;;  %v228_v7 = vld [vmem:[%s346_s0 + $0x18] sm:$0xff]   ;;  %237 = vmatpush3.msra.mxu0 %v93_v0  ;;  %v204_v9 = vunpack.c.l.bf16 %v227_v6 }
   0x3   :  { %v196_v4 = vunpack.c.l.bf16 %v195_v2  ;;  %v200_v8 = vunpack.c.l.bf16 %v226_v5  ;;  %v229_v10 = vld [vmem:[%s346_s0 + $0x20] sm:$0xff]   ;;  %238 = vmatprep.subr.mxu0 %v268_v3  ;;  %v197_v11 = vunpack.c.h.bf16 %v195_v2  ;;  %v208_v12 = vunpack.c.l.bf16 %v228_v7 }
   0x4   :  { %8 = vsyncpa [#allocation3], 0  ;;  %239 = vmatpush3.msra.mxu0 %v92_v1  ;;  %v201_v13 = vunpack.c.h.bf16 %v226_v5  ;;  %v205_v14 = vunpack.c.h.bf16 %v227_v6  ;;  %v230_v15 = vld [vmem:[%s346_s0 + $0x28] sm:$0xff]   ;;  %v212_v16 = vunpack.c.l.bf16 %v229_v10  ;;  %v209_v19 = vunpack.c.h.bf16 %v228_v7  ;;  %v231_v20 = vld [vmem:[%s346_s0 + $0x30] sm:$0xff]   ;;  %s270_s5 = smov [#allocation2]  }
   0x5   :  { %v48_v17 = vsel %vm47_vm1, %v196_v4, 0.0  ;;  %v49_v18 = vsel %vm47_vm1, %v200_v8, 0.0  ;;  %v51_v22 = vsel %vm47_vm1, %v204_v9, 0.0  ;;  %v216_v23 = vunpack.c.l.bf16 %v230_v15  ;;  %v232_v27 = vld [vmem:[%s346_s0 + $0x38] sm:$0xff]   ;;  %v192_v8 = vld [vmem:[%s348_s2] ss:$0 sm:$0xff] }
   0x6   :  { %v50_v21 = vadd.f32 %v49_v18, %v48_v17  ;;  %v53_v24 = vsel %vm47_vm1, %v208_v12, 0.0  ;;  %v63_v25 = vsel %vm47_vm1, %v197_v11, 0.0  ;;  %v213_v26 = vunpack.c.h.bf16 %v229_v10  ;;  %s184_s6 = sshll.u32 %s270_s5, 4  ;;  %s185_s6 = int_to_ptr.vmem [resolvable:$true] %s184_s6 }
   0x7   :  { %v64_v29 = vsel %vm47_vm1, %v201_v13, 0.0  ;;  %v66_v30 = vsel %vm47_vm1, %v205_v14, 0.0  ;;  %v220_v31 = vunpack.c.l.bf16 %v231_v20  ;;  %v55_v32 = vsel %vm47_vm1, %v212_v16, 0.0  ;;  %s246_s7 = scalar_lea.vmem %s185_s6, 32  ;;  %p251_p1 = scmp.lt.s32.totalorder %s185_s6, %s185_s6 }
   0x8   :  { %v52_v28 = vadd.f32 %v51_v22, %v50_v21  ;;  %v65_v33 = vadd.f32 %v64_v29, %v63_v25  ;;  %v217_v34 = vunpack.c.h.bf16 %v230_v15  ;;  %v68_v36 = vsel %vm47_vm1, %v209_v19, 0.0  ;;  %p247_p0 = scmp.ne.s32.totalorder %s185_s6, %s246_s7  ;;  %p252_p2 = scmp.lt.s32.totalorder %s246_s7, %s246_s7 }
   0x9   :  { %v224_v37 = vunpack.c.l.bf16 %v232_v27  ;;  %v57_v38 = vsel %vm47_vm1, %v216_v23, 0.0  ;;  %v221_v40 = vunpack.c.h.bf16 %v231_v20  ;;  %v70_v42 = vsel %vm47_vm1, %v213_v26, 0.0 }
   0xa   :  { %v54_v35 = vadd.f32 %v53_v24, %v52_v28  ;;  %v67_v39 = vadd.f32 %v66_v30, %v65_v33  ;;  %v59_v43 = vsel %vm47_vm1, %v220_v31, 0.0  ;;  %v225_v45 = vunpack.c.h.bf16 %v232_v27  ;;  %p253_p3 = por %p252_p2, %p251_p1 }
   0xb   :  { %v72_v47 = vsel %vm47_vm1, %v217_v34, 0.0  ;;  %v61_v48 = vsel %vm47_vm1, %v224_v37, 0.0  ;;  %v74_v51 = vsel %vm47_vm1, %v221_v40, 0.0  ;;  %vm103_vm2 = vcmask 1041409  }
   0xc   :  { %v56_v41 = vadd.f32 %v55_v32, %v54_v35  ;;  %v69_v44 = vadd.f32 %v68_v36, %v67_v39  ;;  %v76_v54 = vsel %vm47_vm1, %v225_v45, 0.0  ;;  %p254_p4 = pnand %p253_p3, %p247_p0 }
   0xe   :  { %v58_v46 = vadd.f32 %v57_v38, %v56_v41  ;;  %v71_v49 = vadd.f32 %v70_v42, %v69_v44 }
  0x10   :  { %v60_v50 = vadd.f32 %v59_v43, %v58_v46  ;;  %v73_v52 = vadd.f32 %v72_v47, %v71_v49 }
  0x12   :  { %v62_v53 = vadd.f32 %v61_v48, %v60_v50  ;;  %v75_v55 = vadd.f32 %v74_v51, %v73_v52 }
  0x14   :  { %v78_v56 = vsel %vm47_vm1, %v62_v53, 0.0  ;;  %v77_v57 = vadd.f32 %v76_v54, %v75_v55 }
  0x15   :  { %v79_v58 = vrot.slane %v78_v56, 4 }
  0x16   :  { %v85_v60 = vsel %vm47_vm1, %v77_v57, 0.0 }
  0x17   :  { %v80_v59 = vadd.f32 %v79_v58, %v78_v56  ;;  %v86_v61 = vrot.slane %v85_v60, 4 }
  0x19   :  { %v81_v62 = vrot.slane %v80_v59, 2  ;;  %v87_v63 = vadd.f32 %v86_v61, %v85_v60 }
  0x1b   :  { %v82_v0 = vadd.f32 %v81_v62, %v80_v59  ;;  %v88_v1 = vrot.slane %v87_v63, 2 }
  0x1d   :  { %v83_v2 = vrot.slane %v82_v0, 1  ;;  %v89_v3 = vadd.f32 %v88_v1, %v87_v63 }
  0x1f   :  { %v84_v4 = vadd.f32 %v83_v2, %v82_v0  ;;  %v90_v5 = vrot.slane %v89_v3, 1 }
  0x21   :  { %v91_v6 = vadd.f32 %v90_v5, %v89_v3 }
  0x23   :  { %v104_v7 = vsel %vm103_vm2, %v91_v6, %v84_v4 }
  0x24   :  { %241 = vmatmul.mubr.msk.f32.vlgmr.msra.gmra.mxu0 %vm47_vm1, %v104_v7 }
  0xe4   :  { %v173_v9 = vpop.f32.mrf.mxu0 }
  0xe5   :  { %v174_v10 = vadd.f32 %v192_v8, %v173_v9 }
  0xe6   :  { %v242_v11 = vpop.f32.mrf.mxu0 }
  0xe7   :  { %177 = vst [vmem:[#allocation2] sm:$0x3] %v174_v10 }
  0xe8   :  { %257 = shalt.err (!%p254_p4)
}
  0xe9   :  { %187 = dma.vmem_to_hbm [thread:$0]  %s185_s6, 32, %s349_s3, [#allocation3]  }
  0xea   :  { %266 = dma.done.wait [#allocation3], 32  }
  0xeb   :  { %267 = vsyncadd [#allocation3], 4294967264 }
  0xec   :  { %191 = vsyncpa [#allocation3], 1 }

</bundles_post_ra>
